<compile_context>
chip_gen: v6e
topology: v6e:2x2x1
jax: 0.10.0
libtpu: 0.0.40
codegen_flags: <defaults>
</compile_context>

<pallas_src>
import jax
import jax.numpy as jnp
from jax.experimental import pallas as pl
from jax.experimental.pallas import tpu as pltpu


# --------------------------- fused forward kernel ----------------------------

def _fused_qlstm_kernel(x_ref, wih0_ref, whh0_ref, b0_ref,
                        w1_ref, b1_ref, wout_ref, bout_ref, out_ref):
    B, T, D = x_ref.shape
    Hp = whh0_ref.shape[0]          # padded hidden width (128)

    # bf16 weight tiles (halved DMA); biases cast to f32 once, outside the loop.
    whh0 = whh0_ref[...]                                        # (Hp, 4Hp) bf16
    w1 = w1_ref[...]                                            # (2Hp, 4Hp) bf16
    b1b = jnp.broadcast_to(b1_ref[...].astype(jnp.float32), (B, 4 * Hp))

    # ---- hoisted layer-0 input projection: one well-shaped GEMM, off the serial path
    x_all = x_ref[...].reshape(B * T, D).astype(jnp.bfloat16)   # (B*T, D)
    gx0 = (jnp.dot(x_all, wih0_ref[...],
                   preferred_element_type=jnp.float32)
           + b0_ref[...].astype(jnp.float32)).reshape(B, T, 4 * Hp)

    def cell(gates, c):
        # gate order i|f|o|g, each Hp=128 wide: one contiguous sigmoid slab + one tanh.
        sig = jax.nn.sigmoid(gates[:, :3 * Hp])
        i_g = sig[:, 0 * Hp:1 * Hp]
        f_g = sig[:, 1 * Hp:2 * Hp]
        o_g = sig[:, 2 * Hp:3 * Hp]
        g_g = jnp.tanh(gates[:, 3 * Hp:4 * Hp])
        c_new = f_g * c + i_g * g_g
        h_new = o_g * jnp.tanh(c_new)
        return h_new, c_new

    h0 = jnp.zeros((B, Hp), jnp.float32)
    c0 = jnp.zeros((B, Hp), jnp.float32)
    h1 = jnp.zeros((B, Hp), jnp.float32)
    c1 = jnp.zeros((B, Hp), jnp.float32)

    # Static unrolled time loop (T is small): only 2 serial MXU pushes per step
    # (layer-0 K=Hp recurrence + fused layer-1 K=2*Hp). Keep this sequential.
    h1_steps = []
    for t in range(T):
        g0 = gx0[:, t, :] + jnp.dot(h0.astype(jnp.bfloat16), whh0,
                                    preferred_element_type=jnp.float32)
        h0, c0 = cell(g0, c0)
        h01 = jnp.concatenate([h0, h1], axis=-1).astype(jnp.bfloat16)   # (B, 2Hp)
        g1 = jnp.dot(h01, w1, preferred_element_type=jnp.float32) + b1b
        h1, c1 = cell(g1, c1)
        h1_steps.append(h1)          # stays in vregs (~2 vregs total at B=2)

    # ---- fused quantile head: one lane-dense GEMM + single unmasked store
    h1_all = jnp.stack(h1_steps, axis=1).reshape(B * T, Hp).astype(jnp.bfloat16)
    out = (jnp.dot(h1_all, wout_ref[...],
                   preferred_element_type=jnp.float32)
           + bout_ref[...].astype(jnp.float32))                 # (B*T, Qp)
    out_ref[...] = out.reshape(B, T, -1)


# ----------------------------- parameter init --------------------------------

# Destination gate slot s holds source (PyTorch i,f,g,o) gate GATE_PERM[s]:
# kernel layout is i|f|o|g so the three sigmoids are contiguous.
_GATE_PERM = (0, 1, 3, 2)


def init_params(key, input_size=288, hidden_size=64, num_layers=2,
                num_quantiles=3, hidden_pad=128, quant_pad=128):
    """Deterministic synthetic init mirroring PyTorch shapes/distributions.

    Weights are stored pre-transposed, zero-padded to the 128-lane-aligned layout
    the fused kernel expects, gate-reordered to i|f|o|g, and cast to bf16:
      wih_0: (D, 4*Hp), whh_0: (Hp, 4*Hp), b_0 = b_ih+b_hh: (1, 4*Hp),
      w_1 = vstack(wih_1, whh_1): (2*Hp, 4*Hp), b_1: (1, 4*Hp),
      w_out: (Hp, Qp), b_out: (1, Qp).   Padded rows/cols are exactly zero.
    Real trained PyTorch weights must go through this same padding/permute path.
    """
    assert num_layers == 2, "fused kernel is specialized to num_layers=2"
    H, Hp, Q, Qp = hidden_size, hidden_pad, num_quantiles, quant_pad
    k = 1.0 / float(H) ** 0.5
    keys = jax.random.split(key, num_layers * 4 + 2)
    ki = 0
    params = {}

    def pad_gate_cols(w_t, rows_real, rows_pad):
        # w_t: (rows_real, 4H) in PyTorch gate order i|f|g|o
        #   -> (rows_pad, 4Hp) in kernel gate order i|f|o|g, each block padded H->Hp.
        out = jnp.zeros((rows_pad, 4 * Hp), jnp.float32)
        for s in range(4):
            g = _GATE_PERM[s]
            out = out.at[:rows_real, s * Hp:s * Hp + H].set(
                w_t[:, g * H:(g + 1) * H])
        return out

    raw = {}
    for layer in range(num_layers):
        d_in = input_size if layer == 0 else H
        d_in_pad = input_size if layer == 0 else Hp
        w_ih = jax.random.uniform(keys[ki], (d_in, 4 * H), jnp.float32, -k, k); ki += 1
        w_hh = jax.random.uniform(keys[ki], (H, 4 * H), jnp.float32, -k, k); ki += 1
        b_ih = jax.random.uniform(keys[ki], (4 * H,), jnp.float32, -k, k); ki += 1
        b_hh = jax.random.uniform(keys[ki], (4 * H,), jnp.float32, -k, k); ki += 1
        raw[f"wih_{layer}"] = pad_gate_cols(w_ih, d_in, d_in_pad)
        raw[f"whh_{layer}"] = pad_gate_cols(w_hh, H, Hp)
        raw[f"b_{layer}"] = pad_gate_cols((b_ih + b_hh).reshape(1, 4 * H), 1, 1)

    # Layer 0 stays separate (input projection is hoisted out of the recurrence).
    params["wih_0"] = raw["wih_0"].astype(jnp.bfloat16)
    params["whh_0"] = raw["whh_0"].astype(jnp.bfloat16)
    params["b_0"] = raw["b_0"].astype(jnp.bfloat16)
    # Layer 1: fuse the two recurrent matmuls into one K=2*Hp GEMM operand.
    params["w_1"] = jnp.vstack([raw["wih_1"], raw["whh_1"]]).astype(jnp.bfloat16)
    params["b_1"] = raw["b_1"].astype(jnp.bfloat16)

    w_out = jax.random.uniform(keys[ki], (H, Q), jnp.float32, -k, k); ki += 1
    b_out = jax.random.uniform(keys[ki], (Q,), jnp.float32, -k, k)
    params["w_out"] = (jnp.zeros((Hp, Qp), jnp.float32)
                       .at[:H, :Q].set(w_out)).astype(jnp.bfloat16)
    params["b_out"] = (jnp.zeros((1, Qp), jnp.float32)
                       .at[0, :Q].set(b_out)).astype(jnp.bfloat16)
    params["num_quantiles"] = Q
    return params


# ------------------------------ forward wrapper -------------------------------

def quantile_lstm_forward(params, x):
    """x: (B, T, input_size) batch-first f32, like the PyTorch module."""
    B, T, _ = x.shape
    Qp = params["w_out"].shape[1]

    vmem_specs = [pl.BlockSpec(memory_space=pltpu.MemorySpace.VMEM)
                  for _ in range(8)]
    out_padded = pl.pallas_call(
        _fused_qlstm_kernel,
        out_shape=jax.ShapeDtypeStruct((B, T, Qp), jnp.float32),
        in_specs=vmem_specs,
        out_specs=pl.BlockSpec(memory_space=pltpu.MemorySpace.VMEM),
    )(x,
      params["wih_0"], params["whh_0"], params["b_0"],
      params["w_1"], params["b_1"],
      params["w_out"], params["b_out"])

    out = out_padded[..., :params["num_quantiles"]]            # drop lane padding
    if out.shape[-1] == 1:                                     # out.squeeze(-1)
        out = out[..., 0]
    return out
    # TODO(synk): on v7x only, if profiling shows the kernel is compute-bound after
    # the bf16 weight change, add grid=(B,) with dimension_semantics=("parallel",)
    # to shard the two independent batch recurrences across its 2 TensorCores.
    # TODO(synk): in a serving loop, amortize the (now bf16) weight DMA across calls
    # via cross-call prefetch (P10) or by keeping the model in one larger region.


# ----------------------------------- main -------------------------------------

if __name__ == "__main__":
    INPUT_SIZE = 288
    HIDDEN = 64
    NUM_LAYERS = 2
    N_QUANT = 3          # quantiles = [0.05, 0.5, 0.95]
    B, T = 2, 8

    root = jax.random.PRNGKey(0)
    k_params, k_x = jax.random.split(root)
    params = init_params(k_params, input_size=INPUT_SIZE, hidden_size=HIDDEN,
                         num_layers=NUM_LAYERS, num_quantiles=N_QUANT)
    x = jax.random.normal(k_x, (B, T, INPUT_SIZE), jnp.float32)

    out = quantile_lstm_forward(params, x)
    out = jax.block_until_ready(out)
    assert out.shape == (B, T, N_QUANT), out.shape
    assert bool(jnp.all(jnp.isfinite(out)))
    print("KERNEL_OK")
</pallas_src>

<mosaic_0001>
module attributes {stable_mosaic.version = 11 : i64} {
  func.func @_fused_qlstm_kernel(%arg0: memref<2x8x288xf32, #tpu.memory_space<vmem>>, %arg1: memref<288x512xbf16, #tpu.memory_space<vmem>>, %arg2: memref<128x512xbf16, #tpu.memory_space<vmem>>, %arg3: memref<1x512xbf16, #tpu.memory_space<vmem>>, %arg4: memref<256x512xbf16, #tpu.memory_space<vmem>>, %arg5: memref<1x512xbf16, #tpu.memory_space<vmem>>, %arg6: memref<128x128xbf16, #tpu.memory_space<vmem>>, %arg7: memref<1x128xbf16, #tpu.memory_space<vmem>>, %arg8: memref<2x8x128xf32, #tpu.memory_space<vmem>>) attributes {dimension_semantics = [], scalar_prefetch = 0 : i64, scratch_operands = 0 : i64, tpu.core_type = #tpu.core_type<tc>} {
    %c0 = arith.constant 0 : index
    %c0_0 = arith.constant 0 : index
    %0 = vector.load %arg2[%c0, %c0_0] : memref<128x512xbf16, #tpu.memory_space<vmem>>, vector<128x512xbf16>
    %c0_1 = arith.constant 0 : index
    %c0_2 = arith.constant 0 : index
    %1 = vector.load %arg4[%c0_1, %c0_2] : memref<256x512xbf16, #tpu.memory_space<vmem>>, vector<256x512xbf16>
    %c0_3 = arith.constant 0 : index
    %c0_4 = arith.constant 0 : index
    %2 = vector.load %arg5[%c0_3, %c0_4] : memref<1x512xbf16, #tpu.memory_space<vmem>>, vector<1x512xbf16>
    %3 = arith.extf %2 : vector<1x512xbf16> to vector<1x512xf32>
    %4 = vector.shape_cast %3 : vector<1x512xf32> to vector<1x512xf32>
    %5 = vector.broadcast %4 : vector<1x512xf32> to vector<2x512xf32>
    %c0_5 = arith.constant 0 : index
    %c0_6 = arith.constant 0 : index
    %c0_7 = arith.constant 0 : index
    %6 = vector.load %arg0[%c0_5, %c0_6, %c0_7] : memref<2x8x288xf32, #tpu.memory_space<vmem>>, vector<2x8x288xf32>
    %7 = vector.shape_cast %6 : vector<2x8x288xf32> to vector<16x288xf32>
    %8 = arith.truncf %7 : vector<16x288xf32> to vector<16x288xbf16>
    %c0_8 = arith.constant 0 : index
    %c0_9 = arith.constant 0 : index
    %9 = vector.load %arg1[%c0_8, %c0_9] : memref<288x512xbf16, #tpu.memory_space<vmem>>, vector<288x512xbf16>
    %cst = arith.constant dense<0.000000e+00> : vector<16x512xf32>
    %10 = tpu.matmul %8, %9, %cst {dimension_numbers = #tpu.dot_dimension_numbers<[1], [0], [0], [1], [0, 0, 1, 1], [], []>} : vector<16x288xbf16>, vector<288x512xbf16>, vector<16x512xf32> -> vector<16x512xf32>
    %c0_10 = arith.constant 0 : index
    %c0_11 = arith.constant 0 : index
    %11 = vector.load %arg3[%c0_10, %c0_11] : memref<1x512xbf16, #tpu.memory_space<vmem>>, vector<1x512xbf16>
    %12 = arith.extf %11 : vector<1x512xbf16> to vector<1x512xf32>
    %13 = vector.broadcast %12 : vector<1x512xf32> to vector<16x512xf32>
    %14 = arith.addf %10, %13 : vector<16x512xf32>
    %15 = vector.shape_cast %14 : vector<16x512xf32> to vector<2x8x512xf32>
    %cst_12 = arith.constant 0.000000e+00 : f32
    %16 = vector.broadcast %cst_12 : f32 to vector<2x128xf32>
    %cst_13 = arith.constant 0.000000e+00 : f32
    %17 = vector.broadcast %cst_13 : f32 to vector<2x128xf32>
    %cst_14 = arith.constant 0.000000e+00 : f32
    %18 = vector.broadcast %cst_14 : f32 to vector<2x128xf32>
    %cst_15 = arith.constant 0.000000e+00 : f32
    %19 = vector.broadcast %cst_15 : f32 to vector<2x128xf32>
    %20 = vector.extract_strided_slice %15 {offsets = [0, 0, 0], sizes = [2, 1, 512], strides = [1, 1, 1]} : vector<2x8x512xf32> to vector<2x1x512xf32>
    %21 = vector.shape_cast %20 : vector<2x1x512xf32> to vector<2x512xf32>
    %22 = arith.truncf %16 : vector<2x128xf32> to vector<2x128xbf16>
    %cst_16 = arith.constant dense<0.000000e+00> : vector<2x512xf32>
    %23 = tpu.matmul %22, %0, %cst_16 {dimension_numbers = #tpu.dot_dimension_numbers<[1], [0], [0], [1], [0, 0, 1, 1], [], []>} : vector<2x128xbf16>, vector<128x512xbf16>, vector<2x512xf32> -> vector<2x512xf32>
    %24 = arith.addf %21, %23 : vector<2x512xf32>
    %25 = vector.extract_strided_slice %24 {offsets = [0, 0], sizes = [2, 384], strides = [1, 1]} : vector<2x512xf32> to vector<2x384xf32>
    %26 = arith.negf %25 : vector<2x384xf32>
    %27 = math.exp %26 : vector<2x384xf32>
    %cst_17 = arith.constant 1.000000e+00 : f32
    %28 = vector.broadcast %cst_17 : f32 to vector<2x384xf32>
    %29 = arith.addf %28, %27 : vector<2x384xf32>
    %30 = arith.divf %28, %29 : vector<2x384xf32>
    %31 = vector.extract_strided_slice %30 {offsets = [0, 0], sizes = [2, 128], strides = [1, 1]} : vector<2x384xf32> to vector<2x128xf32>
    %32 = vector.extract_strided_slice %30 {offsets = [0, 128], sizes = [2, 128], strides = [1, 1]} : vector<2x384xf32> to vector<2x128xf32>
    %33 = vector.extract_strided_slice %30 {offsets = [0, 256], sizes = [2, 128], strides = [1, 1]} : vector<2x384xf32> to vector<2x128xf32>
    %34 = vector.extract_strided_slice %24 {offsets = [0, 384], sizes = [2, 128], strides = [1, 1]} : vector<2x512xf32> to vector<2x128xf32>
    %35 = math.tanh %34 : vector<2x128xf32>
    %36 = arith.mulf %32, %17 : vector<2x128xf32>
    %37 = arith.mulf %31, %35 : vector<2x128xf32>
    %38 = arith.addf %36, %37 : vector<2x128xf32>
    %39 = math.tanh %38 : vector<2x128xf32>
    %40 = arith.mulf %33, %39 : vector<2x128xf32>
    %41 = tpu.concatenate %40, %18 in 1 : vector<2x128xf32>, vector<2x128xf32> -> vector<2x256xf32>
    %42 = arith.truncf %41 : vector<2x256xf32> to vector<2x256xbf16>
    %cst_18 = arith.constant dense<0.000000e+00> : vector<2x512xf32>
    %43 = tpu.matmul %42, %1, %cst_18 {dimension_numbers = #tpu.dot_dimension_numbers<[1], [0], [0], [1], [0, 0, 1, 1], [], []>} : vector<2x256xbf16>, vector<256x512xbf16>, vector<2x512xf32> -> vector<2x512xf32>
    %44 = arith.addf %43, %5 : vector<2x512xf32>
    %45 = vector.extract_strided_slice %44 {offsets = [0, 0], sizes = [2, 384], strides = [1, 1]} : vector<2x512xf32> to vector<2x384xf32>
    %46 = arith.negf %45 : vector<2x384xf32>
    %47 = math.exp %46 : vector<2x384xf32>
    %cst_19 = arith.constant 1.000000e+00 : f32
    %48 = vector.broadcast %cst_19 : f32 to vector<2x384xf32>
    %49 = arith.addf %48, %47 : vector<2x384xf32>
    %50 = arith.divf %48, %49 : vector<2x384xf32>
    %51 = vector.extract_strided_slice %50 {offsets = [0, 0], sizes = [2, 128], strides = [1, 1]} : vector<2x384xf32> to vector<2x128xf32>
    %52 = vector.extract_strided_slice %50 {offsets = [0, 128], sizes = [2, 128], strides = [1, 1]} : vector<2x384xf32> to vector<2x128xf32>
    %53 = vector.extract_strided_slice %50 {offsets = [0, 256], sizes = [2, 128], strides = [1, 1]} : vector<2x384xf32> to vector<2x128xf32>
    %54 = vector.extract_strided_slice %44 {offsets = [0, 384], sizes = [2, 128], strides = [1, 1]} : vector<2x512xf32> to vector<2x128xf32>
    %55 = math.tanh %54 : vector<2x128xf32>
    %56 = arith.mulf %52, %19 : vector<2x128xf32>
    %57 = arith.mulf %51, %55 : vector<2x128xf32>
    %58 = arith.addf %56, %57 : vector<2x128xf32>
    %59 = math.tanh %58 : vector<2x128xf32>
    %60 = arith.mulf %53, %59 : vector<2x128xf32>
    %61 = vector.extract_strided_slice %15 {offsets = [0, 1, 0], sizes = [2, 1, 512], strides = [1, 1, 1]} : vector<2x8x512xf32> to vector<2x1x512xf32>
    %62 = vector.shape_cast %61 : vector<2x1x512xf32> to vector<2x512xf32>
    %63 = arith.truncf %40 : vector<2x128xf32> to vector<2x128xbf16>
    %cst_20 = arith.constant dense<0.000000e+00> : vector<2x512xf32>
    %64 = tpu.matmul %63, %0, %cst_20 {dimension_numbers = #tpu.dot_dimension_numbers<[1], [0], [0], [1], [0, 0, 1, 1], [], []>} : vector<2x128xbf16>, vector<128x512xbf16>, vector<2x512xf32> -> vector<2x512xf32>
    %65 = arith.addf %62, %64 : vector<2x512xf32>
    %66 = vector.extract_strided_slice %65 {offsets = [0, 0], sizes = [2, 384], strides = [1, 1]} : vector<2x512xf32> to vector<2x384xf32>
    %67 = arith.negf %66 : vector<2x384xf32>
    %68 = math.exp %67 : vector<2x384xf32>
    %cst_21 = arith.constant 1.000000e+00 : f32
    %69 = vector.broadcast %cst_21 : f32 to vector<2x384xf32>
    %70 = arith.addf %69, %68 : vector<2x384xf32>
    %71 = arith.divf %69, %70 : vector<2x384xf32>
    %72 = vector.extract_strided_slice %71 {offsets = [0, 0], sizes = [2, 128], strides = [1, 1]} : vector<2x384xf32> to vector<2x128xf32>
    %73 = vector.extract_strided_slice %71 {offsets = [0, 128], sizes = [2, 128], strides = [1, 1]} : vector<2x384xf32> to vector<2x128xf32>
    %74 = vector.extract_strided_slice %71 {offsets = [0, 256], sizes = [2, 128], strides = [1, 1]} : vector<2x384xf32> to vector<2x128xf32>
    %75 = vector.extract_strided_slice %65 {offsets = [0, 384], sizes = [2, 128], strides = [1, 1]} : vector<2x512xf32> to vector<2x128xf32>
    %76 = math.tanh %75 : vector<2x128xf32>
    %77 = arith.mulf %73, %38 : vector<2x128xf32>
    %78 = arith.mulf %72, %76 : vector<2x128xf32>
    %79 = arith.addf %77, %78 : vector<2x128xf32>
    %80 = math.tanh %79 : vector<2x128xf32>
    %81 = arith.mulf %74, %80 : vector<2x128xf32>
    %82 = tpu.concatenate %81, %60 in 1 : vector<2x128xf32>, vector<2x128xf32> -> vector<2x256xf32>
    %83 = arith.truncf %82 : vector<2x256xf32> to vector<2x256xbf16>
    %cst_22 = arith.constant dense<0.000000e+00> : vector<2x512xf32>
    %84 = tpu.matmul %83, %1, %cst_22 {dimension_numbers = #tpu.dot_dimension_numbers<[1], [0], [0], [1], [0, 0, 1, 1], [], []>} : vector<2x256xbf16>, vector<256x512xbf16>, vector<2x512xf32> -> vector<2x512xf32>
    %85 = arith.addf %84, %5 : vector<2x512xf32>
    %86 = vector.extract_strided_slice %85 {offsets = [0, 0], sizes = [2, 384], strides = [1, 1]} : vector<2x512xf32> to vector<2x384xf32>
    %87 = arith.negf %86 : vector<2x384xf32>
    %88 = math.exp %87 : vector<2x384xf32>
    %cst_23 = arith.constant 1.000000e+00 : f32
    %89 = vector.broadcast %cst_23 : f32 to vector<2x384xf32>
    %90 = arith.addf %89, %88 : vector<2x384xf32>
    %91 = arith.divf %89, %90 : vector<2x384xf32>
    %92 = vector.extract_strided_slice %91 {offsets = [0, 0], sizes = [2, 128], strides = [1, 1]} : vector<2x384xf32> to vector<2x128xf32>
    %93 = vector.extract_strided_slice %91 {offsets = [0, 128], sizes = [2, 128], strides = [1, 1]} : vector<2x384xf32> to vector<2x128xf32>
    %94 = vector.extract_strided_slice %91 {offsets = [0, 256], sizes = [2, 128], strides = [1, 1]} : vector<2x384xf32> to vector<2x128xf32>
    %95 = vector.extract_strided_slice %85 {offsets = [0, 384], sizes = [2, 128], strides = [1, 1]} : vector<2x512xf32> to vector<2x128xf32>
    %96 = math.tanh %95 : vector<2x128xf32>
    %97 = arith.mulf %93, %58 : vector<2x128xf32>
    %98 = arith.mulf %92, %96 : vector<2x128xf32>
    %99 = arith.addf %97, %98 : vector<2x128xf32>
    %100 = math.tanh %99 : vector<2x128xf32>
    %101 = arith.mulf %94, %100 : vector<2x128xf32>
    %102 = vector.extract_strided_slice %15 {offsets = [0, 2, 0], sizes = [2, 1, 512], strides = [1, 1, 1]} : vector<2x8x512xf32> to vector<2x1x512xf32>
    %103 = vector.shape_cast %102 : vector<2x1x512xf32> to vector<2x512xf32>
    %104 = arith.truncf %81 : vector<2x128xf32> to vector<2x128xbf16>
    %cst_24 = arith.constant dense<0.000000e+00> : vector<2x512xf32>
    %105 = tpu.matmul %104, %0, %cst_24 {dimension_numbers = #tpu.dot_dimension_numbers<[1], [0], [0], [1], [0, 0, 1, 1], [], []>} : vector<2x128xbf16>, vector<128x512xbf16>, vector<2x512xf32> -> vector<2x512xf32>
    %106 = arith.addf %103, %105 : vector<2x512xf32>
    %107 = vector.extract_strided_slice %106 {offsets = [0, 0], sizes = [2, 384], strides = [1, 1]} : vector<2x512xf32> to vector<2x384xf32>
    %108 = arith.negf %107 : vector<2x384xf32>
    %109 = math.exp %108 : vector<2x384xf32>
    %cst_25 = arith.constant 1.000000e+00 : f32
    %110 = vector.broadcast %cst_25 : f32 to vector<2x384xf32>
    %111 = arith.addf %110, %109 : vector<2x384xf32>
    %112 = arith.divf %110, %111 : vector<2x384xf32>
    %113 = vector.extract_strided_slice %112 {offsets = [0, 0], sizes = [2, 128], strides = [1, 1]} : vector<2x384xf32> to vector<2x128xf32>
    %114 = vector.extract_strided_slice %112 {offsets = [0, 128], sizes = [2, 128], strides = [1, 1]} : vector<2x384xf32> to vector<2x128xf32>
    %115 = vector.extract_strided_slice %112 {offsets = [0, 256], sizes = [2, 128], strides = [1, 1]} : vector<2x384xf32> to vector<2x128xf32>
    %116 = vector.extract_strided_slice %106 {offsets = [0, 384], sizes = [2, 128], strides = [1, 1]} : vector<2x512xf32> to vector<2x128xf32>
    %117 = math.tanh %116 : vector<2x128xf32>
    %118 = arith.mulf %114, %79 : vector<2x128xf32>
    %119 = arith.mulf %113, %117 : vector<2x128xf32>
    %120 = arith.addf %118, %119 : vector<2x128xf32>
    %121 = math.tanh %120 : vector<2x128xf32>
    %122 = arith.mulf %115, %121 : vector<2x128xf32>
    %123 = tpu.concatenate %122, %101 in 1 : vector<2x128xf32>, vector<2x128xf32> -> vector<2x256xf32>
    %124 = arith.truncf %123 : vector<2x256xf32> to vector<2x256xbf16>
    %cst_26 = arith.constant dense<0.000000e+00> : vector<2x512xf32>
    %125 = tpu.matmul %124, %1, %cst_26 {dimension_numbers = #tpu.dot_dimension_numbers<[1], [0], [0], [1], [0, 0, 1, 1], [], []>} : vector<2x256xbf16>, vector<256x512xbf16>, vector<2x512xf32> -> vector<2x512xf32>
    %126 = arith.addf %125, %5 : vector<2x512xf32>
    %127 = vector.extract_strided_slice %126 {offsets = [0, 0], sizes = [2, 384], strides = [1, 1]} : vector<2x512xf32> to vector<2x384xf32>
    %128 = arith.negf %127 : vector<2x384xf32>
    %129 = math.exp %128 : vector<2x384xf32>
    %cst_27 = arith.constant 1.000000e+00 : f32
    %130 = vector.broadcast %cst_27 : f32 to vector<2x384xf32>
    %131 = arith.addf %130, %129 : vector<2x384xf32>
    %132 = arith.divf %130, %131 : vector<2x384xf32>
    %133 = vector.extract_strided_slice %132 {offsets = [0, 0], sizes = [2, 128], strides = [1, 1]} : vector<2x384xf32> to vector<2x128xf32>
    %134 = vector.extract_strided_slice %132 {offsets = [0, 128], sizes = [2, 128], strides = [1, 1]} : vector<2x384xf32> to vector<2x128xf32>
    %135 = vector.extract_strided_slice %132 {offsets = [0, 256], sizes = [2, 128], strides = [1, 1]} : vector<2x384xf32> to vector<2x128xf32>
    %136 = vector.extract_strided_slice %126 {offsets = [0, 384], sizes = [2, 128], strides = [1, 1]} : vector<2x512xf32> to vector<2x128xf32>
    %137 = math.tanh %136 : vector<2x128xf32>
    %138 = arith.mulf %134, %99 : vector<2x128xf32>
    %139 = arith.mulf %133, %137 : vector<2x128xf32>
    %140 = arith.addf %138, %139 : vector<2x128xf32>
    %141 = math.tanh %140 : vector<2x128xf32>
    %142 = arith.mulf %135, %141 : vector<2x128xf32>
    %143 = vector.extract_strided_slice %15 {offsets = [0, 3, 0], sizes = [2, 1, 512], strides = [1, 1, 1]} : vector<2x8x512xf32> to vector<2x1x512xf32>
    %144 = vector.shape_cast %143 : vector<2x1x512xf32> to vector<2x512xf32>
    %145 = arith.truncf %122 : vector<2x128xf32> to vector<2x128xbf16>
    %cst_28 = arith.constant dense<0.000000e+00> : vector<2x512xf32>
    %146 = tpu.matmul %145, %0, %cst_28 {dimension_numbers = #tpu.dot_dimension_numbers<[1], [0], [0], [1], [0, 0, 1, 1], [], []>} : vector<2x128xbf16>, vector<128x512xbf16>, vector<2x512xf32> -> vector<2x512xf32>
    %147 = arith.addf %144, %146 : vector<2x512xf32>
    %148 = vector.extract_strided_slice %147 {offsets = [0, 0], sizes = [2, 384], strides = [1, 1]} : vector<2x512xf32> to vector<2x384xf32>
    %149 = arith.negf %148 : vector<2x384xf32>
    %150 = math.exp %149 : vector<2x384xf32>
    %cst_29 = arith.constant 1.000000e+00 : f32
    %151 = vector.broadcast %cst_29 : f32 to vector<2x384xf32>
    %152 = arith.addf %151, %150 : vector<2x384xf32>
    %153 = arith.divf %151, %152 : vector<2x384xf32>
    %154 = vector.extract_strided_slice %153 {offsets = [0, 0], sizes = [2, 128], strides = [1, 1]} : vector<2x384xf32> to vector<2x128xf32>
    %155 = vector.extract_strided_slice %153 {offsets = [0, 128], sizes = [2, 128], strides = [1, 1]} : vector<2x384xf32> to vector<2x128xf32>
    %156 = vector.extract_strided_slice %153 {offsets = [0, 256], sizes = [2, 128], strides = [1, 1]} : vector<2x384xf32> to vector<2x128xf32>
    %157 = vector.extract_strided_slice %147 {offsets = [0, 384], sizes = [2, 128], strides = [1, 1]} : vector<2x512xf32> to vector<2x128xf32>
    %158 = math.tanh %157 : vector<2x128xf32>
    %159 = arith.mulf %155, %120 : vector<2x128xf32>
    %160 = arith.mulf %154, %158 : vector<2x128xf32>
    %161 = arith.addf %159, %160 : vector<2x128xf32>
    %162 = math.tanh %161 : vector<2x128xf32>
    %163 = arith.mulf %156, %162 : vector<2x128xf32>
    %164 = tpu.concatenate %163, %142 in 1 : vector<2x128xf32>, vector<2x128xf32> -> vector<2x256xf32>
    %165 = arith.truncf %164 : vector<2x256xf32> to vector<2x256xbf16>
    %cst_30 = arith.constant dense<0.000000e+00> : vector<2x512xf32>
    %166 = tpu.matmul %165, %1, %cst_30 {dimension_numbers = #tpu.dot_dimension_numbers<[1], [0], [0], [1], [0, 0, 1, 1], [], []>} : vector<2x256xbf16>, vector<256x512xbf16>, vector<2x512xf32> -> vector<2x512xf32>
    %167 = arith.addf %166, %5 : vector<2x512xf32>
    %168 = vector.extract_strided_slice %167 {offsets = [0, 0], sizes = [2, 384], strides = [1, 1]} : vector<2x512xf32> to vector<2x384xf32>
    %169 = arith.negf %168 : vector<2x384xf32>
    %170 = math.exp %169 : vector<2x384xf32>
    %cst_31 = arith.constant 1.000000e+00 : f32
    %171 = vector.broadcast %cst_31 : f32 to vector<2x384xf32>
    %172 = arith.addf %171, %170 : vector<2x384xf32>
    %173 = arith.divf %171, %172 : vector<2x384xf32>
    %174 = vector.extract_strided_slice %173 {offsets = [0, 0], sizes = [2, 128], strides = [1, 1]} : vector<2x384xf32> to vector<2x128xf32>
    %175 = vector.extract_strided_slice %173 {offsets = [0, 128], sizes = [2, 128], strides = [1, 1]} : vector<2x384xf32> to vector<2x128xf32>
    %176 = vector.extract_strided_slice %173 {offsets = [0, 256], sizes = [2, 128], strides = [1, 1]} : vector<2x384xf32> to vector<2x128xf32>
    %177 = vector.extract_strided_slice %167 {offsets = [0, 384], sizes = [2, 128], strides = [1, 1]} : vector<2x512xf32> to vector<2x128xf32>
    %178 = math.tanh %177 : vector<2x128xf32>
    %179 = arith.mulf %175, %140 : vector<2x128xf32>
    %180 = arith.mulf %174, %178 : vector<2x128xf32>
    %181 = arith.addf %179, %180 : vector<2x128xf32>
    %182 = math.tanh %181 : vector<2x128xf32>
    %183 = arith.mulf %176, %182 : vector<2x128xf32>
    %184 = vector.extract_strided_slice %15 {offsets = [0, 4, 0], sizes = [2, 1, 512], strides = [1, 1, 1]} : vector<2x8x512xf32> to vector<2x1x512xf32>
    %185 = vector.shape_cast %184 : vector<2x1x512xf32> to vector<2x512xf32>
    %186 = arith.truncf %163 : vector<2x128xf32> to vector<2x128xbf16>
    %cst_32 = arith.constant dense<0.000000e+00> : vector<2x512xf32>
    %187 = tpu.matmul %186, %0, %cst_32 {dimension_numbers = #tpu.dot_dimension_numbers<[1], [0], [0], [1], [0, 0, 1, 1], [], []>} : vector<2x128xbf16>, vector<128x512xbf16>, vector<2x512xf32> -> vector<2x512xf32>
    %188 = arith.addf %185, %187 : vector<2x512xf32>
    %189 = vector.extract_strided_slice %188 {offsets = [0, 0], sizes = [2, 384], strides = [1, 1]} : vector<2x512xf32> to vector<2x384xf32>
    %190 = arith.negf %189 : vector<2x384xf32>
    %191 = math.exp %190 : vector<2x384xf32>
    %cst_33 = arith.constant 1.000000e+00 : f32
    %192 = vector.broadcast %cst_33 : f32 to vector<2x384xf32>
    %193 = arith.addf %192, %191 : vector<2x384xf32>
    %194 = arith.divf %192, %193 : vector<2x384xf32>
    %195 = vector.extract_strided_slice %194 {offsets = [0, 0], sizes = [2, 128], strides = [1, 1]} : vector<2x384xf32> to vector<2x128xf32>
    %196 = vector.extract_strided_slice %194 {offsets = [0, 128], sizes = [2, 128], strides = [1, 1]} : vector<2x384xf32> to vector<2x128xf32>
    %197 = vector.extract_strided_slice %194 {offsets = [0, 256], sizes = [2, 128], strides = [1, 1]} : vector<2x384xf32> to vector<2x128xf32>
    %198 = vector.extract_strided_slice %188 {offsets = [0, 384], sizes = [2, 128], strides = [1, 1]} : vector<2x512xf32> to vector<2x128xf32>
    %199 = math.tanh %198 : vector<2x128xf32>
    %200 = arith.mulf %196, %161 : vector<2x128xf32>
    %201 = arith.mulf %195, %199 : vector<2x128xf32>
    %202 = arith.addf %200, %201 : vector<2x128xf32>
    %203 = math.tanh %202 : vector<2x128xf32>
    %204 = arith.mulf %197, %203 : vector<2x128xf32>
    %205 = tpu.concatenate %204, %183 in 1 : vector<2x128xf32>, vector<2x128xf32> -> vector<2x256xf32>
    %206 = arith.truncf %205 : vector<2x256xf32> to vector<2x256xbf16>
    %cst_34 = arith.constant dense<0.000000e+00> : vector<2x512xf32>
    %207 = tpu.matmul %206, %1, %cst_34 {dimension_numbers = #tpu.dot_dimension_numbers<[1], [0], [0], [1], [0, 0, 1, 1], [], []>} : vector<2x256xbf16>, vector<256x512xbf16>, vector<2x512xf32> -> vector<2x512xf32>
    %208 = arith.addf %207, %5 : vector<2x512xf32>
    %209 = vector.extract_strided_slice %208 {offsets = [0, 0], sizes = [2, 384], strides = [1, 1]} : vector<2x512xf32> to vector<2x384xf32>
    %210 = arith.negf %209 : vector<2x384xf32>
    %211 = math.exp %210 : vector<2x384xf32>
    %cst_35 = arith.constant 1.000000e+00 : f32
    %212 = vector.broadcast %cst_35 : f32 to vector<2x384xf32>
    %213 = arith.addf %212, %211 : vector<2x384xf32>
    %214 = arith.divf %212, %213 : vector<2x384xf32>
    %215 = vector.extract_strided_slice %214 {offsets = [0, 0], sizes = [2, 128], strides = [1, 1]} : vector<2x384xf32> to vector<2x128xf32>
    %216 = vector.extract_strided_slice %214 {offsets = [0, 128], sizes = [2, 128], strides = [1, 1]} : vector<2x384xf32> to vector<2x128xf32>
    %217 = vector.extract_strided_slice %214 {offsets = [0, 256], sizes = [2, 128], strides = [1, 1]} : vector<2x384xf32> to vector<2x128xf32>
    %218 = vector.extract_strided_slice %208 {offsets = [0, 384], sizes = [2, 128], strides = [1, 1]} : vector<2x512xf32> to vector<2x128xf32>
    %219 = math.tanh %218 : vector<2x128xf32>
    %220 = arith.mulf %216, %181 : vector<2x128xf32>
    %221 = arith.mulf %215, %219 : vector<2x128xf32>
    %222 = arith.addf %220, %221 : vector<2x128xf32>
    %223 = math.tanh %222 : vector<2x128xf32>
    %224 = arith.mulf %217, %223 : vector<2x128xf32>
    %225 = vector.extract_strided_slice %15 {offsets = [0, 5, 0], sizes = [2, 1, 512], strides = [1, 1, 1]} : vector<2x8x512xf32> to vector<2x1x512xf32>
    %226 = vector.shape_cast %225 : vector<2x1x512xf32> to vector<2x512xf32>
    %227 = arith.truncf %204 : vector<2x128xf32> to vector<2x128xbf16>
    %cst_36 = arith.constant dense<0.000000e+00> : vector<2x512xf32>
    %228 = tpu.matmul %227, %0, %cst_36 {dimension_numbers = #tpu.dot_dimension_numbers<[1], [0], [0], [1], [0, 0, 1, 1], [], []>} : vector<2x128xbf16>, vector<128x512xbf16>, vector<2x512xf32> -> vector<2x512xf32>
    %229 = arith.addf %226, %228 : vector<2x512xf32>
    %230 = vector.extract_strided_slice %229 {offsets = [0, 0], sizes = [2, 384], strides = [1, 1]} : vector<2x512xf32> to vector<2x384xf32>
    %231 = arith.negf %230 : vector<2x384xf32>
    %232 = math.exp %231 : vector<2x384xf32>
    %cst_37 = arith.constant 1.000000e+00 : f32
    %233 = vector.broadcast %cst_37 : f32 to vector<2x384xf32>
    %234 = arith.addf %233, %232 : vector<2x384xf32>
    %235 = arith.divf %233, %234 : vector<2x384xf32>
    %236 = vector.extract_strided_slice %235 {offsets = [0, 0], sizes = [2, 128], strides = [1, 1]} : vector<2x384xf32> to vector<2x128xf32>
    %237 = vector.extract_strided_slice %235 {offsets = [0, 128], sizes = [2, 128], strides = [1, 1]} : vector<2x384xf32> to vector<2x128xf32>
    %238 = vector.extract_strided_slice %235 {offsets = [0, 256], sizes = [2, 128], strides = [1, 1]} : vector<2x384xf32> to vector<2x128xf32>
    %239 = vector.extract_strided_slice %229 {offsets = [0, 384], sizes = [2, 128], strides = [1, 1]} : vector<2x512xf32> to vector<2x128xf32>
    %240 = math.tanh %239 : vector<2x128xf32>
    %241 = arith.mulf %237, %202 : vector<2x128xf32>
    %242 = arith.mulf %236, %240 : vector<2x128xf32>
    %243 = arith.addf %241, %242 : vector<2x128xf32>
    %244 = math.tanh %243 : vector<2x128xf32>
    %245 = arith.mulf %238, %244 : vector<2x128xf32>
    %246 = tpu.concatenate %245, %224 in 1 : vector<2x128xf32>, vector<2x128xf32> -> vector<2x256xf32>
    %247 = arith.truncf %246 : vector<2x256xf32> to vector<2x256xbf16>
    %cst_38 = arith.constant dense<0.000000e+00> : vector<2x512xf32>
    %248 = tpu.matmul %247, %1, %cst_38 {dimension_numbers = #tpu.dot_dimension_numbers<[1], [0], [0], [1], [0, 0, 1, 1], [], []>} : vector<2x256xbf16>, vector<256x512xbf16>, vector<2x512xf32> -> vector<2x512xf32>
    %249 = arith.addf %248, %5 : vector<2x512xf32>
    %250 = vector.extract_strided_slice %249 {offsets = [0, 0], sizes = [2, 384], strides = [1, 1]} : vector<2x512xf32> to vector<2x384xf32>
    %251 = arith.negf %250 : vector<2x384xf32>
    %252 = math.exp %251 : vector<2x384xf32>
    %cst_39 = arith.constant 1.000000e+00 : f32
    %253 = vector.broadcast %cst_39 : f32 to vector<2x384xf32>
    %254 = arith.addf %253, %252 : vector<2x384xf32>
    %255 = arith.divf %253, %254 : vector<2x384xf32>
    %256 = vector.extract_strided_slice %255 {offsets = [0, 0], sizes = [2, 128], strides = [1, 1]} : vector<2x384xf32> to vector<2x128xf32>
    %257 = vector.extract_strided_slice %255 {offsets = [0, 128], sizes = [2, 128], strides = [1, 1]} : vector<2x384xf32> to vector<2x128xf32>
    %258 = vector.extract_strided_slice %255 {offsets = [0, 256], sizes = [2, 128], strides = [1, 1]} : vector<2x384xf32> to vector<2x128xf32>
    %259 = vector.extract_strided_slice %249 {offsets = [0, 384], sizes = [2, 128], strides = [1, 1]} : vector<2x512xf32> to vector<2x128xf32>
    %260 = math.tanh %259 : vector<2x128xf32>
    %261 = arith.mulf %257, %222 : vector<2x128xf32>
    %262 = arith.mulf %256, %260 : vector<2x128xf32>
    %263 = arith.addf %261, %262 : vector<2x128xf32>
    %264 = math.tanh %263 : vector<2x128xf32>
    %265 = arith.mulf %258, %264 : vector<2x128xf32>
    %266 = vector.extract_strided_slice %15 {offsets = [0, 6, 0], sizes = [2, 1, 512], strides = [1, 1, 1]} : vector<2x8x512xf32> to vector<2x1x512xf32>
    %267 = vector.shape_cast %266 : vector<2x1x512xf32> to vector<2x512xf32>
    %268 = arith.truncf %245 : vector<2x128xf32> to vector<2x128xbf16>
    %cst_40 = arith.constant dense<0.000000e+00> : vector<2x512xf32>
    %269 = tpu.matmul %268, %0, %cst_40 {dimension_numbers = #tpu.dot_dimension_numbers<[1], [0], [0], [1], [0, 0, 1, 1], [], []>} : vector<2x128xbf16>, vector<128x512xbf16>, vector<2x512xf32> -> vector<2x512xf32>
    %270 = arith.addf %267, %269 : vector<2x512xf32>
    %271 = vector.extract_strided_slice %270 {offsets = [0, 0], sizes = [2, 384], strides = [1, 1]} : vector<2x512xf32> to vector<2x384xf32>
    %272 = arith.negf %271 : vector<2x384xf32>
    %273 = math.exp %272 : vector<2x384xf32>
    %cst_41 = arith.constant 1.000000e+00 : f32
    %274 = vector.broadcast %cst_41 : f32 to vector<2x384xf32>
    %275 = arith.addf %274, %273 : vector<2x384xf32>
    %276 = arith.divf %274, %275 : vector<2x384xf32>
    %277 = vector.extract_strided_slice %276 {offsets = [0, 0], sizes = [2, 128], strides = [1, 1]} : vector<2x384xf32> to vector<2x128xf32>
    %278 = vector.extract_strided_slice %276 {offsets = [0, 128], sizes = [2, 128], strides = [1, 1]} : vector<2x384xf32> to vector<2x128xf32>
    %279 = vector.extract_strided_slice %276 {offsets = [0, 256], sizes = [2, 128], strides = [1, 1]} : vector<2x384xf32> to vector<2x128xf32>
    %280 = vector.extract_strided_slice %270 {offsets = [0, 384], sizes = [2, 128], strides = [1, 1]} : vector<2x512xf32> to vector<2x128xf32>
    %281 = math.tanh %280 : vector<2x128xf32>
    %282 = arith.mulf %278, %243 : vector<2x128xf32>
    %283 = arith.mulf %277, %281 : vector<2x128xf32>
    %284 = arith.addf %282, %283 : vector<2x128xf32>
    %285 = math.tanh %284 : vector<2x128xf32>
    %286 = arith.mulf %279, %285 : vector<2x128xf32>
    %287 = tpu.concatenate %286, %265 in 1 : vector<2x128xf32>, vector<2x128xf32> -> vector<2x256xf32>
    %288 = arith.truncf %287 : vector<2x256xf32> to vector<2x256xbf16>
    %cst_42 = arith.constant dense<0.000000e+00> : vector<2x512xf32>
    %289 = tpu.matmul %288, %1, %cst_42 {dimension_numbers = #tpu.dot_dimension_numbers<[1], [0], [0], [1], [0, 0, 1, 1], [], []>} : vector<2x256xbf16>, vector<256x512xbf16>, vector<2x512xf32> -> vector<2x512xf32>
    %290 = arith.addf %289, %5 : vector<2x512xf32>
    %291 = vector.extract_strided_slice %290 {offsets = [0, 0], sizes = [2, 384], strides = [1, 1]} : vector<2x512xf32> to vector<2x384xf32>
    %292 = arith.negf %291 : vector<2x384xf32>
    %293 = math.exp %292 : vector<2x384xf32>
    %cst_43 = arith.constant 1.000000e+00 : f32
    %294 = vector.broadcast %cst_43 : f32 to vector<2x384xf32>
    %295 = arith.addf %294, %293 : vector<2x384xf32>
    %296 = arith.divf %294, %295 : vector<2x384xf32>
    %297 = vector.extract_strided_slice %296 {offsets = [0, 0], sizes = [2, 128], strides = [1, 1]} : vector<2x384xf32> to vector<2x128xf32>
    %298 = vector.extract_strided_slice %296 {offsets = [0, 128], sizes = [2, 128], strides = [1, 1]} : vector<2x384xf32> to vector<2x128xf32>
    %299 = vector.extract_strided_slice %296 {offsets = [0, 256], sizes = [2, 128], strides = [1, 1]} : vector<2x384xf32> to vector<2x128xf32>
    %300 = vector.extract_strided_slice %290 {offsets = [0, 384], sizes = [2, 128], strides = [1, 1]} : vector<2x512xf32> to vector<2x128xf32>
    %301 = math.tanh %300 : vector<2x128xf32>
    %302 = arith.mulf %298, %263 : vector<2x128xf32>
    %303 = arith.mulf %297, %301 : vector<2x128xf32>
    %304 = arith.addf %302, %303 : vector<2x128xf32>
    %305 = math.tanh %304 : vector<2x128xf32>
    %306 = arith.mulf %299, %305 : vector<2x128xf32>
    %307 = vector.extract_strided_slice %15 {offsets = [0, 7, 0], sizes = [2, 1, 512], strides = [1, 1, 1]} : vector<2x8x512xf32> to vector<2x1x512xf32>
    %308 = vector.shape_cast %307 : vector<2x1x512xf32> to vector<2x512xf32>
    %309 = arith.truncf %286 : vector<2x128xf32> to vector<2x128xbf16>
    %cst_44 = arith.constant dense<0.000000e+00> : vector<2x512xf32>
    %310 = tpu.matmul %309, %0, %cst_44 {dimension_numbers = #tpu.dot_dimension_numbers<[1], [0], [0], [1], [0, 0, 1, 1], [], []>} : vector<2x128xbf16>, vector<128x512xbf16>, vector<2x512xf32> -> vector<2x512xf32>
    %311 = arith.addf %308, %310 : vector<2x512xf32>
    %312 = vector.extract_strided_slice %311 {offsets = [0, 0], sizes = [2, 384], strides = [1, 1]} : vector<2x512xf32> to vector<2x384xf32>
    %313 = arith.negf %312 : vector<2x384xf32>
    %314 = math.exp %313 : vector<2x384xf32>
    %cst_45 = arith.constant 1.000000e+00 : f32
    %315 = vector.broadcast %cst_45 : f32 to vector<2x384xf32>
    %316 = arith.addf %315, %314 : vector<2x384xf32>
    %317 = arith.divf %315, %316 : vector<2x384xf32>
    %318 = vector.extract_strided_slice %317 {offsets = [0, 0], sizes = [2, 128], strides = [1, 1]} : vector<2x384xf32> to vector<2x128xf32>
    %319 = vector.extract_strided_slice %317 {offsets = [0, 128], sizes = [2, 128], strides = [1, 1]} : vector<2x384xf32> to vector<2x128xf32>
    %320 = vector.extract_strided_slice %317 {offsets = [0, 256], sizes = [2, 128], strides = [1, 1]} : vector<2x384xf32> to vector<2x128xf32>
    %321 = vector.extract_strided_slice %311 {offsets = [0, 384], sizes = [2, 128], strides = [1, 1]} : vector<2x512xf32> to vector<2x128xf32>
    %322 = math.tanh %321 : vector<2x128xf32>
    %323 = arith.mulf %319, %284 : vector<2x128xf32>
    %324 = arith.mulf %318, %322 : vector<2x128xf32>
    %325 = arith.addf %323, %324 : vector<2x128xf32>
    %326 = math.tanh %325 : vector<2x128xf32>
    %327 = arith.mulf %320, %326 : vector<2x128xf32>
    %328 = tpu.concatenate %327, %306 in 1 : vector<2x128xf32>, vector<2x128xf32> -> vector<2x256xf32>
    %329 = arith.truncf %328 : vector<2x256xf32> to vector<2x256xbf16>
    %cst_46 = arith.constant dense<0.000000e+00> : vector<2x512xf32>
    %330 = tpu.matmul %329, %1, %cst_46 {dimension_numbers = #tpu.dot_dimension_numbers<[1], [0], [0], [1], [0, 0, 1, 1], [], []>} : vector<2x256xbf16>, vector<256x512xbf16>, vector<2x512xf32> -> vector<2x512xf32>
    %331 = arith.addf %330, %5 : vector<2x512xf32>
    %332 = vector.extract_strided_slice %331 {offsets = [0, 0], sizes = [2, 384], strides = [1, 1]} : vector<2x512xf32> to vector<2x384xf32>
    %333 = arith.negf %332 : vector<2x384xf32>
    %334 = math.exp %333 : vector<2x384xf32>
    %cst_47 = arith.constant 1.000000e+00 : f32
    %335 = vector.broadcast %cst_47 : f32 to vector<2x384xf32>
    %336 = arith.addf %335, %334 : vector<2x384xf32>
    %337 = arith.divf %335, %336 : vector<2x384xf32>
    %338 = vector.extract_strided_slice %337 {offsets = [0, 0], sizes = [2, 128], strides = [1, 1]} : vector<2x384xf32> to vector<2x128xf32>
    %339 = vector.extract_strided_slice %337 {offsets = [0, 128], sizes = [2, 128], strides = [1, 1]} : vector<2x384xf32> to vector<2x128xf32>
    %340 = vector.extract_strided_slice %337 {offsets = [0, 256], sizes = [2, 128], strides = [1, 1]} : vector<2x384xf32> to vector<2x128xf32>
    %341 = vector.extract_strided_slice %331 {offsets = [0, 384], sizes = [2, 128], strides = [1, 1]} : vector<2x512xf32> to vector<2x128xf32>
    %342 = math.tanh %341 : vector<2x128xf32>
    %343 = arith.mulf %339, %304 : vector<2x128xf32>
    %344 = arith.mulf %338, %342 : vector<2x128xf32>
    %345 = arith.addf %343, %344 : vector<2x128xf32>
    %346 = math.tanh %345 : vector<2x128xf32>
    %347 = arith.mulf %340, %346 : vector<2x128xf32>
    %348 = vector.shape_cast %60 : vector<2x128xf32> to vector<2x1x128xf32>
    %349 = vector.shape_cast %101 : vector<2x128xf32> to vector<2x1x128xf32>
    %350 = vector.shape_cast %142 : vector<2x128xf32> to vector<2x1x128xf32>
    %351 = vector.shape_cast %183 : vector<2x128xf32> to vector<2x1x128xf32>
    %352 = vector.shape_cast %224 : vector<2x128xf32> to vector<2x1x128xf32>
    %353 = vector.shape_cast %265 : vector<2x128xf32> to vector<2x1x128xf32>
    %354 = vector.shape_cast %306 : vector<2x128xf32> to vector<2x1x128xf32>
    %355 = vector.shape_cast %347 : vector<2x128xf32> to vector<2x1x128xf32>
    %356 = tpu.concatenate %348, %349, %350, %351, %352, %353, %354, %355 in 1 : vector<2x1x128xf32>, vector<2x1x128xf32>, vector<2x1x128xf32>, vector<2x1x128xf32>, vector<2x1x128xf32>, vector<2x1x128xf32>, vector<2x1x128xf32>, vector<2x1x128xf32> -> vector<2x8x128xf32>
    %357 = vector.shape_cast %356 : vector<2x8x128xf32> to vector<16x128xf32>
    %358 = arith.truncf %357 : vector<16x128xf32> to vector<16x128xbf16>
    %c0_48 = arith.constant 0 : index
    %c0_49 = arith.constant 0 : index
    %359 = vector.load %arg6[%c0_48, %c0_49] : memref<128x128xbf16, #tpu.memory_space<vmem>>, vector<128x128xbf16>
    %cst_50 = arith.constant dense<0.000000e+00> : vector<16x128xf32>
    %360 = tpu.matmul %358, %359, %cst_50 {dimension_numbers = #tpu.dot_dimension_numbers<[1], [0], [0], [1], [0, 0, 1, 1], [], []>} : vector<16x128xbf16>, vector<128x128xbf16>, vector<16x128xf32> -> vector<16x128xf32>
    %c0_51 = arith.constant 0 : index
    %c0_52 = arith.constant 0 : index
    %361 = vector.load %arg7[%c0_51, %c0_52] : memref<1x128xbf16, #tpu.memory_space<vmem>>, vector<1x128xbf16>
    %362 = arith.extf %361 : vector<1x128xbf16> to vector<1x128xf32>
    %363 = vector.broadcast %362 : vector<1x128xf32> to vector<16x128xf32>
    %364 = arith.addf %360, %363 : vector<16x128xf32>
    %365 = vector.shape_cast %364 : vector<16x128xf32> to vector<2x8x128xf32>
    %c0_53 = arith.constant 0 : index
    %c0_54 = arith.constant 0 : index
    %c0_55 = arith.constant 0 : index
    %366 = vector.load %arg8[%c0_53, %c0_54, %c0_55] : memref<2x8x128xf32, #tpu.memory_space<vmem>>, vector<2x8x128xf32>
    tpu.vector_store %arg8[%c0_53, %c0_54, %c0_55], %365 {strides = array<i32>} : memref<2x8x128xf32, #tpu.memory_space<vmem>>, vector<2x8x128xf32>,
    return
  }
}

</mosaic_0001>

<bundles_post_ra>
// kernel: tpu_custom_call.1
= control target key start
LH: loop header
LB: loop body
LE: loop exit
PB: predicated region body
PF: predicated region fallthrough
CT: control target
= control target key end

     0   :  { %13 = vsyncpa [#allocation3], 0  ;;  %s7237_s0 = inlined_call_operand.hbm [shape: f32[2,8,288], index: 0, kind: input, shape index: {}]   ;;  %s7238_s1 = inlined_call_operand.hbm [shape: bf16[288,512], index: 1, kind: input, shape index: {}]   ;;  %s7239_s2 = inlined_call_operand.hbm [shape: bf16[128,512], index: 2, kind: input, shape index: {}]   ;;  %s7240_s3 = inlined_call_operand.vmem [shape: bf16[1,512], index: 3, kind: input, shape index: {}]   ;;  %s7241_s4 = inlined_call_operand.hbm [shape: bf16[256,512], index: 4, kind: input, shape index: {}]   ;;  %s7242_s5 = inlined_call_operand.vmem [shape: bf16[1,512], index: 5, kind: input, shape index: {}]   ;;  %s7243_s6 = inlined_call_operand.hbm [shape: bf16[128,128], index: 6, kind: input, shape index: {}]   ;;  %s7244_s7 = inlined_call_operand.vmem [shape: bf16[1,128], index: 7, kind: input, shape index: {}]   ;;  %s7245_s8 = inlined_call_operand.hbm [shape: f32[2,8,128], index: 8, kind: output, shape index: {}]  }
   0x1   :  { %14 = vsyncpa [#allocation6], 0 }
   0x2   :  { %15 = vsyncpa [#allocation9], 0 }
   0x3   :  { %16 = vsyncpa [#allocation4], 0  ;;  %s5428_s27 = smov [#allocation5]  }
   0x4   :  { %s34_s28 = sshll.u32 %s5428_s27, 4  ;;  %s35_s28 = int_to_ptr.vmem [resolvable:$true] %s34_s28 }
   0x5   :  { %s5308_s29 = scalar_lea.vmem %s35_s28, 9216  ;;  %p5313_p1 = scmp.lt.s32.totalorder %s35_s28, %s35_s28 }
   0x6   :  { %p5309_p0 = scmp.ne.s32.totalorder %s35_s28, %s5308_s29  ;;  %p5314_p2 = scmp.lt.s32.totalorder %s5308_s29, %s5308_s29 }
   0x8   :  { %p5315_p3 = por %p5314_p2, %p5313_p1 }
   0xa   :  { %p5316_p4 = pnand %p5315_p3, %p5309_p0 }
   0xc   :  { %5319 = shalt.err (!%p5316_p4)
}
   0xd   :  { %s5429_s30 = smov 256   ;;  %s5430_s9 = smov 16  }
   0xe   :  { %40 = dma.hbm_to_vmem [thread:$0]  %s7238_s1, 9216, %s35_s28, [#allocation6], %s5429_s30, %s5429_s30, %s5430_s9  }
   0xf   :  { %s5431_s12 = smov [#allocation8]   ;;  %s5432_s14 = smov [#allocation2]  }
  0x10   :  { %s60_s13 = sshll.u32 %s5431_s12, 4  ;;  %s22_s15 = sshll.u32 %s5432_s14, 4  ;;  %s61_s13 = int_to_ptr.vmem [resolvable:$true] %s60_s13  ;;  %s23_s15 = int_to_ptr.vmem [resolvable:$true] %s22_s15 }
  0x11   :  { %s5328_s16 = scalar_lea.vmem %s61_s13, 8192  ;;  %p5333_p6 = scmp.lt.s32.totalorder %s61_s13, %s61_s13 }
  0x12   :  { %p5329_p5 = scmp.ne.s32.totalorder %s61_s13, %s5328_s16  ;;  %p5334_p7 = scmp.lt.s32.totalorder %s5328_s16, %s5328_s16 }
  0x14   :  { %p5335_p8 = por %p5334_p7, %p5333_p6 }
  0x16   :  { %p5336_p9 = pnand %p5335_p8, %p5329_p5 }
  0x18   :  { %5339 = shalt.err (!%p5336_p9)
}
  0x19   :  { %66 = dma.hbm_to_vmem [thread:$0]  %s7241_s4, 8192, %s61_s13, [#allocation9], %s5429_s30, %s5429_s30, %s5430_s9  }
  0x1a   :  { %s5348_s1 = scalar_lea.vmem %s23_s15, 768  ;;  %p5353_p11 = scmp.lt.s32.totalorder %s23_s15, %s23_s15 }
  0x1b   :  { %p5349_p10 = scmp.ne.s32.totalorder %s23_s15, %s5348_s1  ;;  %p5354_p12 = scmp.lt.s32.totalorder %s5348_s1, %s5348_s1 }
  0x1d   :  { %p5355_p13 = por %p5354_p12, %p5353_p11 }
  0x1f   :  { %p5356_p0 = pnand %p5355_p13, %p5349_p10 }
  0x21   :  { %5359 = shalt.err (!%p5356_p0)
}
  0x22   :  { %s5433_s19 = smov 384   ;;  %s5434_s20 = smov 24  }
  0x23   :  { %28 = dma.hbm_to_vmem [thread:$0]  %s7237_s0, 768, %s23_s15, [#allocation3], %s5433_s19, %s5433_s19, %s5434_s20  }
  0x24   :  { %s5435_s23 = smov [#allocation7]   ;;  %s5436_s25 = smov [#allocation10]  }
  0x25   :  { %s46_s24 = sshll.u32 %s5435_s23, 4  ;;  %s74_s26 = sshll.u32 %s5436_s25, 4  ;;  %s47_s24 = int_to_ptr.vmem [resolvable:$true] %s46_s24  ;;  %s75_s26 = int_to_ptr.vmem [resolvable:$true] %s74_s26 }
  0x26   :  { %s5368_s4 = scalar_lea.vmem %s47_s24, 4096  ;;  %p5373_p2 = scmp.lt.s32.totalorder %s47_s24, %s47_s24 }
  0x27   :  { %p5369_p1 = scmp.ne.s32.totalorder %s47_s24, %s5368_s4  ;;  %p5374_p3 = scmp.lt.s32.totalorder %s5368_s4, %s5368_s4 }
  0x29   :  { %p5375_p4 = por %p5374_p3, %p5373_p2 }
  0x2b   :  { %p5376_p5 = pnand %p5375_p4, %p5369_p1 }
  0x2d   :  { %5379 = shalt.err (!%p5376_p5)
}
  0x2e   :  { %52 = dma.hbm_to_vmem [thread:$0]  %s7239_s2, 4096, %s47_s24, [#allocation6], %s5429_s30, %s5429_s30, %s5430_s9  }
  0x2f   :  { %s5388_s0 = scalar_lea.vmem %s75_s26, 1024  ;;  %p5393_p7 = scmp.lt.s32.totalorder %s75_s26, %s75_s26 }
  0x30   :  { %p5389_p6 = scmp.ne.s32.totalorder %s75_s26, %s5388_s0  ;;  %p5394_p8 = scmp.lt.s32.totalorder %s5388_s0, %s5388_s0 }
  0x32   :  { %p5395_p9 = por %p5394_p8, %p5393_p7 }
  0x34   :  { %p5396_p10 = pnand %p5395_p9, %p5389_p6 }
  0x36   :  { %5399 = shalt.err (!%p5396_p10)
}
  0x37   :  { %s5437_s29 = smov 64   ;;  %s5438_s10 = smov 4  }
  0x38   :  { %80 = dma.hbm_to_vmem [thread:$0]  %s7243_s6, 1024, %s75_s26, [#allocation9], %s5437_s29, %s5437_s29, %s5438_s10  }
  0x39   :  { %5420 = dma.done.wait [#allocation3], 768  }
  0x3a   :  { %5421 = vsyncadd [#allocation3], 4294966528 }
  0x3b   :  { %5422 = dma.done.wait [#allocation6], 13312  }
  0x3c   :  { %5423 = vsyncadd [#allocation6], 4294953984 }
  0x3d   :  { %5424 = dma.done.wait [#allocation9], 9216  }
  0x3e   :  { %5425 = vsyncadd [#allocation9], 4294958080  ;;  %v7246_v0 = vmov 0   ;;  %v4464_v1 = vld [vmem:[#allocation5 + $0xe4] ss:$16 sps:$4 sm:$0xff]   ;;  %v239_v11 = vld [vmem:[#allocation2 + $0x28] sm:$0xff] }
  0x3f   :  { %793 = vmatprep.mubr.bf16.mxu1 %v7246_v0  ;;  %v4466_v2 = vld [vmem:[#allocation5 + $0x224] ss:$16 sps:$4 sm:$0xff]   ;;  %718 = vmatprep.subr.bf16.mxu0 %v4464_v1  ;;  %v4468_v3 = vld [vmem:[#allocation5 + $0xe0] ss:$16 sps:$4 sm:$0xff]   ;;  %v4478_v13 = vld [vmem:[#allocation5 + $0xe8] ss:$16 sps:$4 sm:$0xff]  }
  0x40   :  { %v4469_v4 = vld [vmem:[#allocation5 + $0x220] ss:$16 sps:$4 sm:$0xff]   ;;  %773 = vmatprep.subr.bf16.mxu1 %v4466_v2  ;;  %v4470_v5 = vld [vmem:[#allocation5 + $0xc4] ss:$16 sps:$4 sm:$0xff]   ;;  %719 = vmatpush1.bf16.msra.mxu0 %v4468_v3  ;;  %vm714_vm0 = vcmask 261120   ;;  %v235_v50 = vld [vmem:[#allocation2 + $0x8] sm:$0xff] }
  0x41   :  { %774 = vmatpush1.bf16.msra.mxu1 %v4469_v4  ;;  %v4472_v6 = vld [vmem:[#allocation5 + $0x204] ss:$16 sps:$4 sm:$0xff]   ;;  %v4474_v7 = vld [vmem:[#allocation5 + $0xc0] ss:$16 sps:$4 sm:$0xff]   ;;  %720 = vmatprep.subr.bf16.mxu0 %v4470_v5  ;;  %v4480_v14 = vld [vmem:[#allocation5 + $0xec] ss:$16 sps:$4 sm:$0xff]  }
  0x42   :  { %v4475_v8 = vld [vmem:[#allocation5 + $0x200] ss:$16 sps:$4 sm:$0xff]   ;;  %775 = vmatprep.subr.bf16.mxu1 %v4472_v6  ;;  %v4476_v9 = vld [vmem:[#allocation5 + $0xa4] ss:$16 sps:$4 sm:$0xff]   ;;  %v4486_v17 = vld [vmem:[#allocation5 + $0xcc] ss:$16 sps:$4 sm:$0xff]  }
  0x43   :  { %v236_v10 = vld [vmem:[#allocation2 + $0x10] sm:$0xff]  ;;  %v4484_v18 = vld [vmem:[#allocation5 + $0xc8] ss:$16 sps:$4 sm:$0xff]   ;;  %v4492_v21 = vld [vmem:[#allocation5 + $0xac] ss:$16 sps:$4 sm:$0xff]   ;;  %vm1207_vm1 = vcmask 1041409  }
  0x44   :  { %v5517_v12 = vpack.c.bf16 %v239_v11, %v236_v10  ;;  %721 = vmatpush1.bf16.msra.mxu0 %v4474_v7  ;;  %v4481_v15 = vld [vmem:[#allocation5 + $0xa0] ss:$16 sps:$4 sm:$0xff]   ;;  %v4482_v16 = vld [vmem:[#allocation5 + $0x84] ss:$16 sps:$4 sm:$0xff]   ;;  %v4490_v22 = vld [vmem:[#allocation5 + $0xa8] ss:$16 sps:$4 sm:$0xff]  }
  0x45   :  { %776 = vmatpush1.bf16.msra.mxu1 %v4475_v8  ;;  %722 = vmatprep.subr.bf16.mxu0 %v4476_v9  ;;  %v4487_v19 = vld [vmem:[#allocation5 + $0x80] ss:$16 sps:$4 sm:$0xff]   ;;  %v4488_v20 = vld [vmem:[#allocation5 + $0x64] ss:$16 sps:$4 sm:$0xff]   ;;  %v4498_v25 = vld [vmem:[#allocation5 + $0x8c] ss:$16 sps:$4 sm:$0xff]  }
  0x46   :  { %804 = vmatprep.subr.bf16.mxu1 %v4480_v14  ;;  %v4493_v23 = vld [vmem:[#allocation5 + $0x60] ss:$16 sps:$4 sm:$0xff]   ;;  %v4494_v24 = vld [vmem:[#allocation5 + $0x44] ss:$16 sps:$4 sm:$0xff]   ;;  %v4496_v26 = vld [vmem:[#allocation5 + $0x88] ss:$16 sps:$4 sm:$0xff]  }
  0x47   :  { %v4499_v27 = vld [vmem:[#allocation5 + $0x40] ss:$16 sps:$4 sm:$0xff]   ;;  %v4500_v28 = vld [vmem:[#allocation5 + $0x24] ss:$16 sps:$4 sm:$0xff]   ;;  %v4504_v29 = vld [vmem:[#allocation5 + $0x6c] ss:$16 sps:$4 sm:$0xff]  }
  0x48   :  { %4238 = vmatmul.mubr.msk.bf16.vlgmr.msra.gmra.mxu1 %vm714_vm0, %v5517_v12  ;;  %723 = vmatpush1.bf16.msra.mxu0 %v4481_v15  ;;  %v4502_v30 = vld [vmem:[#allocation5 + $0x68] ss:$16 sps:$4 sm:$0xff]   ;;  %v4505_v31 = vld [vmem:[#allocation5 + $0x20] ss:$16 sps:$4 sm:$0xff]   ;;  %v4506_v32 = vld [vmem:[#allocation5 + $0x4] ss:$16 sps:$4 sm:$0xff]  }
  0x49   :  { %805 = vmatpush1.bf16.msra.mxu1 %v4478_v13  ;;  %724 = vmatprep.subr.bf16.mxu0 %v4482_v16  ;;  %v4510_v33 = vld [vmem:[#allocation5 + $0x4c] ss:$16 sps:$4 sm:$0xff]   ;;  %v4508_v34 = vld [vmem:[#allocation5 + $0x48] ss:$16 sps:$4 sm:$0xff]   ;;  %v4511_v35 = vld [vmem:[#allocation5] ss:$16 sps:$4 sm:$0xff]  }
  0x4a   :  { %806 = vmatprep.subr.bf16.mxu1 %v4486_v17  ;;  %v4512_v36 = vld [vmem:[#allocation5 + $0x1e4] ss:$16 sps:$4 sm:$0xff]   ;;  %v4516_v37 = vld [vmem:[#allocation5 + $0x2c] ss:$16 sps:$4 sm:$0xff]   ;;  %v4514_v38 = vld [vmem:[#allocation5 + $0x28] ss:$16 sps:$4 sm:$0xff]  }
  0x4b   :  { %v4517_v39 = vld [vmem:[#allocation5 + $0x1e0] ss:$16 sps:$4 sm:$0xff]   ;;  %v4518_v40 = vld [vmem:[#allocation5 + $0x1c4] ss:$16 sps:$4 sm:$0xff]   ;;  %v4522_v41 = vld [vmem:[#allocation5 + $0xc] ss:$16 sps:$4 sm:$0xff]  }
  0x4c   :  { %725 = vmatpush1.bf16.msra.mxu0 %v4487_v19  ;;  %v4520_v42 = vld [vmem:[#allocation5 + $0x8] ss:$16 sps:$4 sm:$0xff]   ;;  %v4523_v43 = vld [vmem:[#allocation5 + $0x1c0] ss:$16 sps:$4 sm:$0xff]   ;;  %v4524_v44 = vld [vmem:[#allocation5 + $0x1a4] ss:$16 sps:$4 sm:$0xff]  }
  0x4d   :  { %807 = vmatpush1.bf16.msra.mxu1 %v4484_v18  ;;  %726 = vmatprep.subr.bf16.mxu0 %v4488_v20  ;;  %v4528_v45 = vld [vmem:[#allocation5 + $0x1ec] ss:$16 sps:$4 sm:$0xff]   ;;  %v4526_v46 = vld [vmem:[#allocation5 + $0x1e8] ss:$16 sps:$4 sm:$0xff]   ;;  %v4529_v47 = vld [vmem:[#allocation5 + $0x1a0] ss:$16 sps:$4 sm:$0xff]  }
  0x4e   :  { %808 = vmatprep.subr.bf16.mxu1 %v4492_v21  ;;  %v4530_v48 = vld [vmem:[#allocation5 + $0x184] ss:$16 sps:$4 sm:$0xff]   ;;  %v4534_v49 = vld [vmem:[#allocation5 + $0x1cc] ss:$16 sps:$4 sm:$0xff]   ;;  %v4532_v52 = vld [vmem:[#allocation5 + $0x1c8] ss:$16 sps:$4 sm:$0xff]  }
  0x4f   :  { %v238_v51 = vld [vmem:[#allocation2 + $0x20] sm:$0xff]  ;;  %v4540_v56 = vld [vmem:[#allocation5 + $0x1ac] ss:$16 sps:$4 sm:$0xff]   ;;  %v4538_v57 = vld [vmem:[#allocation5 + $0x1a8] ss:$16 sps:$4 sm:$0xff]   ;;  %vm1811_vm2 = vcmask 1042434  }
  0x50   :  { %727 = vmatpush1.bf16.msra.mxu0 %v4493_v23  ;;  %v4535_v53 = vld [vmem:[#allocation5 + $0x180] ss:$16 sps:$4 sm:$0xff]   ;;  %v241_v54 = vpack.c.bf16 %v238_v51, %v235_v50  ;;  %v4536_v55 = vld [vmem:[#allocation5 + $0x164] ss:$16 sps:$4 sm:$0xff]   ;;  %v4546_v60 = vld [vmem:[#allocation5 + $0x18c] ss:$16 sps:$4 sm:$0xff]  }
  0x51   :  { %809 = vmatpush1.bf16.msra.mxu1 %v4490_v22  ;;  %728 = vmatprep.subr.bf16.mxu0 %v4494_v24  ;;  %v4541_v58 = vld [vmem:[#allocation5 + $0x160] ss:$16 sps:$4 sm:$0xff]   ;;  %v4542_v59 = vld [vmem:[#allocation5 + $0x144] ss:$16 sps:$4 sm:$0xff]   ;;  %v4544_v61 = vld [vmem:[#allocation5 + $0x188] ss:$16 sps:$4 sm:$0xff]  }
  0x52   :  { %810 = vmatprep.subr.bf16.mxu1 %v4498_v25  ;;  %750 = vmatprep.mubr.bf16.mxu0 %v241_v54  ;;  %v4547_v62 = vld [vmem:[#allocation5 + $0x140] ss:$16 sps:$4 sm:$0xff]   ;;  %v4548_v63 = vld [vmem:[#allocation5 + $0x124] ss:$16 sps:$4 sm:$0xff]   ;;  %v4552_v1 = vld [vmem:[#allocation5 + $0x16c] ss:$16 sps:$4 sm:$0xff]  }
  0x53   :  { %836 = vmatprep.mubr.bf16.mxu1 %v241_v54  ;;  %v4550_v2 = vld [vmem:[#allocation5 + $0x168] ss:$16 sps:$4 sm:$0xff]   ;;  %v4553_v3 = vld [vmem:[#allocation5 + $0x120] ss:$16 sps:$4 sm:$0xff]   ;;  %v4554_v4 = vld [vmem:[#allocation5 + $0x104] ss:$16 sps:$4 sm:$0xff]  }
  0x54   :  { %729 = vmatpush1.bf16.msra.mxu0 %v4499_v27  ;;  %v4558_v5 = vld [vmem:[#allocation5 + $0x14c] ss:$16 sps:$4 sm:$0xff]   ;;  %v4556_v6 = vld [vmem:[#allocation5 + $0x148] ss:$16 sps:$4 sm:$0xff]   ;;  %v4559_v7 = vld [vmem:[#allocation5 + $0x100] ss:$16 sps:$4 sm:$0xff]  }
  0x55   :  { %811 = vmatpush1.bf16.msra.mxu1 %v4496_v26  ;;  %730 = vmatprep.subr.bf16.mxu0 %v4500_v28  ;;  %v234_v8 = vld [vmem:[#allocation2] sm:$0xff]  ;;  %v237_v9 = vld [vmem:[#allocation2 + $0x18] sm:$0xff]  ;;  %vm4012_vm3 = vcmask 1040384   ;;  %vm2118_vm4 = vcmask 1043459   ;;  %vm4015_vm5 = vcmask 1041408   ;;  %vm2416_vm6 = vcmask 1044484  }
  0x56   :  { %812 = vmatprep.subr.bf16.mxu1 %v4504_v29  ;;  %v4562_v10 = vld [vmem:[#allocation5 + $0x12c] ss:$16 sps:$4 sm:$0xff]   ;;  %v5521_v11 = vld [vmem:[#allocation7 + $0xe4] ss:$16 sps:$4 sm:$0xff]   ;;  %v240_v13 = vpack.c.bf16 %v237_v9, %v234_v8  ;;  %v4560_v14 = vld [vmem:[#allocation5 + $0x128] ss:$16 sps:$4 sm:$0xff]  }
  0x57   :  { %v5523_v15 = vld [vmem:[#allocation7 + $0xe0] ss:$16 sps:$4 sm:$0xff]   ;;  %v4568_v16 = vld [vmem:[#allocation5 + $0x10c] ss:$16 sps:$4 sm:$0xff]   ;;  %v5526_v17 = vld [vmem:[#allocation7 + $0xc4] ss:$16 sps:$4 sm:$0xff]  }
  0x58   :  { %731 = vmatpush1.bf16.msra.mxu0 %v4505_v31  ;;  %v4566_v18 = vld [vmem:[#allocation5 + $0x108] ss:$16 sps:$4 sm:$0xff]   ;;  %v5529_v19 = vld [vmem:[#allocation7 + $0xc0] ss:$16 sps:$4 sm:$0xff]   ;;  %v4574_v20 = vld [vmem:[#allocation5 + $0x22c] ss:$16 sps:$4 sm:$0xff]  }
  0x59   :  { %813 = vmatpush1.bf16.msra.mxu1 %v4502_v30  ;;  %732 = vmatprep.subr.bf16.mxu0 %v4506_v32  ;;  %v5532_v21 = vld [vmem:[#allocation7 + $0xa4] ss:$16 sps:$4 sm:$0xff]   ;;  %v4572_v22 = vld [vmem:[#allocation5 + $0x228] ss:$16 sps:$4 sm:$0xff]   ;;  %v5534_v23 = vld [vmem:[#allocation7 + $0xa0] ss:$16 sps:$4 sm:$0xff]  }
  0x5a   :  { %814 = vmatprep.subr.bf16.mxu1 %v4510_v33  ;;  %v4580_v24 = vld [vmem:[#allocation5 + $0x20c] ss:$16 sps:$4 sm:$0xff]   ;;  %v5537_v25 = vld [vmem:[#allocation7 + $0x84] ss:$16 sps:$4 sm:$0xff]   ;;  %v4578_v26 = vld [vmem:[#allocation5 + $0x208] ss:$16 sps:$4 sm:$0xff]  }
  0x5b   :  { %v5541_v27 = vld [vmem:[#allocation7 + $0x80] ss:$16 sps:$4 sm:$0xff]   ;;  %v5543_v28 = vld [vmem:[#allocation7 + $0x64] ss:$16 sps:$4 sm:$0xff]   ;;  %v5545_v29 = vld [vmem:[#allocation7 + $0xec] ss:$16 sps:$4 sm:$0xff]  }
  0x5c   :  { %733 = vmatpush1.bf16.msra.mxu0 %v4511_v35  ;;  %7627 = vst [vmem:[#allocation16_spill] sm:$0xff] %v5545_v29  ;;  %v5550_v30 = vld [vmem:[#allocation7 + $0x60] ss:$16 sps:$4 sm:$0xff]   ;;  %v5552_v31 = vld [vmem:[#allocation7 + $0xe8] ss:$16 sps:$4 sm:$0xff]   ;;  %vm4018_vm7 = vcmask 1042432  }
  0x5d   :  { %815 = vmatpush1.bf16.msra.mxu1 %v4508_v34  ;;  %734 = vmatprep.subr.bf16.mxu0 %v4512_v36  ;;  %v5554_v32 = vld [vmem:[#allocation7 + $0x44] ss:$16 sps:$4 sm:$0xff]   ;;  %v5559_v33 = vld [vmem:[#allocation7 + $0xcc] ss:$16 sps:$4 sm:$0xff]   ;;  %v5561_v34 = vld [vmem:[#allocation7 + $0x40] ss:$16 sps:$4 sm:$0xff]  }
  0x5e   :  { %816 = vmatprep.subr.bf16.mxu1 %v4516_v37  ;;  %v5563_v35 = vld [vmem:[#allocation7 + $0xc8] ss:$16 sps:$4 sm:$0xff]   ;;  %v5567_v36 = vld [vmem:[#allocation7 + $0x24] ss:$16 sps:$4 sm:$0xff]   ;;  %v5569_v37 = vld [vmem:[#allocation7 + $0xac] ss:$16 sps:$4 sm:$0xff]  }
  0x5f   :  { %v5619_v50 = vld [vmem:[#allocation7 + $0x8] ss:$16 sps:$4 sm:$0xff]   ;;  %v5624_v51 = vld [vmem:[#allocation8 + $0xe4] ss:$16 sps:$4 sm:$0xff]   ;;  %v5686_v9 = vld [vmem:[#allocation8 + $0x4c] ss:$16 sps:$4 sm:$0xff]  }
  0x60   :  { %735 = vmatpush2.bf16.msra.mxu0 %v4517_v39  ;;  %v5577_v39 = vld [vmem:[#allocation7 + $0xa8] ss:$16 sps:$4 sm:$0xff]   ;;  %v5684_v8 = vld [vmem:[#allocation8 + $0x44] ss:$16 sps:$4 sm:$0xff]   ;;  %7645 = vst [vmem:[#allocation34_spill] sm:$0xff] %v5686_v9  ;;  %vm2726_vm8 = vcmask 1045509  }
  0x61   :  { %817 = vmatpush1.bf16.msra.mxu1 %v4514_v38  ;;  %736 = vmatprep.subr.bf16.mxu0 %v4518_v40  ;;  %v5575_v38 = vld [vmem:[#allocation7 + $0x20] ss:$16 sps:$4 sm:$0xff]   ;;  %v5580_v40 = vld [vmem:[#allocation7 + $0x4] ss:$16 sps:$4 sm:$0xff]   ;;  %v5632_v54 = vld [vmem:[#allocation8 + $0xe8] ss:$16 sps:$4 sm:$0xff]  }
  0x62   :  { %818 = vmatprep.subr.bf16.mxu1 %v4522_v41  ;;  %v5588_v41 = vld [vmem:[#allocation7] ss:$16 sps:$4 sm:$0xff]   ;;  %7644 = vst [vmem:[#allocation33_spill] sm:$0xff] %v5684_v8  ;;  %vm4021_vm9 = vcmask 1043456   ;;  %vm3024_vm10 = vcmask 1046534   ;;  %vm4024_vm11 = vcmask 1044480  }
  0x63   :  { %vm3334_vm12 = vcmask 1047559   ;;  %vm4027_vm13 = vcmask 1045504   ;;  %vm5443_vm14 = vmmov 0   ;;  %vm4030_vm15 = vcmask 1046528   ;;  %s5444_s13 = smov [#allocation11]  }
  0x64   :  { %737 = vmatpush2.bf16.msra.mxu0 %v4523_v43  ;;  %v5592_v43 = vld [vmem:[#allocation7 + $0x6c] ss:$16 sps:$4 sm:$0xff]   ;;  %s4152_s14 = sshll.u32 %s5444_s13, 4  ;;  %s4153_s14 = int_to_ptr.vmem [resolvable:$true] %s4152_s14 }
  0x65   :  { %819 = vmatpush1.bf16.msra.mxu1 %v4520_v42  ;;  %738 = vmatprep.subr.bf16.mxu0 %v4524_v44  ;;  %v5590_v42 = vld [vmem:[#allocation7 + $0x88] ss:$16 sps:$4 sm:$0xff]   ;;  %s5400_s15 = scalar_lea.vmem %s4153_s14, 256  ;;  %p5405_p12 = scmp.lt.s32.totalorder %s4153_s14, %s4153_s14 }
  0x66   :  { %820 = vmatprep.subr.bf16.mxu1 %v4528_v45  ;;  %v5598_v44 = vld [vmem:[#allocation7 + $0x68] ss:$16 sps:$4 sm:$0xff]   ;;  %v5600_v45 = vld [vmem:[#allocation7 + $0x4c] ss:$16 sps:$4 sm:$0xff]   ;;  %p5401_p11 = scmp.ne.s32.totalorder %s4153_s14, %s5400_s15  ;;  %p5406_p13 = scmp.lt.s32.totalorder %s5400_s15, %s5400_s15 }
  0x68   :  { %739 = vmatpush2.bf16.msra.mxu0 %v4529_v47  ;;  %v5610_v47 = vld [vmem:[#allocation7 + $0x2c] ss:$16 sps:$4 sm:$0xff]   ;;  %p5407_p0 = por %p5406_p13, %p5405_p12 }
  0x69   :  { %821 = vmatpush2.bf16.msra.mxu1 %v4526_v46  ;;  %740 = vmatprep.subr.bf16.mxu0 %v4530_v48  ;;  %v5607_v46 = vld [vmem:[#allocation7 + $0x48] ss:$16 sps:$4 sm:$0xff]  }
  0x6a   :  { %822 = vmatprep.subr.bf16.mxu1 %v4534_v49  ;;  %v5613_v48 = vld [vmem:[#allocation7 + $0x28] ss:$16 sps:$4 sm:$0xff]   ;;  %v5616_v49 = vld [vmem:[#allocation7 + $0xc] ss:$16 sps:$4 sm:$0xff]   ;;  %p5408_p1 = pnand %p5407_p0, %p5401_p11 }
  0x6c   :  { %741 = vmatpush2.bf16.msra.mxu0 %v4535_v53  ;;  %v5630_v53 = vld [vmem:[#allocation8 + $0xe0] ss:$16 sps:$4 sm:$0xff]  }
  0x6d   :  { %823 = vmatpush2.bf16.msra.mxu1 %v4532_v52  ;;  %742 = vmatprep.subr.bf16.mxu0 %v4536_v55  ;;  %v5626_v52 = vld [vmem:[#allocation8 + $0xec] ss:$16 sps:$4 sm:$0xff]   ;;  %v5636_v55 = vld [vmem:[#allocation8 + $0xc4] ss:$16 sps:$4 sm:$0xff]  }
  0x6e   :  { %824 = vmatprep.subr.bf16.mxu1 %v4540_v56  ;;  %7628 = vst [vmem:[#allocation17_spill] sm:$0xff] %v5636_v55  ;;  %v5638_v56 = vld [vmem:[#allocation8 + $0xcc] ss:$16 sps:$4 sm:$0xff]  }
  0x6f   :  { %7629 = vst [vmem:[#allocation18_spill] sm:$0xff] %v5638_v56 }
  0x70   :  { %743 = vmatpush2.bf16.msra.mxu0 %v4541_v58  ;;  %v5642_v58 = vld [vmem:[#allocation8 + $0xc8] ss:$16 sps:$4 sm:$0xff]  }
  0x71   :  { %825 = vmatpush2.bf16.msra.mxu1 %v4538_v57  ;;  %744 = vmatprep.subr.bf16.mxu0 %v4542_v59  ;;  %v5640_v57 = vld [vmem:[#allocation8 + $0xc0] ss:$16 sps:$4 sm:$0xff]   ;;  %7631 = vst [vmem:[#allocation20_spill] sm:$0xff] %v5642_v58  ;;  %v5648_v59 = vld [vmem:[#allocation8 + $0xa4] ss:$16 sps:$4 sm:$0xff]  }
  0x72   :  { %826 = vmatprep.subr.bf16.mxu1 %v4546_v60  ;;  %7630 = vst [vmem:[#allocation19_spill] sm:$0xff] %v5640_v57  ;;  %7632 = vst [vmem:[#allocation21_spill] sm:$0xff] %v5648_v59  ;;  %v5650_v60 = vld [vmem:[#allocation8 + $0xac] ss:$16 sps:$4 sm:$0xff]  }
  0x73   :  { %7633 = vst [vmem:[#allocation22_spill] sm:$0xff] %v5650_v60 }
  0x74   :  { %745 = vmatpush2.bf16.msra.mxu0 %v4547_v62  ;;  %v5654_v62 = vld [vmem:[#allocation8 + $0xa8] ss:$16 sps:$4 sm:$0xff]  }
  0x75   :  { %827 = vmatpush2.bf16.msra.mxu1 %v4544_v61  ;;  %746 = vmatprep.subr.bf16.mxu0 %v4548_v63  ;;  %v5652_v61 = vld [vmem:[#allocation8 + $0xa0] ss:$16 sps:$4 sm:$0xff]   ;;  %7635 = vst [vmem:[#allocation24_spill] sm:$0xff] %v5654_v62  ;;  %v5660_v63 = vld [vmem:[#allocation8 + $0x84] ss:$16 sps:$4 sm:$0xff]  }
  0x76   :  { %828 = vmatprep.subr.bf16.mxu1 %v4552_v1  ;;  %7634 = vst [vmem:[#allocation23_spill] sm:$0xff] %v5652_v61  ;;  %7636 = vst [vmem:[#allocation25_spill] sm:$0xff] %v5660_v63  ;;  %v5662_v1 = vld [vmem:[#allocation8 + $0x8c] ss:$16 sps:$4 sm:$0xff]  }
  0x77   :  { %7637 = vst [vmem:[#allocation26_spill] sm:$0xff] %v5662_v1 }
  0x78   :  { %747 = vmatpush2.bf16.msra.mxu0 %v4553_v3  ;;  %v5666_v3 = vld [vmem:[#allocation8 + $0x88] ss:$16 sps:$4 sm:$0xff]  }
  0x79   :  { %829 = vmatpush2.bf16.msra.mxu1 %v4550_v2  ;;  %748 = vmatprep.subr.bf16.mxu0 %v4554_v4  ;;  %v5664_v2 = vld [vmem:[#allocation8 + $0x80] ss:$16 sps:$4 sm:$0xff]   ;;  %7639 = vst [vmem:[#allocation28_spill] sm:$0xff] %v5666_v3  ;;  %v5672_v4 = vld [vmem:[#allocation8 + $0x64] ss:$16 sps:$4 sm:$0xff]  }
  0x7a   :  { %830 = vmatprep.subr.bf16.mxu1 %v4558_v5  ;;  %7638 = vst [vmem:[#allocation27_spill] sm:$0xff] %v5664_v2  ;;  %7640 = vst [vmem:[#allocation29_spill] sm:$0xff] %v5672_v4  ;;  %v5674_v5 = vld [vmem:[#allocation8 + $0x6c] ss:$16 sps:$4 sm:$0xff]  }
  0x7b   :  { %7641 = vst [vmem:[#allocation30_spill] sm:$0xff] %v5674_v5 }
  0x7c   :  { %749 = vmatpush2.bf16.msra.mxu0 %v4559_v7  ;;  %v5680_v7 = vld [vmem:[#allocation8 + $0x68] ss:$16 sps:$4 sm:$0xff]  }
  0x7d   :  { %831 = vmatpush2.bf16.msra.mxu1 %v4556_v6  ;;  %1050 = vmatprep.subr.bf16.mxu0 %v5521_v11  ;;  %v5678_v6 = vld [vmem:[#allocation8 + $0x60] ss:$16 sps:$4 sm:$0xff]   ;;  %7643 = vst [vmem:[#allocation32_spill] sm:$0xff] %v5680_v7 }
  0x7e   :  { %832 = vmatprep.subr.bf16.mxu1 %v4562_v10  ;;  %7642 = vst [vmem:[#allocation31_spill] sm:$0xff] %v5678_v6  ;;  %v5688_v10 = vld [vmem:[#allocation8 + $0x40] ss:$16 sps:$4 sm:$0xff]  }
  0x7f   :  { %751 = vmatmul.mubr.bf16.vlgmr.msra.gmra.mxu0 %v240_v13  ;;  %7646 = vst [vmem:[#allocation35_spill] sm:$0xff] %v5688_v10 }
  0x80   :  { %1051 = vmatpush1.bf16.msra.mxu0 %v5523_v15  ;;  %1082 = vmatprep.mubr.bf16.mxu0 %v7246_v0 }
  0x81   :  { %833 = vmatpush2.bf16.msra.mxu1 %v4560_v14  ;;  %1052 = vmatprep.subr.bf16.mxu0 %v5526_v17  ;;  %v5696_v14 = vld [vmem:[#allocation8 + $0x24] ss:$16 sps:$4 sm:$0xff]  }
  0x82   :  { %834 = vmatprep.subr.bf16.mxu1 %v4568_v16  ;;  %7648 = vst [vmem:[#allocation37_spill] sm:$0xff] %v5696_v14  ;;  %v5698_v16 = vld [vmem:[#allocation8 + $0x2c] ss:$16 sps:$4 sm:$0xff]  }
  0x83   :  { %7649 = vst [vmem:[#allocation38_spill] sm:$0xff] %v5698_v16 }
  0x84   :  { %1053 = vmatpush1.bf16.msra.mxu0 %v5529_v19 }
  0x85   :  { %835 = vmatpush2.bf16.msra.mxu1 %v4566_v18  ;;  %1054 = vmatprep.subr.bf16.mxu0 %v5532_v21  ;;  %v5700_v18 = vld [vmem:[#allocation8 + $0x20] ss:$16 sps:$4 sm:$0xff]  }
  0x86   :  { %859 = vmatprep.subr.bf16.mxu1 %v4574_v20  ;;  %7650 = vst [vmem:[#allocation39_spill] sm:$0xff] %v5700_v18  ;;  %v5702_v20 = vld [vmem:[#allocation8 + $0x28] ss:$16 sps:$4 sm:$0xff]  }
  0x87   :  { %7651 = vst [vmem:[#allocation40_spill] sm:$0xff] %v5702_v20 }
  0x88   :  { %837 = vmatmul.mubr.bf16.vlgmr.msra.gmra.mxu1 %v240_v13  ;;  %1055 = vmatpush1.bf16.msra.mxu0 %v5534_v23  ;;  %v5690_v13 = vld [vmem:[#allocation8 + $0x48] ss:$16 sps:$4 sm:$0xff]  }
  0x89   :  { %860 = vmatpush1.bf16.msra.mxu1 %v4572_v22  ;;  %1056 = vmatprep.subr.bf16.mxu0 %v5537_v25  ;;  %7647 = vst [vmem:[#allocation36_spill] sm:$0xff] %v5690_v13  ;;  %v5708_v22 = vld [vmem:[#allocation8 + $0x4] ss:$16 sps:$4 sm:$0xff]  }
  0x8a   :  { %861 = vmatprep.subr.bf16.mxu1 %v4580_v24  ;;  %879 = vmatprep.mubr.bf16.mxu1 %v7246_v0  ;;  %7652 = vst [vmem:[#allocation41_spill] sm:$0xff] %v5708_v22  ;;  %v5710_v24 = vld [vmem:[#allocation8 + $0xc] ss:$16 sps:$4 sm:$0xff]  }
  0x8b   :  { %7653 = vst [vmem:[#allocation42_spill] sm:$0xff] %v5710_v24 }
  0x8c   :  { %1057 = vmatpush1.bf16.msra.mxu0 %v5541_v27 }
  0x8d   :  { %862 = vmatpush1.bf16.msra.mxu1 %v4578_v26  ;;  %1058 = vmatprep.subr.bf16.mxu0 %v5543_v28  ;;  %v5712_v26 = vld [vmem:[#allocation8] ss:$16 sps:$4 sm:$0xff]  }
  0x8e   :  { %1091 = vmatprep.subr.bf16.mxu1 %v5545_v29  ;;  %7654 = vst [vmem:[#allocation43_spill] sm:$0xff] %v5712_v26 }
  0x90   :  { %4239 = vmatmul.mubr.msk.bf16.vlgmr.msra.gmra.mxu1 %vm714_vm0, %v5517_v12  ;;  %1059 = vmatpush1.bf16.msra.mxu0 %v5550_v30  ;;  %v5582_v12 = vld [vmem:[#allocation7 + $0x8c] ss:$16 sps:$4 sm:$0xff]  }
  0x91   :  { %1092 = vmatpush1.bf16.msra.mxu1 %v5552_v31  ;;  %1060 = vmatprep.subr.bf16.mxu0 %v5554_v32 }
  0x92   :  { %1093 = vmatprep.subr.bf16.mxu1 %v5559_v33  ;;  %1123 = vmatprep.mubr.bf16.mxu1 %v7246_v0 }
  0x94   :  { %1061 = vmatpush1.bf16.msra.mxu0 %v5561_v34 }
  0x95   :  { %1094 = vmatpush1.bf16.msra.mxu1 %v5563_v35  ;;  %1062 = vmatprep.subr.bf16.mxu0 %v5567_v36 }
  0x96   :  { %1095 = vmatprep.subr.bf16.mxu1 %v5569_v37 }
  0x98   :  { %1063 = vmatpush1.bf16.msra.mxu0 %v5575_v38 }
  0x99   :  { %1096 = vmatpush1.bf16.msra.mxu1 %v5577_v39  ;;  %1064 = vmatprep.subr.bf16.mxu0 %v5580_v40 }
  0x9a   :  { %1097 = vmatprep.subr.bf16.mxu1 %v5582_v12 }
  0x9c   :  { %1065 = vmatpush1.bf16.msra.mxu0 %v5588_v41 }
  0x9d   :  { %1098 = vmatpush1.bf16.msra.mxu1 %v5590_v42  ;;  %1532 = vmatprep.subr.bf16.mxu0 %v5624_v51 }
  0x9e   :  { %1099 = vmatprep.subr.bf16.mxu1 %v5592_v43 }
  0x9f   :  { %1083 = vmatmul.mubr.bf16.vlgmr.msra.gmra.mxu0 %v7246_v0 }
  0xa0   :  { %1533 = vmatpush1.bf16.msra.mxu0 %v5630_v53 }
  0xa1   :  { %1100 = vmatpush1.bf16.msra.mxu1 %v5598_v44  ;;  %1534 = vmatprep.subr.bf16.mxu0 %v5636_v55 }
  0xa2   :  { %1101 = vmatprep.subr.bf16.mxu1 %v5600_v45 }
  0xa4   :  { %1535 = vmatpush1.bf16.msra.mxu0 %v5640_v57 }
  0xa5   :  { %1102 = vmatpush1.bf16.msra.mxu1 %v5607_v46  ;;  %1536 = vmatprep.subr.bf16.mxu0 %v5648_v59 }
  0xa6   :  { %1103 = vmatprep.subr.bf16.mxu1 %v5610_v47 }
  0xa8   :  { %1537 = vmatpush1.bf16.msra.mxu0 %v5652_v61 }
  0xa9   :  { %1104 = vmatpush1.bf16.msra.mxu1 %v5613_v48  ;;  %1538 = vmatprep.subr.bf16.mxu0 %v5660_v63 }
  0xaa   :  { %1105 = vmatprep.subr.bf16.mxu1 %v5616_v49 }
  0xac   :  { %1539 = vmatpush1.bf16.msra.mxu0 %v5664_v2 }
  0xad   :  { %1106 = vmatpush1.bf16.msra.mxu1 %v5619_v50  ;;  %1540 = vmatprep.subr.bf16.mxu0 %v5672_v4 }
  0xae   :  { %1573 = vmatprep.subr.bf16.mxu1 %v5626_v52 }
  0xb0   :  { %1124 = vmatmul.mubr.bf16.vlgmr.msra.gmra.mxu1 %v7246_v0  ;;  %1541 = vmatpush1.bf16.msra.mxu0 %v5678_v6  ;;  %v5714_v0 = vld [vmem:[#allocation8 + $0x8] ss:$16 sps:$4 sm:$0xff]  }
  0xb1   :  { %1574 = vmatpush1.bf16.msra.mxu1 %v5632_v54  ;;  %1542 = vmatprep.subr.bf16.mxu0 %v5684_v8  ;;  %7655 = vst [vmem:[#allocation44_spill] sm:$0xff] %v5714_v0 }
  0xb2   :  { %1575 = vmatprep.subr.bf16.mxu1 %v5638_v56 }
  0xb4   :  { %1543 = vmatpush1.bf16.msra.mxu0 %v5688_v10  ;;  %v5766_v10 = vld [vmem:[#allocation8 + $0x16c] ss:$16 sps:$4 sm:$0xff]  }
  0xb5   :  { %1576 = vmatpush1.bf16.msra.mxu1 %v5642_v58  ;;  %1544 = vmatprep.subr.bf16.mxu0 %v5696_v14  ;;  %v5726_v14 = vld [vmem:[#allocation8 + $0x1e8] ss:$16 sps:$4 sm:$0xff]   ;;  %7673 = vst [vmem:[#allocation62_spill] sm:$0xff] %v5766_v10 }
  0xb6   :  { %1577 = vmatprep.subr.bf16.mxu1 %v5650_v60  ;;  %7659 = vst [vmem:[#allocation48_spill] sm:$0xff] %v5726_v14 }
  0xb8   :  { %1545 = vmatpush1.bf16.msra.mxu0 %v5700_v18  ;;  %v5722_v18 = vld [vmem:[#allocation8 + $0x1ec] ss:$16 sps:$4 sm:$0xff]  }
  0xb9   :  { %1578 = vmatpush1.bf16.msra.mxu1 %v5654_v62  ;;  %1546 = vmatprep.subr.bf16.mxu0 %v5708_v22  ;;  %7657 = vst [vmem:[#allocation46_spill] sm:$0xff] %v5722_v18  ;;  %v5738_v22 = vld [vmem:[#allocation8 + $0x1c8] ss:$16 sps:$4 sm:$0xff]  }
  0xba   :  { %1579 = vmatprep.subr.bf16.mxu1 %v5662_v1  ;;  %7663 = vst [vmem:[#allocation52_spill] sm:$0xff] %v5738_v22 }
  0xbc   :  { %1547 = vmatpush1.bf16.msra.mxu0 %v5712_v26  ;;  %v5734_v26 = vld [vmem:[#allocation8 + $0x1cc] ss:$16 sps:$4 sm:$0xff]  }
  0xbd   :  { %1580 = vmatpush1.bf16.msra.mxu1 %v5666_v3  ;;  %7661 = vst [vmem:[#allocation50_spill] sm:$0xff] %v5734_v26 }
  0xbe   :  { %1581 = vmatprep.subr.bf16.mxu1 %v5674_v5 }
  0xc1   :  { %1582 = vmatpush1.bf16.msra.mxu1 %v5680_v7 }
  0xc2   :  { %1583 = vmatprep.subr.bf16.mxu1 %v5686_v9  ;;  %v5440_v9 = vmov 0.0|0.0  }
  0xc3   :  { %1564 = vmatprep.mubr.bf16.mxu0 %v5440_v9  ;;  %1605 = vmatprep.mubr.bf16.mxu1 %v5440_v9  ;;  %v5796_v9 = vld [vmem:[#allocation8 + $0x120] ss:$16 sps:$4 sm:$0xff]  }
  0xc4   :  { %7682 = vst [vmem:[#allocation71_spill] sm:$0xff] %v5796_v9 }
  0xc5   :  { %1584 = vmatpush1.bf16.msra.mxu1 %v5690_v13  ;;  %v5764_v13 = vld [vmem:[#allocation8 + $0x164] ss:$16 sps:$4 sm:$0xff]  }
  0xc6   :  { %1585 = vmatprep.subr.bf16.mxu1 %v5698_v16  ;;  %v5720_v16 = vld [vmem:[#allocation8 + $0x1e4] ss:$16 sps:$4 sm:$0xff]   ;;  %7672 = vst [vmem:[#allocation61_spill] sm:$0xff] %v5764_v13 }
  0xc7   :  { %7656 = vst [vmem:[#allocation45_spill] sm:$0xff] %v5720_v16  ;;  %1548 = vmatprep.subr.bf16.mxu0 %v5720_v16  ;;  %v5750_v16 = vld [vmem:[#allocation8 + $0x1a8] ss:$16 sps:$4 sm:$0xff]  }
  0xc8   :  { %7667 = vst [vmem:[#allocation56_spill] sm:$0xff] %v5750_v16 }
  0xc9   :  { %1586 = vmatpush1.bf16.msra.mxu1 %v5702_v20  ;;  %v5724_v20 = vld [vmem:[#allocation8 + $0x1e0] ss:$16 sps:$4 sm:$0xff]  }
  0xca   :  { %1587 = vmatprep.subr.bf16.mxu1 %v5710_v24  ;;  %7658 = vst [vmem:[#allocation47_spill] sm:$0xff] %v5724_v20  ;;  %1549 = vmatpush2.bf16.msra.mxu0 %v5724_v20  ;;  %v5732_v24 = vld [vmem:[#allocation8 + $0x1c4] ss:$16 sps:$4 sm:$0xff]   ;;  %v5746_v20 = vld [vmem:[#allocation8 + $0x1ac] ss:$16 sps:$4 sm:$0xff]  }
  0xcb   :  { %7660 = vst [vmem:[#allocation49_spill] sm:$0xff] %v5732_v24  ;;  %1550 = vmatprep.subr.bf16.mxu0 %v5732_v24  ;;  %7665 = vst [vmem:[#allocation54_spill] sm:$0xff] %v5746_v20  ;;  %v5762_v24 = vld [vmem:[#allocation8 + $0x188] ss:$16 sps:$4 sm:$0xff]  }
  0xcc   :  { %7671 = vst [vmem:[#allocation60_spill] sm:$0xff] %v5762_v24 }
  0xcd   :  { %1588 = vmatpush1.bf16.msra.mxu1 %v5714_v0  ;;  %v5736_v0 = vld [vmem:[#allocation8 + $0x1c0] ss:$16 sps:$4 sm:$0xff]  }
  0xce   :  { %1589 = vmatprep.subr.bf16.mxu1 %v5722_v18  ;;  %7662 = vst [vmem:[#allocation51_spill] sm:$0xff] %v5736_v0  ;;  %1551 = vmatpush2.bf16.msra.mxu0 %v5736_v0  ;;  %v5744_v18 = vld [vmem:[#allocation8 + $0x1a4] ss:$16 sps:$4 sm:$0xff]   ;;  %v5758_v0 = vld [vmem:[#allocation8 + $0x18c] ss:$16 sps:$4 sm:$0xff]  }
  0xcf   :  { %7664 = vst [vmem:[#allocation53_spill] sm:$0xff] %v5744_v18  ;;  %1552 = vmatprep.subr.bf16.mxu0 %v5744_v18  ;;  %7669 = vst [vmem:[#allocation58_spill] sm:$0xff] %v5758_v0  ;;  %v5780_v18 = vld [vmem:[#allocation8 + $0x14c] ss:$16 sps:$4 sm:$0xff]  }
  0xd0   :  { %7677 = vst [vmem:[#allocation66_spill] sm:$0xff] %v5780_v18 }
  0xd1   :  { %1590 = vmatpush2.bf16.msra.mxu1 %v5726_v14  ;;  %v5748_v14 = vld [vmem:[#allocation8 + $0x1a0] ss:$16 sps:$4 sm:$0xff]  }
  0xd2   :  { %1591 = vmatprep.subr.bf16.mxu1 %v5734_v26  ;;  %7666 = vst [vmem:[#allocation55_spill] sm:$0xff] %v5748_v14  ;;  %1553 = vmatpush2.bf16.msra.mxu0 %v5748_v14  ;;  %v5756_v26 = vld [vmem:[#allocation8 + $0x184] ss:$16 sps:$4 sm:$0xff]   ;;  %v5774_v14 = vld [vmem:[#allocation8 + $0x168] ss:$16 sps:$4 sm:$0xff]  }
  0xd3   :  { %7668 = vst [vmem:[#allocation57_spill] sm:$0xff] %v5756_v26  ;;  %1554 = vmatprep.subr.bf16.mxu0 %v5756_v26  ;;  %7675 = vst [vmem:[#allocation64_spill] sm:$0xff] %v5774_v14 }
  0xd5   :  { %1592 = vmatpush2.bf16.msra.mxu1 %v5738_v22  ;;  %v5760_v22 = vld [vmem:[#allocation8 + $0x180] ss:$16 sps:$4 sm:$0xff]  }
  0xd6   :  { %1593 = vmatprep.subr.bf16.mxu1 %v5746_v20  ;;  %7670 = vst [vmem:[#allocation59_spill] sm:$0xff] %v5760_v22  ;;  %1555 = vmatpush2.bf16.msra.mxu0 %v5760_v22  ;;  %v5778_v20 = vld [vmem:[#allocation8 + $0x144] ss:$16 sps:$4 sm:$0xff]   ;;  %v5786_v22 = vld [vmem:[#allocation8 + $0x148] ss:$16 sps:$4 sm:$0xff]  }
  0xd7   :  { %1556 = vmatprep.subr.bf16.mxu0 %v5764_v13  ;;  %7676 = vst [vmem:[#allocation65_spill] sm:$0xff] %v5778_v20  ;;  %7679 = vst [vmem:[#allocation68_spill] sm:$0xff] %v5786_v22  ;;  %v5792_v13 = vld [vmem:[#allocation8 + $0x12c] ss:$16 sps:$4 sm:$0xff]  }
  0xd8   :  { %7681 = vst [vmem:[#allocation70_spill] sm:$0xff] %v5792_v13 }
  0xd9   :  { %1594 = vmatpush2.bf16.msra.mxu1 %v5750_v16  ;;  %v5772_v16 = vld [vmem:[#allocation8 + $0x160] ss:$16 sps:$4 sm:$0xff]  }
  0xda   :  { %1595 = vmatprep.subr.bf16.mxu1 %v5758_v0  ;;  %7674 = vst [vmem:[#allocation63_spill] sm:$0xff] %v5772_v16  ;;  %1557 = vmatpush2.bf16.msra.mxu0 %v5772_v16  ;;  %v5798_v16 = vld [vmem:[#allocation8 + $0x128] ss:$16 sps:$4 sm:$0xff]  }
  0xdb   :  { %1558 = vmatprep.subr.bf16.mxu0 %v5778_v20  ;;  %7683 = vst [vmem:[#allocation72_spill] sm:$0xff] %v5798_v16  ;;  %v5804_v20 = vld [vmem:[#allocation8 + $0x10c] ss:$16 sps:$4 sm:$0xff]  }
  0xdc   :  { %7685 = vst [vmem:[#allocation74_spill] sm:$0xff] %v5804_v20 }
  0xdd   :  { %1596 = vmatpush2.bf16.msra.mxu1 %v5762_v24  ;;  %v5784_v24 = vld [vmem:[#allocation8 + $0x140] ss:$16 sps:$4 sm:$0xff]  }
  0xde   :  { %1597 = vmatprep.subr.bf16.mxu1 %v5766_v10  ;;  %7678 = vst [vmem:[#allocation67_spill] sm:$0xff] %v5784_v24  ;;  %v5790_v10 = vld [vmem:[#allocation8 + $0x124] ss:$16 sps:$4 sm:$0xff]   ;;  %1559 = vmatpush2.bf16.msra.mxu0 %v5784_v24  ;;  %v5810_v24 = vld [vmem:[#allocation8 + $0x108] ss:$16 sps:$4 sm:$0xff]  }
  0xdf   :  { %7680 = vst [vmem:[#allocation69_spill] sm:$0xff] %v5790_v10  ;;  %1560 = vmatprep.subr.bf16.mxu0 %v5790_v10  ;;  %7687 = vst [vmem:[#allocation76_spill] sm:$0xff] %v5810_v24 }
  0xe1   :  { %1598 = vmatpush2.bf16.msra.mxu1 %v5774_v14  ;;  %v5802_v14 = vld [vmem:[#allocation8 + $0x104] ss:$16 sps:$4 sm:$0xff]  }
  0xe2   :  { %1599 = vmatprep.subr.bf16.mxu1 %v5780_v18  ;;  %7684 = vst [vmem:[#allocation73_spill] sm:$0xff] %v5802_v14  ;;  %1561 = vmatpush2.bf16.msra.mxu0 %v5796_v9  ;;  %v5808_v18 = vld [vmem:[#allocation8 + $0x100] ss:$16 sps:$4 sm:$0xff]   ;;  %v198_v9 = vlaneseq }
  0xe3   :  { %7686 = vst [vmem:[#allocation75_spill] sm:$0xff] %v5808_v18  ;;  %1562 = vmatprep.subr.bf16.mxu0 %v5802_v14  ;;  %v315_v14 = vld [vmem:[%s7240_s3] sm:$0xf] }
  0xe5   :  { %1600 = vmatpush2.bf16.msra.mxu1 %v5786_v22 }
  0xe6   :  { %1601 = vmatprep.subr.bf16.mxu1 %v5792_v13  ;;  %1563 = vmatpush2.bf16.msra.mxu0 %v5808_v18  ;;  %v316_v18 = vunpack.c.l.bf16 %v315_v14 }
  0xe7   :  { %1648 = vmatprep.subr.bf16.mxu0 %v5521_v11 }
  0xe9   :  { %1602 = vmatpush2.bf16.msra.mxu1 %v5798_v16  ;;  %v5818_v16 = vshrl.u32 %v198_v9, 7 }
  0xea   :  { %1603 = vmatprep.subr.bf16.mxu1 %v5804_v20 }
  0xeb   :  { %v5824_v20 = vsub.s32 0, %v5818_v16  ;;  %v7327_v11 = vsub.s32 2, %v5818_v16  ;;  %v7330_v59 = vsub.s32 4, %v5818_v16 }
  0xed   :  { %1604 = vmatpush2.bf16.msra.mxu1 %v5810_v24  ;;  %v325_v9 = vrot.slane %v316_v18, %v7327_v11 }
  0xee   :  { %1689 = vmatprep.subr.bf16.mxu1 %v5545_v29  ;;  %v321_v29 = vrot.slane %v316_v18, %v5824_v20 }
  0xef   :  { %v345_v4 = vrot.slane %v325_v9, %v5824_v20 }
  0xf0   :  { %v341_v6 = vrot.slane %v321_v29, %v5824_v20 }
 0x108   :  { %v795_v13 = vpop.f32.mrf.mxu1 }
 0x10a   :  { %v797_v10 = vpop.f32.mrf.mxu1 }
 0x10c   :  { %v799_v22 = vpop.f32.mrf.mxu1 }
 0x10e   :  { %v801_v24 = vpop.f32.mrf.mxu1 }
 0x13f   :  { %v752_v0 = vpop.f32.mrf.mxu0 }
 0x140   :  { %v753_v2 = vadd.f32 %v752_v0, %v341_v6 }
 0x141   :  { %v754_v8 = vpop.f32.mrf.mxu0 }
 0x142   :  { %v755_v1 = vadd.f32 %v754_v8, %v345_v4  ;;  %v5832_v60 = vadd.f32 %v795_v13, %v753_v2  ;;  %v329_v8 = vrot.slane %v316_v18, %v7330_v59 }
 0x143   :  { %v756_v5 = vpop.f32.mrf.mxu0 }
 0x144   :  { %v757_v63 = vadd.f32 %v756_v5, %v341_v6  ;;  %v5835_v57 = vadd.f32 %v797_v10, %v755_v1 }
 0x145   :  { %v758_v14 = vpop.f32.mrf.mxu0 }
 0x146   :  { %v759_v62 = vadd.f32 %v758_v14, %v345_v4  ;;  %7688 = vst [vmem:[#allocation77_spill] sm:$0xff] %v5835_v57  ;;  %v5837_v11 = vadd.f32 %v799_v22, %v757_v63  ;;  %v7333_v22 = vsub.s32 6, %v5818_v16 }
 0x148   :  { %v838_v26 = vpop.f32.mrf.mxu1  ;;  %v5840_v9 = vadd.f32 %v801_v24, %v759_v62  ;;  %v333_v14 = vrot.slane %v316_v18, %v7333_v22 }
 0x14a   :  { %v840_v7 = vpop.f32.mrf.mxu1  ;;  %7689 = vst [vmem:[#allocation78_spill] sm:$0xff] %v5840_v9 }
 0x14c   :  { %v842_v3 = vpop.f32.mrf.mxu1 }
 0x14e   :  { %v844_v61 = vpop.f32.mrf.mxu1 }
 0x150   :  { %v881_v0 = vpop.f32.mrf.mxu1 }
 0x15f   :  { %v1084_v58 = vpop.f32.mrf.mxu0 }
 0x160   :  { %v1136_v29 = vrot.slane %v1084_v58, 1  ;;  %v1148_v56 = vadd.f32 %v1084_v58, %v5832_v60  ;;  %v883_v58 = vpop.f32.mrf.mxu1 }
 0x161   :  { %v1086_v55 = vpop.f32.mrf.mxu0 }
 0x162   :  { %v1152_v5 = vadd.f32 %v1136_v29, %v5837_v11  ;;  %v4272_v4 = vmul.f32 -1.442695, %v1148_v56  ;;  %v1137_v6 = vrot.slane %v1086_v55, 1  ;;  %v1149_v2 = vadd.f32 %v1086_v55, %v5835_v57  ;;  %v885_v55 = vpop.f32.mrf.mxu1 }
 0x163   :  { %v1088_v1 = vpop.f32.mrf.mxu0  ;;  %v349_v56 = vrot.slane %v329_v8, %v5824_v20 }
 0x164   :  { %4724 = vpow2.f32 %v4272_v4  ;;  %v4275_v63 = vmul.f32 -1.442695, %v1152_v5  ;;  %v1153_v10 = vadd.f32 %v1137_v6, %v5840_v9  ;;  %v4273_v13 = vmul.f32 -1.442695, %v1149_v2  ;;  %v887_v4 = vpop.f32.mrf.mxu1 }
 0x165   :  { %v1089_v62 = vpop.f32.mrf.mxu0  ;;  %v839_v29 = vadd.f32 %v838_v26, %v349_v56  ;;  %v353_v5 = vrot.slane %v333_v14, %v5824_v20  ;;  %v843_v6 = vadd.f32 %v842_v3, %v349_v56 }
 0x166   :  { %4726 = vpow2.f32 %v4275_v63  ;;  %v4276_v24 = vmul.f32 -1.442695, %v1153_v10 }
 0x167   :  { %4728 = vpow2.f32 %v4273_v13  ;;  %v5852_v2 = vadd.f32 %v881_v0, %v839_v29  ;;  %v5854_v62 = vadd.f32 %v885_v55, %v843_v6  ;;  %v845_v22 = vadd.f32 %v844_v61, %v353_v5 }
 0x168   :  { %4730 = vpow2.f32 %v4276_v24  ;;  %v841_v24 = vadd.f32 %v840_v7, %v353_v5 }
 0x169   :  { %v5860_v29 = vadd.f32 %v887_v4, %v845_v22 }
 0x16a   :  { %v5858_v0 = vadd.f32 %v883_v58, %v841_v24 }
 0x170   :  { %v1125_v1 = vpop.f32.mrf.mxu1 }
 0x171   :  { %v1138_v63 = vrot.slane %v1125_v1, 1  ;;  %v1150_v10 = vadd.f32 %v1125_v1, %v5852_v2  ;;  %v4725_v13 = vpop.eup %4724 }
 0x172   :  { %v1127_v8 = vpop.f32.mrf.mxu1  ;;  %v1174_v59 = vadd.f32 1.0, %v4725_v13 }
 0x173   :  { %v1154_v57 = vadd.f32 %v1138_v63, %v5854_v62  ;;  %v4274_v18 = vmul.f32 -1.442695, %v1150_v10  ;;  %v4727_v26 = vpop.eup %4726  ;;  %v1139_v9 = vrot.slane %v1127_v8, 1  ;;  %v1151_v63 = vadd.f32 %v1127_v8, %v5858_v0 }
 0x174   :  { %v1129_v14 = vpop.f32.mrf.mxu1  ;;  %v4729_v3 = vpop.eup %4728  ;;  %v1177_v56 = vadd.f32 1.0, %v4727_v26  ;;  %4732 = vrcp.f32 %v1174_v59 }
 0x175   :  { %v4731_v55 = vpop.eup %4730  ;;  %v1175_v6 = vadd.f32 1.0, %v4729_v3  ;;  %4734 = vpow2.f32 %v4274_v18  ;;  %v4277_v1 = vmul.f32 -1.442695, %v1154_v57  ;;  %v1155_v61 = vadd.f32 %v1139_v9, %v5860_v29 }
 0x176   :  { %v1130_v7 = vpop.f32.mrf.mxu1  ;;  %4736 = vrcp.f32 %v1177_v56  ;;  %v1178_v13 = vadd.f32 1.0, %v4731_v55 }
 0x177   :  { %4738 = vrcp.f32 %v1175_v6 }
 0x178   :  { %4740 = vrcp.f32 %v1178_v13 }
 0x179   :  { %4742 = vpow2.f32 %v4277_v1 }
 0x17a   :  { %4744 = vtanh.f32 %v1151_v63 }
 0x17b   :  { %4746 = vtanh.f32 %v1155_v61 }
 0x181   :  { %v4733_v58 = vpop.eup %4732 }
 0x182   :  { %v4735_v59 = vpop.eup %4734 }
 0x183   :  { %v4737_v5 = vpop.eup %4736  ;;  %v1176_v9 = vadd.f32 1.0, %v4735_v59  ;;  %v7690_v59 = vmov 0  }
 0x184   :  { %v4739_v22 = vpop.eup %4738 }
 0x185   :  { %v4741_v4 = vpop.eup %4740  ;;  %v1194_v24 = vmul.f32 0.0, %v4739_v22 }
 0x186   :  { %v4743_v10 = vpop.eup %4742  ;;  %v1195_v18 = vmul.f32 0.0, %v4741_v4  ;;  %v7718_v4 = vld [vmem:[#allocation44_spill] sm:$0xff] }
 0x187   :  { %v4745_v57 = vpop.eup %4744  ;;  %v1179_v26 = vadd.f32 1.0, %v4743_v10  ;;  %v7719_v10 = vld [vmem:[#allocation45_spill] sm:$0xff] }
 0x188   :  { %v4747_v14 = vpop.eup %4746  ;;  %v1196_v3 = vmul.f32 %v4745_v57, %v4733_v58  ;;  %v7721_v57 = vld [vmem:[#allocation47_spill] sm:$0xff] }
 0x189   :  { %v1197_v8 = vmul.f32 %v4747_v14, %v4737_v5  ;;  %4748 = vrcp.f32 %v1179_v26  ;;  %v7723_v26 = vld [vmem:[#allocation49_spill] sm:$0xff]  ;;  %v7724_v14 = vld [vmem:[#allocation50_spill] sm:$0xff] }
 0x18a   :  { %v5864_v56 = vadd.f32 %v1196_v3, %v1194_v24  ;;  %v7720_v24 = vld [vmem:[#allocation46_spill] sm:$0xff]  ;;  %v7725_v3 = vld [vmem:[#allocation51_spill] sm:$0xff] }
 0x18b   :  { %v5866_v55 = vadd.f32 %v1197_v8, %v1195_v18  ;;  %v7722_v18 = vld [vmem:[#allocation48_spill] sm:$0xff] }
 0x18c   :  { %4750 = vtanh.f32 %v5864_v56  ;;  %v7726_v8 = vld [vmem:[#allocation52_spill] sm:$0xff] }
 0x18d   :  { %4752 = vtanh.f32 %v5866_v55 }
 0x18e   :  { %4754 = vrcp.f32 %v1176_v9  ;;  %v7727_v9 = vld [vmem:[#allocation53_spill] sm:$0xff] }
 0x196   :  { %v4749_v6 = vpop.eup %4748 }
 0x199   :  { %v4751_v1 = vpop.eup %4750 }
 0x19a   :  { %v4753_v7 = vpop.eup %4752 }
 0x19b   :  { %v1203_v13 = vmul.f32 %v4753_v7, %v4749_v6  ;;  %v4755_v63 = vpop.eup %4754  ;;  %v7728_v6 = vld [vmem:[#allocation54_spill] sm:$0xff]  ;;  %v7730_v7 = vld [vmem:[#allocation56_spill] sm:$0xff] }
 0x19c   :  { %v1202_v61 = vmul.f32 %v4755_v63, %v4751_v1  ;;  %v7729_v1 = vld [vmem:[#allocation55_spill] sm:$0xff]  ;;  %v7732_v63 = vld [vmem:[#allocation58_spill] sm:$0xff] }
 0x19d   :  { %v1206_v58 = vrot.slane %v1203_v13, 7 }
 0x19f   :  { %v1208_v5 = vsel %vm1207_vm1, %v1206_v58, %v1202_v61  ;;  %v7734_v58 = vld [vmem:[#allocation60_spill] sm:$0xff] }
 0x1a0   :  { %v1210_v22 = vpack.c.bf16 %v1208_v5, %v1208_v5  ;;  %v7735_v5 = vld [vmem:[#allocation61_spill] sm:$0xff] }
 0x1a2   :  { %1565 = vmatmul.mubr.bf16.vlgmr.msra.gmra.mxu0 %v1210_v22  ;;  %1606 = vmatmul.mubr.bf16.vlgmr.msra.gmra.mxu1 %v1210_v22  ;;  %v7736_v22 = vld [vmem:[#allocation62_spill] sm:$0xff] }
 0x1a3   :  { %1649 = vmatpush1.bf16.msra.mxu0 %v5523_v15  ;;  %1690 = vmatpush1.bf16.msra.mxu1 %v5552_v31  ;;  %v1639_v15 = vpack.c.bf16 %v1203_v13, %v1203_v13  ;;  %v7693_v31 = vld [vmem:[#allocation19_spill] sm:$0xff]  ;;  %v7731_v13 = vld [vmem:[#allocation57_spill] sm:$0xff] }
 0x1a4   :  { %1650 = vmatprep.subr.bf16.mxu0 %v5526_v17  ;;  %1691 = vmatprep.subr.bf16.mxu1 %v5559_v33  ;;  %v7695_v33 = vld [vmem:[#allocation21_spill] sm:$0xff] }
 0x1a5   :  { %1680 = vmatprep.mubr.bf16.mxu0 %v7690_v59  ;;  %1721 = vmatprep.mubr.bf16.mxu1 %v7690_v59  ;;  %v1643_v17 = vunpack.c.l.b16 %v1639_v15  ;;  %v7737_v15 = vld [vmem:[#allocation63_spill] sm:$0xff] }
 0x1a7   :  { %1651 = vmatpush1.bf16.msra.mxu0 %v5529_v19  ;;  %1692 = vmatpush1.bf16.msra.mxu1 %v5563_v35  ;;  %v1638_v19 = vpack.c.bf16 %v1202_v61, %v1202_v61  ;;  %v7697_v35 = vld [vmem:[#allocation23_spill] sm:$0xff] }
 0x1a8   :  { %1652 = vmatprep.subr.bf16.mxu0 %v5532_v21  ;;  %1693 = vmatprep.subr.bf16.mxu1 %v5569_v37  ;;  %v1644_v21 = vrot.slane %v1643_v17, 7  ;;  %v7699_v37 = vld [vmem:[#allocation25_spill] sm:$0xff]  ;;  %v7733_v61 = vld [vmem:[#allocation59_spill] sm:$0xff]  ;;  %v7738_v17 = vld [vmem:[#allocation64_spill] sm:$0xff] }
 0x1ab   :  { %1653 = vmatpush1.bf16.msra.mxu0 %v5534_v23  ;;  %1694 = vmatpush1.bf16.msra.mxu1 %v5577_v39  ;;  %v1642_v23 = vunpack.c.l.b16 %v1638_v19  ;;  %v7701_v39 = vld [vmem:[#allocation27_spill] sm:$0xff]  ;;  %v7739_v19 = vld [vmem:[#allocation65_spill] sm:$0xff] }
 0x1ac   :  { %1654 = vmatprep.subr.bf16.mxu0 %v5537_v25  ;;  %1695 = vmatprep.subr.bf16.mxu1 %v5582_v12  ;;  %v7703_v12 = vld [vmem:[#allocation29_spill] sm:$0xff] }
 0x1ad   :  { %v1645_v25 = vsel %vm1207_vm1, %v1644_v21, %v1642_v23  ;;  %v7740_v21 = vld [vmem:[#allocation66_spill] sm:$0xff]  ;;  %v7741_v23 = vld [vmem:[#allocation67_spill] sm:$0xff] }
 0x1af   :  { %1655 = vmatpush1.bf16.msra.mxu0 %v5541_v27  ;;  %1696 = vmatpush1.bf16.msra.mxu1 %v5590_v42  ;;  %v1646_v27 = vpack.c.b16 %v1645_v25, %v1645_v25  ;;  %v7705_v42 = vld [vmem:[#allocation31_spill] sm:$0xff]  ;;  %v7742_v25 = vld [vmem:[#allocation68_spill] sm:$0xff] }
 0x1b0   :  { %1656 = vmatprep.subr.bf16.mxu0 %v5543_v28  ;;  %1697 = vmatprep.subr.bf16.mxu1 %v5592_v43  ;;  %v7691_v28 = vld [vmem:[#allocation17_spill] sm:$0xff]  ;;  %v7706_v43 = vld [vmem:[#allocation32_spill] sm:$0xff] }
 0x1b3   :  { %1657 = vmatpush1.bf16.msra.mxu0 %v5550_v30  ;;  %1698 = vmatpush1.bf16.msra.mxu1 %v5598_v44  ;;  %v7692_v30 = vld [vmem:[#allocation18_spill] sm:$0xff]  ;;  %v7707_v44 = vld [vmem:[#allocation33_spill] sm:$0xff] }
 0x1b4   :  { %1658 = vmatprep.subr.bf16.mxu0 %v5554_v32  ;;  %1699 = vmatprep.subr.bf16.mxu1 %v5600_v45  ;;  %v7694_v32 = vld [vmem:[#allocation20_spill] sm:$0xff]  ;;  %v7708_v45 = vld [vmem:[#allocation34_spill] sm:$0xff] }
 0x1b7   :  { %1659 = vmatpush1.bf16.msra.mxu0 %v5561_v34  ;;  %1700 = vmatpush1.bf16.msra.mxu1 %v5607_v46  ;;  %v7696_v34 = vld [vmem:[#allocation22_spill] sm:$0xff]  ;;  %v7709_v46 = vld [vmem:[#allocation35_spill] sm:$0xff] }
 0x1b8   :  { %1660 = vmatprep.subr.bf16.mxu0 %v5567_v36  ;;  %1701 = vmatprep.subr.bf16.mxu1 %v5610_v47  ;;  %v7698_v36 = vld [vmem:[#allocation24_spill] sm:$0xff] }
 0x1b9   :  { %v7710_v47 = vld [vmem:[#allocation36_spill] sm:$0xff] }
 0x1bb   :  { %1661 = vmatpush1.bf16.msra.mxu0 %v5575_v38  ;;  %1702 = vmatpush1.bf16.msra.mxu1 %v5613_v48  ;;  %v7700_v38 = vld [vmem:[#allocation26_spill] sm:$0xff]  ;;  %v7711_v48 = vld [vmem:[#allocation37_spill] sm:$0xff] }
 0x1bc   :  { %1662 = vmatprep.subr.bf16.mxu0 %v5580_v40  ;;  %1703 = vmatprep.subr.bf16.mxu1 %v5616_v49  ;;  %v7702_v40 = vld [vmem:[#allocation28_spill] sm:$0xff]  ;;  %v7712_v49 = vld [vmem:[#allocation38_spill] sm:$0xff] }
 0x1bf   :  { %1663 = vmatpush1.bf16.msra.mxu0 %v5588_v41  ;;  %1704 = vmatpush1.bf16.msra.mxu1 %v5619_v50  ;;  %v7704_v41 = vld [vmem:[#allocation30_spill] sm:$0xff]  ;;  %v7713_v50 = vld [vmem:[#allocation39_spill] sm:$0xff] }
 0x1c0   :  { %1835 = vmatprep.subr.bf16.mxu0 %v5624_v51  ;;  %1876 = vmatprep.subr.bf16.mxu1 %v5626_v52  ;;  %v7714_v51 = vld [vmem:[#allocation40_spill] sm:$0xff]  ;;  %v7715_v52 = vld [vmem:[#allocation41_spill] sm:$0xff] }
 0x1c2   :  { %1681 = vmatmul.mubr.bf16.vlgmr.msra.gmra.mxu0 %v1646_v27  ;;  %1722 = vmatmul.mubr.bf16.vlgmr.msra.gmra.mxu1 %v1646_v27  ;;  %v7743_v27 = vld [vmem:[#allocation69_spill] sm:$0xff] }
 0x1c3   :  { %1836 = vmatpush1.bf16.msra.mxu0 %v5630_v53  ;;  %1877 = vmatpush1.bf16.msra.mxu1 %v5632_v54  ;;  %v7716_v53 = vld [vmem:[#allocation42_spill] sm:$0xff]  ;;  %v7717_v54 = vld [vmem:[#allocation43_spill] sm:$0xff] }
 0x1c4   :  { %1837 = vmatprep.subr.bf16.mxu0 %v7691_v28  ;;  %1878 = vmatprep.subr.bf16.mxu1 %v7692_v30  ;;  %v7744_v28 = vld [vmem:[#allocation70_spill] sm:$0xff]  ;;  %v7745_v30 = vld [vmem:[#allocation71_spill] sm:$0xff] }
 0x1c7   :  { %1838 = vmatpush1.bf16.msra.mxu0 %v7693_v31  ;;  %1879 = vmatpush1.bf16.msra.mxu1 %v7694_v32  ;;  %v7746_v31 = vld [vmem:[#allocation72_spill] sm:$0xff]  ;;  %v7747_v32 = vld [vmem:[#allocation73_spill] sm:$0xff] }
 0x1c8   :  { %1839 = vmatprep.subr.bf16.mxu0 %v7695_v33  ;;  %1880 = vmatprep.subr.bf16.mxu1 %v7696_v34  ;;  %v7748_v33 = vld [vmem:[#allocation74_spill] sm:$0xff]  ;;  %v7749_v34 = vld [vmem:[#allocation75_spill] sm:$0xff] }
 0x1cb   :  { %1840 = vmatpush1.bf16.msra.mxu0 %v7697_v35  ;;  %1881 = vmatpush1.bf16.msra.mxu1 %v7698_v36  ;;  %v7750_v35 = vld [vmem:[#allocation76_spill] sm:$0xff] }
 0x1cc   :  { %1841 = vmatprep.subr.bf16.mxu0 %v7699_v37  ;;  %1882 = vmatprep.subr.bf16.mxu1 %v7700_v38  ;;  %v5968_v36 = vld [vmem:[#allocation7 + $0xe4] ss:$16 sps:$4 sm:$0xff]   ;;  %v195_v38 = vld [vmem:[%s7242_s5] sm:$0xf] }
 0x1cd   :  { %v7751_v37 = vld [vmem:[#allocation16_spill] sm:$0xff] }
 0x1cf   :  { %1842 = vmatpush1.bf16.msra.mxu0 %v7701_v39  ;;  %1883 = vmatpush1.bf16.msra.mxu1 %v7702_v40  ;;  %v196_v39 = vunpack.c.l.bf16 %v195_v38 }
 0x1d0   :  { %1843 = vmatprep.subr.bf16.mxu0 %v7703_v12  ;;  %1884 = vmatprep.subr.bf16.mxu1 %v7704_v41  ;;  %v7752_v12 = vsub.s32 2, %v5818_v16 }
 0x1d1   :  { %v201_v40 = vrot.slane %v196_v39, %v5824_v20 }
 0x1d2   :  { %v205_v41 = vrot.slane %v196_v39, %v7752_v12 }
 0x1d3   :  { %1844 = vmatpush1.bf16.msra.mxu0 %v7705_v42  ;;  %1885 = vmatpush1.bf16.msra.mxu1 %v7706_v43  ;;  %v5979_v42 = vrot.slane %v201_v40, %v5824_v20 }
 0x1d4   :  { %1845 = vmatprep.subr.bf16.mxu0 %v7707_v44  ;;  %1886 = vmatprep.subr.bf16.mxu1 %v7708_v45  ;;  %v5982_v43 = vrot.slane %v205_v41, %v5824_v20 }
 0x1d5   :  { %7753 = vst [vmem:[#allocation17_spill] sm:$0xff] %v5979_v42 }
 0x1d6   :  { %7754 = vst [vmem:[#allocation18_spill] sm:$0xff] %v5982_v43 }
 0x1d7   :  { %1846 = vmatpush1.bf16.msra.mxu0 %v7709_v46  ;;  %1887 = vmatpush1.bf16.msra.mxu1 %v7710_v47 }
 0x1d8   :  { %1847 = vmatprep.subr.bf16.mxu0 %v7711_v48  ;;  %1888 = vmatprep.subr.bf16.mxu1 %v7712_v49 }
 0x1db   :  { %1848 = vmatpush1.bf16.msra.mxu0 %v7713_v50  ;;  %1889 = vmatpush1.bf16.msra.mxu1 %v7714_v51  ;;  %v7755_v51 = vsub.s32 4, %v5818_v16 }
 0x1dc   :  { %1849 = vmatprep.subr.bf16.mxu0 %v7715_v52  ;;  %1890 = vmatprep.subr.bf16.mxu1 %v7716_v53 }
 0x1dd   :  { %v209_v52 = vrot.slane %v196_v39, %v7755_v51 }
 0x1df   :  { %1850 = vmatpush1.bf16.msra.mxu0 %v7717_v54  ;;  %1891 = vmatpush1.bf16.msra.mxu1 %v7718_v4 }
 0x1e0   :  { %1851 = vmatprep.subr.bf16.mxu0 %v7719_v10  ;;  %1892 = vmatprep.subr.bf16.mxu1 %v7720_v24 }
 0x1e3   :  { %1852 = vmatpush2.bf16.msra.mxu0 %v7721_v57  ;;  %1893 = vmatpush2.bf16.msra.mxu1 %v7722_v18  ;;  %v5989_v57 = vrot.slane %v209_v52, %v5824_v20  ;;  %v7757_v18 = vsub.s32 6, %v5818_v16 }
 0x1e4   :  { %1853 = vmatprep.subr.bf16.mxu0 %v7723_v26  ;;  %1894 = vmatprep.subr.bf16.mxu1 %v7724_v14 }
 0x1e5   :  { %7756 = vst [vmem:[#allocation19_spill] sm:$0xff] %v5989_v57  ;;  %v213_v26 = vrot.slane %v196_v39, %v7757_v18 }
 0x1e7   :  { %1854 = vmatpush2.bf16.msra.mxu0 %v7725_v3  ;;  %1895 = vmatpush2.bf16.msra.mxu1 %v7726_v8  ;;  %v5995_v3 = vrot.slane %v213_v26, %v5824_v20 }
 0x1e8   :  { %1855 = vmatprep.subr.bf16.mxu0 %v7727_v9  ;;  %1896 = vmatprep.subr.bf16.mxu1 %v7728_v6 }
 0x1e9   :  { %7758 = vst [vmem:[#allocation20_spill] sm:$0xff] %v5995_v3 }
 0x1eb   :  { %1856 = vmatpush2.bf16.msra.mxu0 %v7729_v1  ;;  %1897 = vmatpush2.bf16.msra.mxu1 %v7730_v7 }
 0x1ec   :  { %1857 = vmatprep.subr.bf16.mxu0 %v7731_v13  ;;  %1898 = vmatprep.subr.bf16.mxu1 %v7732_v63 }
 0x1ef   :  { %1858 = vmatpush2.bf16.msra.mxu0 %v7733_v61  ;;  %1899 = vmatpush2.bf16.msra.mxu1 %v7734_v58 }
 0x1f0   :  { %1859 = vmatprep.subr.bf16.mxu0 %v7735_v5  ;;  %1900 = vmatprep.subr.bf16.mxu1 %v7736_v22 }
 0x1f3   :  { %1860 = vmatpush2.bf16.msra.mxu0 %v7737_v15  ;;  %1901 = vmatpush2.bf16.msra.mxu1 %v7738_v17 }
 0x1f4   :  { %1861 = vmatprep.subr.bf16.mxu0 %v7739_v19  ;;  %1902 = vmatprep.subr.bf16.mxu1 %v7740_v21 }
 0x1f7   :  { %1862 = vmatpush2.bf16.msra.mxu0 %v7741_v23  ;;  %1903 = vmatpush2.bf16.msra.mxu1 %v7742_v25 }
 0x1f8   :  { %1863 = vmatprep.subr.bf16.mxu0 %v7743_v27  ;;  %1904 = vmatprep.subr.bf16.mxu1 %v7744_v28 }
 0x1fb   :  { %1864 = vmatpush2.bf16.msra.mxu0 %v7745_v30  ;;  %1905 = vmatpush2.bf16.msra.mxu1 %v7746_v31 }
 0x1fc   :  { %1865 = vmatprep.subr.bf16.mxu0 %v7747_v32  ;;  %1906 = vmatprep.subr.bf16.mxu1 %v7748_v33 }
 0x1ff   :  { %1866 = vmatpush2.bf16.msra.mxu0 %v7749_v34  ;;  %1907 = vmatpush2.bf16.msra.mxu1 %v7750_v35 }
 0x200   :  { %1951 = vmatprep.subr.bf16.mxu0 %v5968_v36  ;;  %1992 = vmatprep.subr.bf16.mxu1 %v7751_v37 }
 0x262   :  { %v1566_v44 = vpop.f32.mrf.mxu0  ;;  %v1607_v45 = vpop.f32.mrf.mxu1 }
 0x263   :  { %v1567_v46 = vadd.f32 %v1566_v44, %v5979_v42  ;;  %v1608_v14 = vadd.f32 %v1607_v45, %v5989_v57 }
 0x264   :  { %v1568_v47 = vpop.f32.mrf.mxu0  ;;  %v1609_v48 = vpop.f32.mrf.mxu1 }
 0x265   :  { %v4342_v49 = vmul.f32 -1.442695, %v1567_v46  ;;  %v1569_v50 = vadd.f32 %v1568_v47, %v5982_v43  ;;  %v4344_v8 = vmul.f32 -1.442695, %v1608_v14  ;;  %v1610_v6 = vadd.f32 %v1609_v48, %v5995_v3  ;;  %v7760_v14 = vld [vmem:[#allocation77_spill] sm:$0xff] }
 0x266   :  { %v1570_v53 = vpop.f32.mrf.mxu0  ;;  %v1611_v54 = vpop.f32.mrf.mxu1 }
 0x267   :  { %4756 = vpow2.f32 %v4342_v49  ;;  %v4343_v4 = vmul.f32 -1.442695, %v1569_v50  ;;  %v7759_v53 = vld [vmem:[#allocation78_spill] sm:$0xff] }
 0x268   :  { %v1571_v10 = vpop.f32.mrf.mxu0  ;;  %v1612_v24 = vpop.f32.mrf.mxu1 }
 0x269   :  { %4758 = vpow2.f32 %v4343_v4 }
 0x26a   :  { %4760 = vpow2.f32 %v4344_v8 }
 0x274   :  { %v4757_v9 = vpop.eup %4756 }
 0x275   :  { %v1623_v1 = vadd.f32 1.0, %v4757_v9 }
 0x276   :  { %v4759_v7 = vpop.eup %4758 }
 0x277   :  { %4762 = vrcp.f32 %v1623_v1  ;;  %v1624_v37 = vadd.f32 1.0, %v4759_v7  ;;  %v4761_v12 = vpop.eup %4760 }
 0x278   :  { %4764 = vtanh.f32 %v1610_v6  ;;  %v1625_v51 = vadd.f32 1.0, %v4761_v12 }
 0x279   :  { %4766 = vrcp.f32 %v1624_v37 }
 0x282   :  { %v1682_v38 = vpop.f32.mrf.mxu0  ;;  %v1723_v40 = vpop.f32.mrf.mxu1 }
 0x283   :  { %v1734_v39 = vrot.slane %v1682_v38, 7  ;;  %v1750_v41 = vadd.f32 %v1682_v38, %v5837_v11  ;;  %v1736_v38 = vrot.slane %v1723_v40, 7  ;;  %v1752_v12 = vadd.f32 %v1723_v40, %v5854_v62 }
 0x284   :  { %v4763_v44 = vpop.eup %4762  ;;  %v1684_v45 = vpop.f32.mrf.mxu0 }
 0x285   :  { %v1725_v46 = vpop.f32.mrf.mxu1  ;;  %v4765_v47 = vpop.eup %4764  ;;  %v1746_v49 = vadd.f32 %v1734_v39, %v5832_v60  ;;  %v4348_v48 = vmul.f32 -1.442695, %v1750_v41  ;;  %v1735_v52 = vrot.slane %v1684_v45, 7  ;;  %v1751_v54 = vadd.f32 %v1684_v45, %v7759_v53 }
 0x286   :  { %v4767_v50 = vpop.eup %4766  ;;  %v1686_v4 = vpop.f32.mrf.mxu0  ;;  %v1634_v18 = vmul.f32 %v4765_v47, %v4763_v44  ;;  %v5441_v39 = vmov 1966171168   ;;  %v1748_v44 = vadd.f32 %v1736_v38, %v5852_v2  ;;  %v1737_v45 = vrot.slane %v1725_v46, 7 }
 0x287   :  { %v1727_v10 = vpop.f32.mrf.mxu1  ;;  %v1633_v24 = vmul.f32 0.0, %v4767_v50  ;;  %v4345_v26 = vmul.f32 -1.442695, %v1746_v49  ;;  %4768 = vpow2.f32 %v4348_v48  ;;  %v1747_v8 = vadd.f32 %v1735_v52, %v7760_v14 }
 0x288   :  { %v1687_v9 = vpop.f32.mrf.mxu0  ;;  %v4349_v7 = vmul.f32 -1.442695, %v1751_v54  ;;  %v3764_v41 = vunpack.c.l.s4 %v5441_v39  ;;  %v4350_v47 = vmul.f32 -1.442695, %v1752_v12  ;;  %v4347_v48 = vmul.f32 -1.442695, %v1748_v44 }
 0x289   :  { %v1728_v6 = vpop.f32.mrf.mxu1  ;;  %v6002_v1 = vadd.f32 %v1634_v18, %v1633_v24  ;;  %4770 = vpow2.f32 %v4345_v26  ;;  %v4346_v37 = vmul.f32 -1.442695, %v1747_v8  ;;  %v1749_v52 = vadd.f32 %v1737_v45, %v5858_v0  ;;  %v6098_v12 = vld [vmem:[#allocation7 + $0x48] ss:$16 sps:$4 sm:$0xff]  }
 0x28a   :  { %4772 = vrcp.f32 %v1625_v51  ;;  %v3765_v49 = vunpack.c.0.s8 %v3764_v41  ;;  %v1753_v51 = vadd.f32 %v1725_v46, %v5860_v29  ;;  %7766 = vst [vmem:[#allocation26_spill] sm:$0xff] %v6098_v12 }
 0x28b   :  { %4774 = vtanh.f32 %v6002_v1 }
 0x28c   :  { %4776 = vpow2.f32 %v4346_v37  ;;  %v6010_v10 = vsub.s32 %v3765_v49, %v5818_v16 }
 0x28d   :  { %4778 = vpow2.f32 %v4349_v7 }
 0x28e   :  { %4780 = vpow2.f32 %v4350_v47 }
 0x28f   :  { %4782 = vpow2.f32 %v4347_v48 }
 0x290   :  { %4784 = vtanh.f32 %v1749_v52 }
 0x291   :  { %4786 = vtanh.f32 %v1753_v51 }
 0x294   :  { %v4769_v50 = vpop.eup %4768 }
 0x295   :  { %v1775_v24 = vadd.f32 1.0, %v4769_v50 }
 0x296   :  { %v4771_v54 = vpop.eup %4770 }
 0x297   :  { %v4773_v4 = vpop.eup %4772  ;;  %v1772_v40 = vadd.f32 1.0, %v4771_v54 }
 0x298   :  { %v4775_v18 = vpop.eup %4774 }
 0x299   :  { %v4777_v26 = vpop.eup %4776  ;;  %v1637_v8 = vmul.f32 %v4775_v18, %v4773_v4  ;;  %4788 = vrcp.f32 %v1772_v40  ;;  %v1794_v4 = vrot.slane %v5864_v56, 7 }
 0x29a   :  { %v4779_v9 = vpop.eup %4778  ;;  %v1773_v6 = vadd.f32 1.0, %v4777_v26  ;;  %4790 = vrcp.f32 %v1775_v24  ;;  %v1795_v26 = vrot.slane %v5866_v55, 7 }
 0x29b   :  { %v1776_v7 = vadd.f32 1.0, %v4779_v9  ;;  %v1815_v46 = vrot.slane %v1637_v8, 7  ;;  %v6013_v37 = vrot.slane %v1637_v8, %v6010_v10  ;;  %v4781_v47 = vpop.eup %4780 }
 0x29c   :  { %4792 = vrcp.f32 %v1773_v6  ;;  %v4783_v48 = vpop.eup %4782  ;;  %v1777_v40 = vadd.f32 1.0, %v4781_v47 }
 0x29d   :  { %4794 = vrcp.f32 %v1776_v7  ;;  %v1818_v16 = vpack.c.bf16 %v1815_v46, %v1815_v46  ;;  %v3770_v38 = vcombine.high %v6013_v37, %v6013_v37  ;;  %v4785_v50 = vpop.eup %4784  ;;  %v1774_v18 = vadd.f32 1.0, %v4783_v48 }
 0x29e   :  { %v4787_v52 = vpop.eup %4786  ;;  %4796 = vrcp.f32 %v1777_v40 }
 0x29f   :  { %v1829_v39 = vshll.u32 %v1818_v16, 16  ;;  %v6020_v41 = vrot.slane %v3770_v38, %v6010_v10  ;;  %v1827_v44 = vshrl.u32 %v1818_v16, 16  ;;  %4798 = vrcp.f32 %v1774_v18 }
 0x2a1   :  { %v1831_v45 = vrot.slane %v1829_v39, 1 }
 0x2a3   :  { %v1832_v49 = vor.u32 %v1831_v45, %v1827_v44 }
 0x2a5   :  { %1867 = vmatprep.mubr.bf16.mxu0 %v1832_v49  ;;  %1908 = vmatprep.mubr.bf16.mxu1 %v1832_v49 }
 0x2a6   :  { %v4789_v51 = vpop.eup %4788 }
 0x2a7   :  { %v4791_v54 = vpop.eup %4790  ;;  %v1800_v6 = vmul.f32 %v4789_v51, %v4785_v50 }
 0x2a8   :  { %v1801_v46 = vmul.f32 %v4791_v54, %v4787_v52 }
 0x2a9   :  { %v4793_v24 = vpop.eup %4792 }
 0x2aa   :  { %v4795_v8 = vpop.eup %4794  ;;  %v1798_v9 = vmul.f32 %v4793_v24, %v1794_v4 }
 0x2ab   :  { %v1799_v7 = vmul.f32 %v4795_v8, %v1795_v26  ;;  %v4797_v56 = vpop.eup %4796 }
 0x2ac   :  { %v6024_v16 = vadd.f32 %v1800_v6, %v1798_v9  ;;  %v4799_v39 = vpop.eup %4798  ;;  %v6033_v6 = vld [vmem:[#allocation7 + $0xe0] ss:$16 sps:$4 sm:$0xff]  }
 0x2ad   :  { %v6026_v38 = vadd.f32 %v1801_v46, %v1799_v7  ;;  %v6036_v7 = vld [vmem:[#allocation7 + $0xe8] ss:$16 sps:$4 sm:$0xff]   ;;  %v6039_v46 = vld [vmem:[#allocation7 + $0xc4] ss:$16 sps:$4 sm:$0xff]  }
 0x2ae   :  { %4800 = vtanh.f32 %v6024_v16 }
 0x2af   :  { %4802 = vtanh.f32 %v6026_v38 }
 0x2bb   :  { %v4801_v44 = vpop.eup %4800 }
 0x2bc   :  { %v4803_v45 = vpop.eup %4802  ;;  %v1806_v55 = vmul.f32 %v4801_v44, %v4799_v39  ;;  %v6047_v39 = vld [vmem:[#allocation7 + $0xc0] ss:$16 sps:$4 sm:$0xff]   ;;  %v6050_v44 = vld [vmem:[#allocation7 + $0xc8] ss:$16 sps:$4 sm:$0xff]  }
 0x2bd   :  { %v1807_v47 = vmul.f32 %v4803_v45, %v4797_v56  ;;  %v6042_v56 = vld [vmem:[#allocation7 + $0xcc] ss:$16 sps:$4 sm:$0xff]   ;;  %v6053_v45 = vld [vmem:[#allocation7 + $0xa4] ss:$16 sps:$4 sm:$0xff]  }
 0x2be   :  { %v1941_v49 = vpack.c.bf16 %v1806_v55, %v1806_v55 }
 0x2bf   :  { %v1810_v48 = vrot.slane %v1807_v47, 7  ;;  %v1942_v50 = vpack.c.bf16 %v1807_v47, %v1807_v47  ;;  %v6059_v47 = vld [vmem:[#allocation7 + $0xa0] ss:$16 sps:$4 sm:$0xff]  }
 0x2c0   :  { %v1945_v52 = vunpack.c.l.b16 %v1941_v49  ;;  %v6062_v49 = vld [vmem:[#allocation7 + $0xa8] ss:$16 sps:$4 sm:$0xff]  }
 0x2c1   :  { %v1812_v51 = vsel %vm1811_vm2, %v1810_v48, %v1806_v55  ;;  %v1946_v4 = vunpack.c.l.b16 %v1942_v50  ;;  %v6056_v55 = vld [vmem:[#allocation7 + $0xac] ss:$16 sps:$4 sm:$0xff]   ;;  %v6065_v48 = vld [vmem:[#allocation7 + $0x84] ss:$16 sps:$4 sm:$0xff]  }
 0x2c2   :  { %v1817_v54 = vpack.c.bf16 %v1812_v51, %v1812_v51  ;;  %v1947_v40 = vrot.slane %v1945_v52, 1  ;;  %v6068_v50 = vld [vmem:[#allocation7 + $0x8c] ss:$16 sps:$4 sm:$0xff]   ;;  %v6071_v52 = vld [vmem:[#allocation7 + $0x80] ss:$16 sps:$4 sm:$0xff]  }
 0x2c3   :  { %v6074_v51 = vld [vmem:[#allocation7 + $0x88] ss:$16 sps:$4 sm:$0xff]  }
 0x2c4   :  { %v1822_v24 = vshll.u32 %v1817_v54, 16  ;;  %v6031_v18 = vsel %vm1207_vm1, %v1946_v4, %v1947_v40  ;;  %v1820_v26 = vshrl.u32 %v1817_v54, 16  ;;  %v6077_v54 = vld [vmem:[#allocation7 + $0x64] ss:$16 sps:$4 sm:$0xff]   ;;  %v6080_v4 = vld [vmem:[#allocation7 + $0x6c] ss:$16 sps:$4 sm:$0xff]  }
 0x2c5   :  { %v6083_v40 = vld [vmem:[#allocation7 + $0x60] ss:$16 sps:$4 sm:$0xff]  }
 0x2c6   :  { %v1824_v8 = vrot.slane %v1822_v24, 1  ;;  %7761 = vst [vmem:[#allocation21_spill] sm:$0xff] %v6083_v40  ;;  %v6086_v24 = vld [vmem:[#allocation7 + $0x68] ss:$16 sps:$4 sm:$0xff]  }
 0x2c7   :  { %7762 = vst [vmem:[#allocation22_spill] sm:$0xff] %v6086_v24 }
 0x2c8   :  { %v1825_v9 = vor.u32 %v1824_v8, %v1820_v26  ;;  %v6089_v26 = vld [vmem:[#allocation7 + $0x44] ss:$16 sps:$4 sm:$0xff]   ;;  %v6092_v8 = vld [vmem:[#allocation7 + $0x4c] ss:$16 sps:$4 sm:$0xff]  }
 0x2c9   :  { %7763 = vst [vmem:[#allocation23_spill] sm:$0xff] %v6089_v26  ;;  %7764 = vst [vmem:[#allocation24_spill] sm:$0xff] %v6092_v8 }
 0x2ca   :  { %1868 = vmatmul.mubr.bf16.vlgmr.msra.gmra.mxu0 %v1825_v9  ;;  %1909 = vmatmul.mubr.bf16.vlgmr.msra.gmra.mxu1 %v1825_v9  ;;  %v6095_v9 = vld [vmem:[#allocation7 + $0x40] ss:$16 sps:$4 sm:$0xff]  }
 0x2cb   :  { %1952 = vmatpush1.bf16.msra.mxu0 %v6033_v6  ;;  %1993 = vmatpush1.bf16.msra.mxu1 %v6036_v7  ;;  %7765 = vst [vmem:[#allocation25_spill] sm:$0xff] %v6095_v9 }
 0x2cc   :  { %1953 = vmatprep.subr.bf16.mxu0 %v6039_v46  ;;  %1994 = vmatprep.subr.bf16.mxu1 %v6042_v56 }
 0x2cd   :  { %1983 = vmatprep.mubr.bf16.mxu0 %v7690_v59  ;;  %2024 = vmatprep.mubr.bf16.mxu1 %v7690_v59 }
 0x2cf   :  { %1954 = vmatpush1.bf16.msra.mxu0 %v6047_v39  ;;  %1995 = vmatpush1.bf16.msra.mxu1 %v6050_v44 }
 0x2d0   :  { %1955 = vmatprep.subr.bf16.mxu0 %v6053_v45  ;;  %1996 = vmatprep.subr.bf16.mxu1 %v6056_v55 }
 0x2d3   :  { %1956 = vmatpush1.bf16.msra.mxu0 %v6059_v47  ;;  %1997 = vmatpush1.bf16.msra.mxu1 %v6062_v49 }
 0x2d4   :  { %1957 = vmatprep.subr.bf16.mxu0 %v6065_v48  ;;  %1998 = vmatprep.subr.bf16.mxu1 %v6068_v50 }
 0x2d7   :  { %1958 = vmatpush1.bf16.msra.mxu0 %v6071_v52  ;;  %1999 = vmatpush1.bf16.msra.mxu1 %v6074_v51 }
 0x2d8   :  { %1959 = vmatprep.subr.bf16.mxu0 %v6077_v54  ;;  %2000 = vmatprep.subr.bf16.mxu1 %v6080_v4 }
 0x2db   :  { %1960 = vmatpush1.bf16.msra.mxu0 %v6083_v40  ;;  %2001 = vmatpush1.bf16.msra.mxu1 %v6086_v24  ;;  %v6101_v40 = vld [vmem:[#allocation7 + $0x24] ss:$16 sps:$4 sm:$0xff]   ;;  %v6104_v24 = vld [vmem:[#allocation7 + $0x2c] ss:$16 sps:$4 sm:$0xff]  }
 0x2dc   :  { %1961 = vmatprep.subr.bf16.mxu0 %v6089_v26  ;;  %2002 = vmatprep.subr.bf16.mxu1 %v6092_v8  ;;  %7767 = vst [vmem:[#allocation27_spill] sm:$0xff] %v6101_v40  ;;  %7768 = vst [vmem:[#allocation28_spill] sm:$0xff] %v6104_v24  ;;  %v6107_v26 = vld [vmem:[#allocation7 + $0x20] ss:$16 sps:$4 sm:$0xff]   ;;  %v6110_v8 = vld [vmem:[#allocation7 + $0x28] ss:$16 sps:$4 sm:$0xff]  }
 0x2dd   :  { %7769 = vst [vmem:[#allocation29_spill] sm:$0xff] %v6107_v26  ;;  %7770 = vst [vmem:[#allocation30_spill] sm:$0xff] %v6110_v8 }
 0x2df   :  { %1962 = vmatpush1.bf16.msra.mxu0 %v6095_v9  ;;  %2003 = vmatpush1.bf16.msra.mxu1 %v6098_v12  ;;  %v6113_v9 = vld [vmem:[#allocation7 + $0x4] ss:$16 sps:$4 sm:$0xff]   ;;  %v6116_v12 = vld [vmem:[#allocation7 + $0xc] ss:$16 sps:$4 sm:$0xff]  }
 0x2e0   :  { %1963 = vmatprep.subr.bf16.mxu0 %v6101_v40  ;;  %2004 = vmatprep.subr.bf16.mxu1 %v6104_v24  ;;  %7771 = vst [vmem:[#allocation31_spill] sm:$0xff] %v6113_v9  ;;  %7772 = vst [vmem:[#allocation32_spill] sm:$0xff] %v6116_v12  ;;  %v6119_v40 = vld [vmem:[#allocation7] ss:$16 sps:$4 sm:$0xff]   ;;  %v6122_v24 = vld [vmem:[#allocation7 + $0x8] ss:$16 sps:$4 sm:$0xff]  }
 0x2e1   :  { %7773 = vst [vmem:[#allocation33_spill] sm:$0xff] %v6119_v40  ;;  %7774 = vst [vmem:[#allocation34_spill] sm:$0xff] %v6122_v24 }
 0x2e3   :  { %1964 = vmatpush1.bf16.msra.mxu0 %v6107_v26  ;;  %2005 = vmatpush1.bf16.msra.mxu1 %v6110_v8  ;;  %v1949_v26 = vpack.c.b16 %v6031_v18, %v6031_v18  ;;  %v6127_v8 = vld [vmem:[#allocation8 + $0xe4] ss:$16 sps:$4 sm:$0xff]   ;;  %v6142_v18 = vld [vmem:[#allocation8 + $0xcc] ss:$16 sps:$4 sm:$0xff]  }
 0x2e4   :  { %1965 = vmatprep.subr.bf16.mxu0 %v6113_v9  ;;  %2006 = vmatprep.subr.bf16.mxu1 %v6116_v12  ;;  %7775 = vst [vmem:[#allocation35_spill] sm:$0xff] %v6127_v8  ;;  %v6130_v9 = vld [vmem:[#allocation8 + $0xec] ss:$16 sps:$4 sm:$0xff]   ;;  %v6133_v12 = vld [vmem:[#allocation8 + $0xe0] ss:$16 sps:$4 sm:$0xff]   ;;  %7780 = vst [vmem:[#allocation40_spill] sm:$0xff] %v6142_v18 }
 0x2e5   :  { %7776 = vst [vmem:[#allocation36_spill] sm:$0xff] %v6130_v9  ;;  %7777 = vst [vmem:[#allocation37_spill] sm:$0xff] %v6133_v12 }
 0x2e7   :  { %1966 = vmatpush1.bf16.msra.mxu0 %v6119_v40  ;;  %2007 = vmatpush1.bf16.msra.mxu1 %v6122_v24  ;;  %v6136_v40 = vld [vmem:[#allocation8 + $0xe8] ss:$16 sps:$4 sm:$0xff]   ;;  %v6139_v24 = vld [vmem:[#allocation8 + $0xc4] ss:$16 sps:$4 sm:$0xff]  }
 0x2e8   :  { %2132 = vmatprep.subr.bf16.mxu0 %v6127_v8  ;;  %2173 = vmatprep.subr.bf16.mxu1 %v6130_v9  ;;  %7778 = vst [vmem:[#allocation38_spill] sm:$0xff] %v6136_v40  ;;  %7779 = vst [vmem:[#allocation39_spill] sm:$0xff] %v6139_v24  ;;  %v6145_v8 = vld [vmem:[#allocation8 + $0xc0] ss:$16 sps:$4 sm:$0xff]  }
 0x2e9   :  { %7781 = vst [vmem:[#allocation41_spill] sm:$0xff] %v6145_v8 }
 0x2ea   :  { %1984 = vmatmul.mubr.bf16.vlgmr.msra.gmra.mxu0 %v1949_v26  ;;  %2025 = vmatmul.mubr.bf16.vlgmr.msra.gmra.mxu1 %v1949_v26  ;;  %v6148_v26 = vld [vmem:[#allocation8 + $0xc8] ss:$16 sps:$4 sm:$0xff]  }
 0x2eb   :  { %2133 = vmatpush1.bf16.msra.mxu0 %v6133_v12  ;;  %2174 = vmatpush1.bf16.msra.mxu1 %v6136_v40  ;;  %7782 = vst [vmem:[#allocation42_spill] sm:$0xff] %v6148_v26  ;;  %v6151_v12 = vld [vmem:[#allocation8 + $0xa4] ss:$16 sps:$4 sm:$0xff]   ;;  %v6154_v40 = vld [vmem:[#allocation8 + $0xac] ss:$16 sps:$4 sm:$0xff]  }
 0x2ec   :  { %2134 = vmatprep.subr.bf16.mxu0 %v6139_v24  ;;  %2175 = vmatprep.subr.bf16.mxu1 %v6142_v18  ;;  %7783 = vst [vmem:[#allocation43_spill] sm:$0xff] %v6151_v12  ;;  %7784 = vst [vmem:[#allocation44_spill] sm:$0xff] %v6154_v40  ;;  %v6157_v24 = vld [vmem:[#allocation8 + $0xa0] ss:$16 sps:$4 sm:$0xff]   ;;  %v6160_v18 = vld [vmem:[#allocation8 + $0xa8] ss:$16 sps:$4 sm:$0xff]  }
 0x2ed   :  { %7785 = vst [vmem:[#allocation45_spill] sm:$0xff] %v6157_v24  ;;  %7786 = vst [vmem:[#allocation46_spill] sm:$0xff] %v6160_v18 }
 0x2ef   :  { %2135 = vmatpush1.bf16.msra.mxu0 %v6145_v8  ;;  %2176 = vmatpush1.bf16.msra.mxu1 %v6148_v26  ;;  %v6163_v8 = vld [vmem:[#allocation8 + $0x84] ss:$16 sps:$4 sm:$0xff]   ;;  %v6166_v26 = vld [vmem:[#allocation8 + $0x8c] ss:$16 sps:$4 sm:$0xff]  }
 0x2f0   :  { %2136 = vmatprep.subr.bf16.mxu0 %v6151_v12  ;;  %2177 = vmatprep.subr.bf16.mxu1 %v6154_v40  ;;  %7787 = vst [vmem:[#allocation47_spill] sm:$0xff] %v6163_v8  ;;  %7788 = vst [vmem:[#allocation48_spill] sm:$0xff] %v6166_v26  ;;  %v6169_v12 = vld [vmem:[#allocation8 + $0x80] ss:$16 sps:$4 sm:$0xff]   ;;  %v6172_v40 = vld [vmem:[#allocation8 + $0x88] ss:$16 sps:$4 sm:$0xff]  }
 0x2f1   :  { %7789 = vst [vmem:[#allocation49_spill] sm:$0xff] %v6169_v12  ;;  %7790 = vst [vmem:[#allocation50_spill] sm:$0xff] %v6172_v40 }
 0x2f3   :  { %2137 = vmatpush1.bf16.msra.mxu0 %v6157_v24  ;;  %2178 = vmatpush1.bf16.msra.mxu1 %v6160_v18  ;;  %v6175_v24 = vld [vmem:[#allocation8 + $0x64] ss:$16 sps:$4 sm:$0xff]   ;;  %v6178_v18 = vld [vmem:[#allocation8 + $0x6c] ss:$16 sps:$4 sm:$0xff]  }
 0x2f4   :  { %2138 = vmatprep.subr.bf16.mxu0 %v6163_v8  ;;  %2179 = vmatprep.subr.bf16.mxu1 %v6166_v26  ;;  %7791 = vst [vmem:[#allocation51_spill] sm:$0xff] %v6175_v24  ;;  %7792 = vst [vmem:[#allocation52_spill] sm:$0xff] %v6178_v18  ;;  %v6181_v8 = vld [vmem:[#allocation8 + $0x60] ss:$16 sps:$4 sm:$0xff]   ;;  %v6184_v26 = vld [vmem:[#allocation8 + $0x68] ss:$16 sps:$4 sm:$0xff]  }
 0x2f5   :  { %7793 = vst [vmem:[#allocation53_spill] sm:$0xff] %v6181_v8  ;;  %7794 = vst [vmem:[#allocation54_spill] sm:$0xff] %v6184_v26 }
 0x2f7   :  { %2139 = vmatpush1.bf16.msra.mxu0 %v6169_v12  ;;  %2180 = vmatpush1.bf16.msra.mxu1 %v6172_v40  ;;  %v6187_v12 = vld [vmem:[#allocation8 + $0x44] ss:$16 sps:$4 sm:$0xff]   ;;  %v6190_v40 = vld [vmem:[#allocation8 + $0x4c] ss:$16 sps:$4 sm:$0xff]  }
 0x2f8   :  { %2140 = vmatprep.subr.bf16.mxu0 %v6175_v24  ;;  %2181 = vmatprep.subr.bf16.mxu1 %v6178_v18  ;;  %7795 = vst [vmem:[#allocation55_spill] sm:$0xff] %v6187_v12  ;;  %7796 = vst [vmem:[#allocation56_spill] sm:$0xff] %v6190_v40  ;;  %v6193_v24 = vld [vmem:[#allocation8 + $0x40] ss:$16 sps:$4 sm:$0xff]   ;;  %v6196_v18 = vld [vmem:[#allocation8 + $0x48] ss:$16 sps:$4 sm:$0xff]  }
 0x2f9   :  { %7797 = vst [vmem:[#allocation57_spill] sm:$0xff] %v6193_v24  ;;  %7798 = vst [vmem:[#allocation58_spill] sm:$0xff] %v6196_v18 }
 0x2fb   :  { %2141 = vmatpush1.bf16.msra.mxu0 %v6181_v8  ;;  %2182 = vmatpush1.bf16.msra.mxu1 %v6184_v26  ;;  %v6199_v8 = vld [vmem:[#allocation8 + $0x24] ss:$16 sps:$4 sm:$0xff]   ;;  %v6202_v26 = vld [vmem:[#allocation8 + $0x2c] ss:$16 sps:$4 sm:$0xff]  }
 0x2fc   :  { %2142 = vmatprep.subr.bf16.mxu0 %v6187_v12  ;;  %2183 = vmatprep.subr.bf16.mxu1 %v6190_v40  ;;  %7799 = vst [vmem:[#allocation59_spill] sm:$0xff] %v6199_v8  ;;  %7800 = vst [vmem:[#allocation60_spill] sm:$0xff] %v6202_v26  ;;  %v6205_v12 = vld [vmem:[#allocation8 + $0x20] ss:$16 sps:$4 sm:$0xff]   ;;  %v6208_v40 = vld [vmem:[#allocation8 + $0x28] ss:$16 sps:$4 sm:$0xff]  }
 0x2fd   :  { %7801 = vst [vmem:[#allocation61_spill] sm:$0xff] %v6205_v12  ;;  %7802 = vst [vmem:[#allocation62_spill] sm:$0xff] %v6208_v40 }
 0x2ff   :  { %2143 = vmatpush1.bf16.msra.mxu0 %v6193_v24  ;;  %2184 = vmatpush1.bf16.msra.mxu1 %v6196_v18  ;;  %v6211_v24 = vld [vmem:[#allocation8 + $0x4] ss:$16 sps:$4 sm:$0xff]   ;;  %v6214_v18 = vld [vmem:[#allocation8 + $0xc] ss:$16 sps:$4 sm:$0xff]  }
 0x300   :  { %2144 = vmatprep.subr.bf16.mxu0 %v6199_v8  ;;  %2185 = vmatprep.subr.bf16.mxu1 %v6202_v26  ;;  %7803 = vst [vmem:[#allocation63_spill] sm:$0xff] %v6211_v24  ;;  %7804 = vst [vmem:[#allocation64_spill] sm:$0xff] %v6214_v18  ;;  %v6217_v8 = vld [vmem:[#allocation8] ss:$16 sps:$4 sm:$0xff]   ;;  %v6220_v26 = vld [vmem:[#allocation8 + $0x8] ss:$16 sps:$4 sm:$0xff]  }
 0x301   :  { %7805 = vst [vmem:[#allocation65_spill] sm:$0xff] %v6217_v8  ;;  %7806 = vst [vmem:[#allocation66_spill] sm:$0xff] %v6220_v26 }
 0x303   :  { %2145 = vmatpush1.bf16.msra.mxu0 %v6205_v12  ;;  %2186 = vmatpush1.bf16.msra.mxu1 %v6208_v40  ;;  %v6223_v12 = vld [vmem:[#allocation8 + $0x1e4] ss:$16 sps:$4 sm:$0xff]   ;;  %v6226_v40 = vld [vmem:[#allocation8 + $0x1ec] ss:$16 sps:$4 sm:$0xff]  }
 0x304   :  { %2146 = vmatprep.subr.bf16.mxu0 %v6211_v24  ;;  %2187 = vmatprep.subr.bf16.mxu1 %v6214_v18  ;;  %7807 = vst [vmem:[#allocation67_spill] sm:$0xff] %v6223_v12  ;;  %7808 = vst [vmem:[#allocation68_spill] sm:$0xff] %v6226_v40  ;;  %v6229_v24 = vld [vmem:[#allocation8 + $0x1e0] ss:$16 sps:$4 sm:$0xff]   ;;  %v6232_v18 = vld [vmem:[#allocation8 + $0x1e8] ss:$16 sps:$4 sm:$0xff]  }
 0x305   :  { %7809 = vst [vmem:[#allocation69_spill] sm:$0xff] %v6229_v24  ;;  %7810 = vst [vmem:[#allocation70_spill] sm:$0xff] %v6232_v18 }
 0x307   :  { %2147 = vmatpush1.bf16.msra.mxu0 %v6217_v8  ;;  %2188 = vmatpush1.bf16.msra.mxu1 %v6220_v26  ;;  %v6235_v8 = vld [vmem:[#allocation8 + $0x1c4] ss:$16 sps:$4 sm:$0xff]   ;;  %v6238_v26 = vld [vmem:[#allocation8 + $0x1cc] ss:$16 sps:$4 sm:$0xff]  }
 0x308   :  { %2148 = vmatprep.subr.bf16.mxu0 %v6223_v12  ;;  %2189 = vmatprep.subr.bf16.mxu1 %v6226_v40  ;;  %7811 = vst [vmem:[#allocation71_spill] sm:$0xff] %v6235_v8  ;;  %7812 = vst [vmem:[#allocation72_spill] sm:$0xff] %v6238_v26  ;;  %v6241_v12 = vld [vmem:[#allocation8 + $0x1c0] ss:$16 sps:$4 sm:$0xff]   ;;  %v6244_v40 = vld [vmem:[#allocation8 + $0x1c8] ss:$16 sps:$4 sm:$0xff]  }
 0x309   :  { %7813 = vst [vmem:[#allocation73_spill] sm:$0xff] %v6241_v12  ;;  %7814 = vst [vmem:[#allocation74_spill] sm:$0xff] %v6244_v40 }
 0x30b   :  { %2149 = vmatpush2.bf16.msra.mxu0 %v6229_v24  ;;  %2190 = vmatpush2.bf16.msra.mxu1 %v6232_v18  ;;  %v6247_v24 = vld [vmem:[#allocation8 + $0x1a4] ss:$16 sps:$4 sm:$0xff]   ;;  %v6250_v18 = vld [vmem:[#allocation8 + $0x1ac] ss:$16 sps:$4 sm:$0xff]  }
 0x30c   :  { %2150 = vmatprep.subr.bf16.mxu0 %v6235_v8  ;;  %2191 = vmatprep.subr.bf16.mxu1 %v6238_v26  ;;  %7815 = vst [vmem:[#allocation75_spill] sm:$0xff] %v6247_v24  ;;  %7816 = vst [vmem:[#allocation76_spill] sm:$0xff] %v6250_v18  ;;  %v6253_v8 = vld [vmem:[#allocation8 + $0x1a0] ss:$16 sps:$4 sm:$0xff]   ;;  %v6256_v26 = vld [vmem:[#allocation8 + $0x1a8] ss:$16 sps:$4 sm:$0xff]  }
 0x30d   :  { %7817 = vst [vmem:[#allocation16_spill] sm:$0xff] %v6253_v8  ;;  %7818 = vst [vmem:[#allocation78_spill] sm:$0xff] %v6256_v26 }
 0x30f   :  { %2151 = vmatpush2.bf16.msra.mxu0 %v6241_v12  ;;  %2192 = vmatpush2.bf16.msra.mxu1 %v6244_v40 }
 0x310   :  { %2152 = vmatprep.subr.bf16.mxu0 %v6247_v24  ;;  %2193 = vmatprep.subr.bf16.mxu1 %v6250_v18 }
 0x313   :  { %2153 = vmatpush2.bf16.msra.mxu0 %v6253_v8  ;;  %2194 = vmatpush2.bf16.msra.mxu1 %v6256_v26 }
 0x314   :  { %2154 = vmatprep.subr.bf16.mxu0 %v7731_v13  ;;  %2195 = vmatprep.subr.bf16.mxu1 %v7732_v63  ;;  %v6280_v13 = vld [vmem:[#allocation7 + $0xec] ss:$16 sps:$4 sm:$0xff]  }
 0x315   :  { %7819 = vst [vmem:[#allocation77_spill] sm:$0xff] %v6280_v13 }
 0x317   :  { %2155 = vmatpush2.bf16.msra.mxu0 %v7733_v61  ;;  %2196 = vmatpush2.bf16.msra.mxu1 %v7734_v58 }
 0x318   :  { %2156 = vmatprep.subr.bf16.mxu0 %v7735_v5  ;;  %2197 = vmatprep.subr.bf16.mxu1 %v7736_v22 }
 0x31b   :  { %2157 = vmatpush2.bf16.msra.mxu0 %v7737_v15  ;;  %2198 = vmatpush2.bf16.msra.mxu1 %v7738_v17 }
 0x31c   :  { %2158 = vmatprep.subr.bf16.mxu0 %v7739_v19  ;;  %2199 = vmatprep.subr.bf16.mxu1 %v7740_v21 }
 0x31f   :  { %2159 = vmatpush2.bf16.msra.mxu0 %v7741_v23  ;;  %2200 = vmatpush2.bf16.msra.mxu1 %v7742_v25 }
 0x320   :  { %2160 = vmatprep.subr.bf16.mxu0 %v7743_v27  ;;  %2201 = vmatprep.subr.bf16.mxu1 %v7744_v28 }
 0x323   :  { %2161 = vmatpush2.bf16.msra.mxu0 %v7745_v30  ;;  %2202 = vmatpush2.bf16.msra.mxu1 %v7746_v31 }
 0x324   :  { %2162 = vmatprep.subr.bf16.mxu0 %v7747_v32  ;;  %2203 = vmatprep.subr.bf16.mxu1 %v7748_v33 }
 0x327   :  { %2163 = vmatpush2.bf16.msra.mxu0 %v7749_v34  ;;  %2204 = vmatpush2.bf16.msra.mxu1 %v7750_v35 }
 0x328   :  { %2249 = vmatprep.subr.bf16.mxu0 %v5968_v36  ;;  %2290 = vmatprep.subr.bf16.mxu1 %v6280_v13 }
 0x38a   :  { %v1869_v63 = vpop.f32.mrf.mxu0  ;;  %v1910_v61 = vpop.f32.mrf.mxu1 }
 0x38b   :  { %v1870_v58 = vadd.f32 %v1869_v63, %v5979_v42  ;;  %v1911_v28 = vadd.f32 %v1910_v61, %v5989_v57 }
 0x38c   :  { %v1871_v5 = vpop.f32.mrf.mxu0  ;;  %v1912_v22 = vpop.f32.mrf.mxu1 }
 0x38d   :  { %v4351_v15 = vmul.f32 -1.442695, %v1870_v58  ;;  %v1872_v17 = vadd.f32 %v1871_v5, %v5982_v43  ;;  %v4353_v30 = vmul.f32 -1.442695, %v1911_v28  ;;  %v1913_v32 = vadd.f32 %v1912_v22, %v5995_v3 }
 0x38e   :  { %v1873_v19 = vpop.f32.mrf.mxu0  ;;  %v1914_v21 = vpop.f32.mrf.mxu1 }
 0x38f   :  { %4804 = vpow2.f32 %v4351_v15  ;;  %v4352_v23 = vmul.f32 -1.442695, %v1872_v17 }
 0x390   :  { %v1874_v25 = vpop.f32.mrf.mxu0  ;;  %v1915_v27 = vpop.f32.mrf.mxu1 }
 0x391   :  { %4806 = vpow2.f32 %v4352_v23 }
 0x392   :  { %4808 = vpow2.f32 %v4353_v30 }
 0x39c   :  { %v4805_v31 = vpop.eup %4804 }
 0x39d   :  { %v1926_v33 = vadd.f32 1.0, %v4805_v31 }
 0x39e   :  { %v4807_v34 = vpop.eup %4806 }
 0x39f   :  { %4810 = vrcp.f32 %v1926_v33  ;;  %v1927_v35 = vadd.f32 1.0, %v4807_v34  ;;  %v4809_v63 = vpop.eup %4808 }
 0x3a0   :  { %4812 = vtanh.f32 %v1913_v32  ;;  %v1928_v21 = vadd.f32 1.0, %v4809_v63 }
 0x3a1   :  { %4814 = vrcp.f32 %v1927_v35 }
 0x3a2   :  { %4816 = vrcp.f32 %v1928_v21 }
 0x3aa   :  { %v1985_v58 = vpop.f32.mrf.mxu0  ;;  %v2026_v5 = vpop.f32.mrf.mxu1 }
 0x3ab   :  { %v2037_v15 = vrot.slane %v1985_v58, 6  ;;  %v2041_v17 = vrot.slane %v1985_v58, 7 }
 0x3ac   :  { %v4811_v19 = vpop.eup %4810  ;;  %v1987_v23 = vpop.f32.mrf.mxu0 }
 0x3ad   :  { %v2028_v61 = vpop.f32.mrf.mxu1  ;;  %v4813_v25 = vpop.eup %4812  ;;  %v2053_v27 = vadd.f32 %v2037_v15, %v5832_v60  ;;  %v2057_v22 = vadd.f32 %v2041_v17, %v5837_v11  ;;  %v2038_v30 = vrot.slane %v1987_v23, 6  ;;  %v2042_v31 = vrot.slane %v1987_v23, 7 }
 0x3ae   :  { %v4815_v28 = vpop.eup %4814  ;;  %v1989_v33 = vpop.f32.mrf.mxu0  ;;  %v1937_v35 = vmul.f32 %v4813_v25, %v4811_v19  ;;  %v2040_v25 = vrot.slane %v2028_v61, 6 }
 0x3af   :  { %v2030_v32 = vpop.f32.mrf.mxu1  ;;  %v1936_v34 = vmul.f32 %v4815_v28, %v6002_v1  ;;  %v4354_v3 = vmul.f32 -1.442695, %v2053_v27  ;;  %v4357_v57 = vmul.f32 -1.442695, %v2057_v22  ;;  %v2054_v63 = vadd.f32 %v2038_v30, %v7760_v14 }
 0x3b0   :  { %v2058_v58 = vadd.f32 %v2042_v31, %v7759_v53  ;;  %v1990_v43 = vpop.f32.mrf.mxu0  ;;  %v2039_v33 = vrot.slane %v2026_v5, 6  ;;  %v2043_v1 = vrot.slane %v2026_v5, 7  ;;  %v2044_v27 = vrot.slane %v2028_v61, 7 }
 0x3b1   :  { %v2031_v42 = vpop.f32.mrf.mxu1  ;;  %v6292_v15 = vadd.f32 %v1937_v35, %v1936_v34  ;;  %4818 = vpow2.f32 %v4354_v3  ;;  %v4355_v17 = vmul.f32 -1.442695, %v2054_v63 }
 0x3b2   :  { %4820 = vpow2.f32 %v4357_v57  ;;  %v4358_v23 = vmul.f32 -1.442695, %v2058_v58  ;;  %v2055_v19 = vadd.f32 %v2039_v33, %v5852_v2  ;;  %v2059_v21 = vadd.f32 %v2043_v1, %v5854_v62  ;;  %v4817_v42 = vpop.eup %4816 }
 0x3b3   :  { %4822 = vtanh.f32 %v6292_v15  ;;  %v2056_v57 = vadd.f32 %v2040_v25, %v5858_v0  ;;  %v2060_v30 = vadd.f32 %v2044_v27, %v5860_v29 }
 0x3b4   :  { %4824 = vpow2.f32 %v4355_v17  ;;  %v4356_v43 = vmul.f32 -1.442695, %v2055_v19  ;;  %v4359_v22 = vmul.f32 -1.442695, %v2059_v21 }
 0x3b5   :  { %4826 = vpow2.f32 %v4358_v23 }
 0x3b6   :  { %4828 = vpow2.f32 %v4356_v43 }
 0x3b7   :  { %4830 = vpow2.f32 %v4359_v22 }
 0x3b8   :  { %4832 = vtanh.f32 %v2056_v57 }
 0x3b9   :  { %4834 = vtanh.f32 %v2060_v30 }
 0x3be   :  { %v4819_v28 = vpop.eup %4818 }
 0x3bf   :  { %v4821_v3 = vpop.eup %4820  ;;  %v2079_v32 = vadd.f32 1.0, %v4819_v28 }
 0x3c0   :  { %v4823_v31 = vpop.eup %4822  ;;  %v2082_v5 = vadd.f32 1.0, %v4821_v3 }
 0x3c1   :  { %v1940_v34 = vmul.f32 %v4823_v31, %v4817_v42  ;;  %v4825_v35 = vpop.eup %4824  ;;  %4836 = vrcp.f32 %v2079_v32  ;;  %v7820_v42 = vrot.slane %v6013_v37, %v6010_v10 }
 0x3c2   :  { %v4827_v58 = vpop.eup %4826  ;;  %v2080_v17 = vadd.f32 1.0, %v4825_v35  ;;  %4838 = vrcp.f32 %v2082_v5 }
 0x3c3   :  { %v2122_v63 = vrot.slane %v1940_v34, 6  ;;  %v3793_v61 = vrot.slane %v1940_v34, %v6010_v10  ;;  %v2083_v23 = vadd.f32 1.0, %v4827_v58  ;;  %v4829_v57 = vpop.eup %4828  ;;  %v2101_v34 = vrot.slane %v6024_v16, 7 }
 0x3c4   :  { %4840 = vrcp.f32 %v2080_v17  ;;  %v4831_v3 = vpop.eup %4830  ;;  %v2081_v35 = vadd.f32 1.0, %v4829_v57 }
 0x3c5   :  { %v2125_v33 = vpack.c.bf16 %v2122_v63, %v2122_v63  ;;  %v3794_v1 = vcombine.high %v3793_v61, %v3793_v61  ;;  %v3801_v19 = vrot.slane %v3793_v61, %v6010_v10  ;;  %4842 = vrcp.f32 %v2083_v23  ;;  %v4833_v30 = vpop.eup %4832 }
 0x3c6   :  { %v4835_v31 = vpop.eup %4834  ;;  %v2102_v61 = vrot.slane %v6026_v38, 7  ;;  %v2084_v58 = vadd.f32 1.0, %v4831_v3  ;;  %4844 = vrcp.f32 %v2081_v35 }
 0x3c7   :  { %v2129_v21 = vrot.slane %v2125_v33, 1  ;;  %v3808_v25 = vrot.slane %v3794_v1, %v6010_v10  ;;  %v3945_v27 = vrot.slane %v3801_v19, %v5824_v20 }
 0x3c8   :  { %4846 = vrcp.f32 %v2084_v58  ;;  %v7821_v58 = vld [vmem:[#allocation21_spill] sm:$0xff] }
 0x3c9   :  { %2164 = vmatprep.mubr.bf16.mxu0 %v2129_v21  ;;  %v3949_v43 = vrot.slane %v3808_v25, %v5824_v20  ;;  %2205 = vmatprep.mubr.bf16.mxu1 %v2129_v21  ;;  %v6307_v22 = vsel %vm4012_vm3, %v7820_v42, %v3945_v27 }
 0x3cb   :  { %v6310_v28 = vsel %vm4012_vm3, %v6020_v41, %v3949_v43 }
 0x3ce   :  { %v4837_v32 = vpop.eup %4836 }
 0x3cf   :  { %v4839_v5 = vpop.eup %4838  ;;  %v2107_v23 = vmul.f32 %v4837_v32, %v4833_v30 }
 0x3d0   :  { %v2108_v1 = vmul.f32 %v4839_v5, %v4835_v31 }
 0x3d1   :  { %v4841_v63 = vpop.eup %4840 }
 0x3d2   :  { %v4843_v17 = vpop.eup %4842  ;;  %v2105_v37 = vmul.f32 %v4841_v63, %v2101_v34 }
 0x3d3   :  { %v2106_v33 = vmul.f32 %v4843_v17, %v2102_v61  ;;  %v4845_v16 = vpop.eup %4844  ;;  %v7822_v17 = vld [vmem:[#allocation22_spill] sm:$0xff] }
 0x3d4   :  { %v6314_v41 = vadd.f32 %v2107_v23, %v2105_v37  ;;  %v7823_v37 = vld [vmem:[#allocation23_spill] sm:$0xff]  ;;  %v7824_v23 = vld [vmem:[#allocation24_spill] sm:$0xff] }
 0x3d5   :  { %v6316_v19 = vadd.f32 %v2108_v1, %v2106_v33  ;;  %v4847_v21 = vpop.eup %4846  ;;  %v7825_v33 = vld [vmem:[#allocation25_spill] sm:$0xff]  ;;  %v7826_v1 = vld [vmem:[#allocation26_spill] sm:$0xff] }
 0x3d6   :  { %4848 = vtanh.f32 %v6314_v41 }
 0x3d7   :  { %4850 = vtanh.f32 %v6316_v19 }
 0x3e3   :  { %v4849_v25 = vpop.eup %4848 }
 0x3e4   :  { %v4851_v38 = vpop.eup %4850  ;;  %v2113_v27 = vmul.f32 %v4849_v25, %v4845_v16  ;;  %v7827_v16 = vld [vmem:[#allocation27_spill] sm:$0xff]  ;;  %v7829_v25 = vld [vmem:[#allocation29_spill] sm:$0xff] }
 0x3e5   :  { %v2114_v43 = vmul.f32 %v4851_v38, %v4847_v21  ;;  %v7828_v21 = vld [vmem:[#allocation28_spill] sm:$0xff]  ;;  %v7830_v38 = vld [vmem:[#allocation30_spill] sm:$0xff] }
 0x3e6   :  { %v2238_v42 = vpack.c.bf16 %v2113_v27, %v2113_v27 }
 0x3e7   :  { %v2117_v57 = vrot.slane %v2114_v43, 7  ;;  %v2239_v3 = vpack.c.bf16 %v2114_v43, %v2114_v43  ;;  %v7832_v43 = vld [vmem:[#allocation32_spill] sm:$0xff] }
 0x3e8   :  { %v2242_v30 = vunpack.c.l.b16 %v2238_v42  ;;  %v7833_v42 = vld [vmem:[#allocation33_spill] sm:$0xff] }
 0x3e9   :  { %v2119_v31 = vsel %vm2118_vm4, %v2117_v57, %v2113_v27  ;;  %v2243_v32 = vunpack.c.l.b16 %v2239_v3  ;;  %v7831_v27 = vld [vmem:[#allocation31_spill] sm:$0xff]  ;;  %v7834_v57 = vld [vmem:[#allocation34_spill] sm:$0xff] }
 0x3ea   :  { %v2124_v5 = vpack.c.bf16 %v2119_v31, %v2119_v31  ;;  %v2244_v34 = vrot.slane %v2242_v30, 2  ;;  %v7835_v30 = vld [vmem:[#allocation35_spill] sm:$0xff]  ;;  %v7836_v31 = vld [vmem:[#allocation37_spill] sm:$0xff] }
 0x3eb   :  { %v2245_v35 = vrot.slane %v2243_v32, 1  ;;  %v7837_v32 = vld [vmem:[#allocation38_spill] sm:$0xff] }
 0x3ec   :  { %v2128_v63 = vrot.slane %v2124_v5, 1  ;;  %v7838_v5 = vld [vmem:[#allocation39_spill] sm:$0xff] }
 0x3ed   :  { %v2246_v61 = vsel %vm1207_vm1, %v2245_v35, %v2244_v34  ;;  %v7839_v34 = vld [vmem:[#allocation40_spill] sm:$0xff]  ;;  %v7840_v35 = vld [vmem:[#allocation41_spill] sm:$0xff] }
 0x3ee   :  { %2165 = vmatmul.mubr.bf16.vlgmr.msra.gmra.mxu0 %v2128_v63  ;;  %2206 = vmatmul.mubr.bf16.vlgmr.msra.gmra.mxu1 %v2128_v63  ;;  %v2247_v3 = vpack.c.b16 %v2246_v61, %v2246_v61  ;;  %v7841_v63 = vld [vmem:[#allocation42_spill] sm:$0xff]  ;;  %v7843_v61 = vld [vmem:[#allocation44_spill] sm:$0xff] }
 0x3ef   :  { %2250 = vmatpush1.bf16.msra.mxu0 %v6033_v6  ;;  %2291 = vmatpush1.bf16.msra.mxu1 %v6036_v7 }
 0x3f0   :  { %2251 = vmatprep.subr.bf16.mxu0 %v6039_v46  ;;  %2292 = vmatprep.subr.bf16.mxu1 %v6042_v56 }
 0x3f1   :  { %2281 = vmatprep.mubr.bf16.mxu0 %v7690_v59  ;;  %2322 = vmatprep.mubr.bf16.mxu1 %v7690_v59 }
 0x3f3   :  { %2252 = vmatpush1.bf16.msra.mxu0 %v6047_v39  ;;  %2293 = vmatpush1.bf16.msra.mxu1 %v6050_v44 }
 0x3f4   :  { %2253 = vmatprep.subr.bf16.mxu0 %v6053_v45  ;;  %2294 = vmatprep.subr.bf16.mxu1 %v6056_v55 }
 0x3f7   :  { %2254 = vmatpush1.bf16.msra.mxu0 %v6059_v47  ;;  %2295 = vmatpush1.bf16.msra.mxu1 %v6062_v49 }
 0x3f8   :  { %2255 = vmatprep.subr.bf16.mxu0 %v6065_v48  ;;  %2296 = vmatprep.subr.bf16.mxu1 %v6068_v50 }
 0x3fb   :  { %2256 = vmatpush1.bf16.msra.mxu0 %v6071_v52  ;;  %2297 = vmatpush1.bf16.msra.mxu1 %v6074_v51 }
 0x3fc   :  { %2257 = vmatprep.subr.bf16.mxu0 %v6077_v54  ;;  %2298 = vmatprep.subr.bf16.mxu1 %v6080_v4 }
 0x3ff   :  { %2258 = vmatpush1.bf16.msra.mxu0 %v7821_v58  ;;  %2299 = vmatpush1.bf16.msra.mxu1 %v7822_v17 }
 0x400   :  { %2259 = vmatprep.subr.bf16.mxu0 %v7823_v37  ;;  %2300 = vmatprep.subr.bf16.mxu1 %v7824_v23 }
 0x403   :  { %2260 = vmatpush1.bf16.msra.mxu0 %v7825_v33  ;;  %2301 = vmatpush1.bf16.msra.mxu1 %v7826_v1 }
 0x404   :  { %2261 = vmatprep.subr.bf16.mxu0 %v7827_v16  ;;  %2302 = vmatprep.subr.bf16.mxu1 %v7828_v21 }
 0x407   :  { %2262 = vmatpush1.bf16.msra.mxu0 %v7829_v25  ;;  %2303 = vmatpush1.bf16.msra.mxu1 %v7830_v38 }
 0x408   :  { %2263 = vmatprep.subr.bf16.mxu0 %v7831_v27  ;;  %2304 = vmatprep.subr.bf16.mxu1 %v7832_v43 }
 0x40b   :  { %2264 = vmatpush1.bf16.msra.mxu0 %v7833_v42  ;;  %2305 = vmatpush1.bf16.msra.mxu1 %v7834_v57  ;;  %v7842_v57 = vld [vmem:[#allocation43_spill] sm:$0xff] }
 0x40c   :  { %2442 = vmatprep.subr.bf16.mxu0 %v7835_v30  ;;  %2483 = vmatprep.subr.bf16.mxu1 %v6130_v9  ;;  %v7844_v30 = vld [vmem:[#allocation45_spill] sm:$0xff]  ;;  %v7845_v9 = vld [vmem:[#allocation46_spill] sm:$0xff] }
 0x40e   :  { %2282 = vmatmul.mubr.bf16.vlgmr.msra.gmra.mxu0 %v2247_v3  ;;  %2323 = vmatmul.mubr.bf16.vlgmr.msra.gmra.mxu1 %v2247_v3  ;;  %v7846_v3 = vld [vmem:[#allocation47_spill] sm:$0xff] }
 0x40f   :  { %2443 = vmatpush1.bf16.msra.mxu0 %v7836_v31  ;;  %2484 = vmatpush1.bf16.msra.mxu1 %v7837_v32  ;;  %v7847_v31 = vld [vmem:[#allocation48_spill] sm:$0xff]  ;;  %v7848_v32 = vld [vmem:[#allocation49_spill] sm:$0xff] }
 0x410   :  { %2444 = vmatprep.subr.bf16.mxu0 %v7838_v5  ;;  %2485 = vmatprep.subr.bf16.mxu1 %v7839_v34  ;;  %v7849_v5 = vld [vmem:[#allocation50_spill] sm:$0xff]  ;;  %v7850_v34 = vld [vmem:[#allocation51_spill] sm:$0xff] }
 0x413   :  { %2445 = vmatpush1.bf16.msra.mxu0 %v7840_v35  ;;  %2486 = vmatpush1.bf16.msra.mxu1 %v7841_v63  ;;  %v7851_v35 = vld [vmem:[#allocation52_spill] sm:$0xff]  ;;  %v7852_v63 = vld [vmem:[#allocation53_spill] sm:$0xff] }
 0x414   :  { %2446 = vmatprep.subr.bf16.mxu0 %v7842_v57  ;;  %2487 = vmatprep.subr.bf16.mxu1 %v7843_v61  ;;  %v7853_v57 = vld [vmem:[#allocation54_spill] sm:$0xff]  ;;  %v7854_v61 = vld [vmem:[#allocation55_spill] sm:$0xff] }
 0x417   :  { %2447 = vmatpush1.bf16.msra.mxu0 %v7844_v30  ;;  %2488 = vmatpush1.bf16.msra.mxu1 %v7845_v9  ;;  %v7855_v30 = vld [vmem:[#allocation56_spill] sm:$0xff]  ;;  %v7856_v9 = vld [vmem:[#allocation57_spill] sm:$0xff] }
 0x418   :  { %2448 = vmatprep.subr.bf16.mxu0 %v7846_v3  ;;  %2489 = vmatprep.subr.bf16.mxu1 %v7847_v31  ;;  %v7857_v3 = vld [vmem:[#allocation58_spill] sm:$0xff]  ;;  %v7858_v31 = vld [vmem:[#allocation59_spill] sm:$0xff] }
 0x41b   :  { %2449 = vmatpush1.bf16.msra.mxu0 %v7848_v32  ;;  %2490 = vmatpush1.bf16.msra.mxu1 %v7849_v5  ;;  %v7859_v32 = vld [vmem:[#allocation60_spill] sm:$0xff]  ;;  %v7860_v5 = vld [vmem:[#allocation61_spill] sm:$0xff] }
 0x41c   :  { %2450 = vmatprep.subr.bf16.mxu0 %v7850_v34  ;;  %2491 = vmatprep.subr.bf16.mxu1 %v7851_v35  ;;  %v7861_v34 = vld [vmem:[#allocation62_spill] sm:$0xff]  ;;  %v7862_v35 = vld [vmem:[#allocation63_spill] sm:$0xff] }
 0x41f   :  { %2451 = vmatpush1.bf16.msra.mxu0 %v7852_v63  ;;  %2492 = vmatpush1.bf16.msra.mxu1 %v7853_v57  ;;  %v7863_v63 = vld [vmem:[#allocation64_spill] sm:$0xff]  ;;  %v7864_v57 = vld [vmem:[#allocation65_spill] sm:$0xff] }
 0x420   :  { %2452 = vmatprep.subr.bf16.mxu0 %v7854_v61  ;;  %2493 = vmatprep.subr.bf16.mxu1 %v7855_v30  ;;  %v7865_v61 = vld [vmem:[#allocation66_spill] sm:$0xff]  ;;  %v7866_v30 = vld [vmem:[#allocation67_spill] sm:$0xff] }
 0x423   :  { %2453 = vmatpush1.bf16.msra.mxu0 %v7856_v9  ;;  %2494 = vmatpush1.bf16.msra.mxu1 %v7857_v3  ;;  %v7867_v9 = vld [vmem:[#allocation68_spill] sm:$0xff]  ;;  %v7868_v3 = vld [vmem:[#allocation69_spill] sm:$0xff] }
 0x424   :  { %2454 = vmatprep.subr.bf16.mxu0 %v7858_v31  ;;  %2495 = vmatprep.subr.bf16.mxu1 %v7859_v32  ;;  %v7869_v31 = vld [vmem:[#allocation70_spill] sm:$0xff]  ;;  %v7870_v32 = vld [vmem:[#allocation71_spill] sm:$0xff] }
 0x427   :  { %2455 = vmatpush1.bf16.msra.mxu0 %v7860_v5  ;;  %2496 = vmatpush1.bf16.msra.mxu1 %v7861_v34  ;;  %v7871_v5 = vld [vmem:[#allocation72_spill] sm:$0xff] }
 0x428   :  { %2456 = vmatprep.subr.bf16.mxu0 %v7862_v35  ;;  %2497 = vmatprep.subr.bf16.mxu1 %v7863_v63  ;;  %v7895_v34 = vld [vmem:[#allocation20_spill] sm:$0xff] }
 0x42b   :  { %2457 = vmatpush1.bf16.msra.mxu0 %v7864_v57  ;;  %2498 = vmatpush1.bf16.msra.mxu1 %v7865_v61 }
 0x42c   :  { %2458 = vmatprep.subr.bf16.mxu0 %v7866_v30  ;;  %2499 = vmatprep.subr.bf16.mxu1 %v7867_v9  ;;  %v6397_v9 = vld [vmem:[#allocation8 + $0x184] ss:$16 sps:$4 sm:$0xff]  }
 0x42d   :  { %7872 = vst [vmem:[#allocation21_spill] sm:$0xff] %v6397_v9 }
 0x42f   :  { %2459 = vmatpush2.bf16.msra.mxu0 %v7868_v3  ;;  %2500 = vmatpush2.bf16.msra.mxu1 %v7869_v31  ;;  %v6400_v31 = vld [vmem:[#allocation8 + $0x18c] ss:$16 sps:$4 sm:$0xff]  }
 0x430   :  { %2460 = vmatprep.subr.bf16.mxu0 %v7870_v32  ;;  %2501 = vmatprep.subr.bf16.mxu1 %v7871_v5  ;;  %7873 = vst [vmem:[#allocation22_spill] sm:$0xff] %v6400_v31  ;;  %v6403_v5 = vld [vmem:[#allocation8 + $0x180] ss:$16 sps:$4 sm:$0xff]  }
 0x431   :  { %7874 = vst [vmem:[#allocation23_spill] sm:$0xff] %v6403_v5 }
 0x433   :  { %2461 = vmatpush2.bf16.msra.mxu0 %v6241_v12  ;;  %2502 = vmatpush2.bf16.msra.mxu1 %v6244_v40  ;;  %v6406_v40 = vld [vmem:[#allocation8 + $0x188] ss:$16 sps:$4 sm:$0xff]  }
 0x434   :  { %2462 = vmatprep.subr.bf16.mxu0 %v6247_v24  ;;  %2503 = vmatprep.subr.bf16.mxu1 %v6250_v18  ;;  %7875 = vst [vmem:[#allocation24_spill] sm:$0xff] %v6406_v40  ;;  %v6409_v18 = vld [vmem:[#allocation8 + $0x164] ss:$16 sps:$4 sm:$0xff]  }
 0x435   :  { %7876 = vst [vmem:[#allocation25_spill] sm:$0xff] %v6409_v18 }
 0x437   :  { %2463 = vmatpush2.bf16.msra.mxu0 %v6253_v8  ;;  %2504 = vmatpush2.bf16.msra.mxu1 %v6256_v26  ;;  %v6412_v26 = vld [vmem:[#allocation8 + $0x16c] ss:$16 sps:$4 sm:$0xff]  }
 0x438   :  { %2464 = vmatprep.subr.bf16.mxu0 %v6397_v9  ;;  %2505 = vmatprep.subr.bf16.mxu1 %v6400_v31  ;;  %7877 = vst [vmem:[#allocation26_spill] sm:$0xff] %v6412_v26  ;;  %v6415_v9 = vld [vmem:[#allocation8 + $0x160] ss:$16 sps:$4 sm:$0xff]   ;;  %v6418_v31 = vld [vmem:[#allocation8 + $0x168] ss:$16 sps:$4 sm:$0xff]  }
 0x439   :  { %7878 = vst [vmem:[#allocation27_spill] sm:$0xff] %v6415_v9  ;;  %7879 = vst [vmem:[#allocation28_spill] sm:$0xff] %v6418_v31  ;;  %v7892_v8 = vld [vmem:[#allocation17_spill] sm:$0xff] }
 0x43b   :  { %2465 = vmatpush2.bf16.msra.mxu0 %v6403_v5  ;;  %2506 = vmatpush2.bf16.msra.mxu1 %v6406_v40  ;;  %v6421_v5 = vld [vmem:[#allocation8 + $0x144] ss:$16 sps:$4 sm:$0xff]   ;;  %v6424_v40 = vld [vmem:[#allocation8 + $0x14c] ss:$16 sps:$4 sm:$0xff]  }
 0x43c   :  { %2466 = vmatprep.subr.bf16.mxu0 %v6409_v18  ;;  %2507 = vmatprep.subr.bf16.mxu1 %v6412_v26  ;;  %7880 = vst [vmem:[#allocation29_spill] sm:$0xff] %v6421_v5  ;;  %7881 = vst [vmem:[#allocation79_spill] sm:$0xff] %v6424_v40  ;;  %v6427_v18 = vld [vmem:[#allocation8 + $0x140] ss:$16 sps:$4 sm:$0xff]   ;;  %v6430_v26 = vld [vmem:[#allocation8 + $0x148] ss:$16 sps:$4 sm:$0xff]  }
 0x43d   :  { %7882 = vst [vmem:[#allocation80_spill] sm:$0xff] %v6427_v18  ;;  %7883 = vst [vmem:[#allocation81_spill] sm:$0xff] %v6430_v26 }
 0x43f   :  { %2467 = vmatpush2.bf16.msra.mxu0 %v6415_v9  ;;  %2508 = vmatpush2.bf16.msra.mxu1 %v6418_v31  ;;  %v6433_v9 = vld [vmem:[#allocation8 + $0x124] ss:$16 sps:$4 sm:$0xff]   ;;  %v6436_v31 = vld [vmem:[#allocation8 + $0x12c] ss:$16 sps:$4 sm:$0xff]  }
 0x440   :  { %2468 = vmatprep.subr.bf16.mxu0 %v6421_v5  ;;  %2509 = vmatprep.subr.bf16.mxu1 %v6424_v40  ;;  %7884 = vst [vmem:[#allocation82_spill] sm:$0xff] %v6433_v9  ;;  %7885 = vst [vmem:[#allocation83_spill] sm:$0xff] %v6436_v31  ;;  %v6439_v5 = vld [vmem:[#allocation8 + $0x120] ss:$16 sps:$4 sm:$0xff]   ;;  %v6442_v40 = vld [vmem:[#allocation8 + $0x128] ss:$16 sps:$4 sm:$0xff]  }
 0x441   :  { %7886 = vst [vmem:[#allocation84_spill] sm:$0xff] %v6439_v5  ;;  %7887 = vst [vmem:[#allocation85_spill] sm:$0xff] %v6442_v40 }
 0x443   :  { %2469 = vmatpush2.bf16.msra.mxu0 %v6427_v18  ;;  %2510 = vmatpush2.bf16.msra.mxu1 %v6430_v26  ;;  %v6445_v18 = vld [vmem:[#allocation8 + $0x104] ss:$16 sps:$4 sm:$0xff]   ;;  %v6448_v26 = vld [vmem:[#allocation8 + $0x10c] ss:$16 sps:$4 sm:$0xff]  }
 0x444   :  { %2470 = vmatprep.subr.bf16.mxu0 %v6433_v9  ;;  %2511 = vmatprep.subr.bf16.mxu1 %v6436_v31  ;;  %7888 = vst [vmem:[#allocation86_spill] sm:$0xff] %v6445_v18  ;;  %7889 = vst [vmem:[#allocation87_spill] sm:$0xff] %v6448_v26  ;;  %v6451_v9 = vld [vmem:[#allocation8 + $0x100] ss:$16 sps:$4 sm:$0xff]   ;;  %v6454_v31 = vld [vmem:[#allocation8 + $0x108] ss:$16 sps:$4 sm:$0xff]  }
 0x445   :  { %7890 = vst [vmem:[#allocation88_spill] sm:$0xff] %v6451_v9  ;;  %7891 = vst [vmem:[#allocation89_spill] sm:$0xff] %v6454_v31 }
 0x447   :  { %2471 = vmatpush2.bf16.msra.mxu0 %v6439_v5  ;;  %2512 = vmatpush2.bf16.msra.mxu1 %v6442_v40 }
 0x448   :  { %2472 = vmatprep.subr.bf16.mxu0 %v6445_v18  ;;  %2513 = vmatprep.subr.bf16.mxu1 %v6448_v26  ;;  %v7893_v26 = vld [vmem:[#allocation18_spill] sm:$0xff] }
 0x44b   :  { %2473 = vmatpush2.bf16.msra.mxu0 %v6451_v9  ;;  %2514 = vmatpush2.bf16.msra.mxu1 %v6454_v31  ;;  %v7894_v31 = vld [vmem:[#allocation19_spill] sm:$0xff] }
 0x44c   :  { %2559 = vmatprep.subr.bf16.mxu0 %v5968_v36  ;;  %2600 = vmatprep.subr.bf16.mxu1 %v6280_v13 }
 0x4ae   :  { %v2166_v40 = vpop.f32.mrf.mxu0  ;;  %v2207_v5 = vpop.f32.mrf.mxu1 }
 0x4af   :  { %v2167_v18 = vadd.f32 %v2166_v40, %v7892_v8  ;;  %v2208_v36 = vadd.f32 %v2207_v5, %v7894_v31 }
 0x4b0   :  { %v2168_v24 = vpop.f32.mrf.mxu0  ;;  %v2209_v12 = vpop.f32.mrf.mxu1 }
 0x4b1   :  { %v4360_v32 = vmul.f32 -1.442695, %v2167_v18  ;;  %v2169_v3 = vadd.f32 %v2168_v24, %v7893_v26  ;;  %v4362_v35 = vmul.f32 -1.442695, %v2208_v36  ;;  %v2210_v42 = vadd.f32 %v2209_v12, %v7895_v34 }
 0x4b2   :  { %v2170_v30 = vpop.f32.mrf.mxu0  ;;  %v2211_v61 = vpop.f32.mrf.mxu1 }
 0x4b3   :  { %4852 = vpow2.f32 %v4360_v32  ;;  %v4361_v9 = vmul.f32 -1.442695, %v2169_v3 }
 0x4b4   :  { %v2171_v57 = vpop.f32.mrf.mxu0  ;;  %v2212_v63 = vpop.f32.mrf.mxu1 }
 0x4b5   :  { %4854 = vpow2.f32 %v4361_v9 }
 0x4b6   :  { %4856 = vpow2.f32 %v4362_v35 }
 0x4c0   :  { %v4853_v13 = vpop.eup %4852 }
 0x4c1   :  { %v2223_v40 = vadd.f32 1.0, %v4853_v13 }
 0x4c2   :  { %v4855_v8 = vpop.eup %4854 }
 0x4c3   :  { %4858 = vrcp.f32 %v2223_v40  ;;  %v2224_v18 = vadd.f32 1.0, %v4855_v8  ;;  %v4857_v24 = vpop.eup %4856 }
 0x4c4   :  { %4860 = vtanh.f32 %v2210_v42  ;;  %v2225_v9 = vadd.f32 1.0, %v4857_v24 }
 0x4c5   :  { %4862 = vrcp.f32 %v2224_v18 }
 0x4c6   :  { %4864 = vrcp.f32 %v2225_v9 }
 0x4ce   :  { %v2283_v30 = vpop.f32.mrf.mxu0  ;;  %v2324_v32 = vpop.f32.mrf.mxu1 }
 0x4cf   :  { %v2335_v61 = vrot.slane %v2283_v30, 5  ;;  %v2339_v57 = vrot.slane %v2283_v30, 6 }
 0x4d0   :  { %v4859_v63 = vpop.eup %4858  ;;  %v2285_v3 = vpop.f32.mrf.mxu0 }
 0x4d1   :  { %v2326_v5 = vpop.f32.mrf.mxu1  ;;  %v4861_v36 = vpop.eup %4860  ;;  %v2351_v35 = vadd.f32 %v2335_v61, %v5832_v60  ;;  %v2355_v12 = vadd.f32 %v2339_v57, %v5837_v11  ;;  %v2336_v34 = vrot.slane %v2285_v3, 5  ;;  %v2340_v40 = vrot.slane %v2285_v3, 6 }
 0x4d2   :  { %v4863_v13 = vpop.eup %4862  ;;  %v2287_v8 = vpop.f32.mrf.mxu0  ;;  %v2234_v31 = vmul.f32 %v4861_v36, %v4859_v63  ;;  %v2338_v9 = vrot.slane %v2326_v5, 5  ;;  %v2342_v36 = vrot.slane %v2326_v5, 6 }
 0x4d3   :  { %v2328_v42 = vpop.f32.mrf.mxu1  ;;  %v2233_v18 = vmul.f32 %v4863_v13, %v6292_v15  ;;  %v4363_v26 = vmul.f32 -1.442695, %v2351_v35  ;;  %v4366_v43 = vmul.f32 -1.442695, %v2355_v12  ;;  %v2352_v24 = vadd.f32 %v2336_v34, %v7760_v14 }
 0x4d4   :  { %v2356_v30 = vadd.f32 %v2340_v40, %v7759_v53  ;;  %v2288_v27 = vpop.f32.mrf.mxu0  ;;  %v2337_v8 = vrot.slane %v2324_v32, 5  ;;  %v2341_v15 = vrot.slane %v2324_v32, 6  ;;  %v2358_v12 = vadd.f32 %v2342_v36, %v5860_v29 }
 0x4d5   :  { %v2329_v38 = vpop.f32.mrf.mxu1  ;;  %v6468_v61 = vadd.f32 %v2234_v31, %v2233_v18  ;;  %4866 = vpow2.f32 %v4363_v26  ;;  %v4364_v57 = vmul.f32 -1.442695, %v2352_v24  ;;  %v2354_v26 = vadd.f32 %v2338_v9, %v5858_v0 }
 0x4d6   :  { %4868 = vpow2.f32 %v4366_v43  ;;  %v4367_v3 = vmul.f32 -1.442695, %v2356_v30  ;;  %v2353_v63 = vadd.f32 %v2337_v8, %v5852_v2  ;;  %v2357_v34 = vadd.f32 %v2341_v15, %v5854_v62  ;;  %v4865_v38 = vpop.eup %4864 }
 0x4d7   :  { %4870 = vtanh.f32 %v6468_v61 }
 0x4d8   :  { %4872 = vpow2.f32 %v4364_v57  ;;  %v4365_v27 = vmul.f32 -1.442695, %v2353_v63  ;;  %v4368_v31 = vmul.f32 -1.442695, %v2357_v34 }
 0x4d9   :  { %4874 = vpow2.f32 %v4367_v3 }
 0x4da   :  { %4876 = vpow2.f32 %v4365_v27 }
 0x4db   :  { %4878 = vpow2.f32 %v4368_v31 }
 0x4dc   :  { %4880 = vtanh.f32 %v2354_v26 }
 0x4dd   :  { %4882 = vtanh.f32 %v2358_v12 }
 0x4e2   :  { %v4867_v35 = vpop.eup %4866 }
 0x4e3   :  { %v4869_v43 = vpop.eup %4868  ;;  %v2377_v40 = vadd.f32 1.0, %v4867_v35 }
 0x4e4   :  { %v4871_v13 = vpop.eup %4870  ;;  %v2380_v32 = vadd.f32 1.0, %v4869_v43 }
 0x4e5   :  { %v2237_v42 = vmul.f32 %v4871_v13, %v4865_v38  ;;  %v4873_v18 = vpop.eup %4872  ;;  %4884 = vrcp.f32 %v2377_v40 }
 0x4e6   :  { %v4875_v30 = vpop.eup %4874  ;;  %v2378_v57 = vadd.f32 1.0, %v4873_v18  ;;  %4886 = vrcp.f32 %v2380_v32 }
 0x4e7   :  { %v2420_v24 = vrot.slane %v2237_v42, 5  ;;  %v3815_v5 = vrot.slane %v2237_v42, %v6010_v10  ;;  %v2381_v3 = vadd.f32 1.0, %v4875_v30  ;;  %v4877_v13 = vpop.eup %4876 }
 0x4e8   :  { %4888 = vrcp.f32 %v2378_v57  ;;  %v4879_v40 = vpop.eup %4878  ;;  %v2379_v30 = vadd.f32 1.0, %v4877_v13 }
 0x4e9   :  { %v2423_v8 = vpack.c.bf16 %v2420_v24, %v2420_v24  ;;  %v3816_v15 = vcombine.high %v3815_v5, %v3815_v5  ;;  %v3823_v63 = vrot.slane %v3815_v5, %v6010_v10  ;;  %4890 = vrcp.f32 %v2381_v3  ;;  %v4881_v32 = vpop.eup %4880 }
 0x4ea   :  { %v4883_v42 = vpop.eup %4882  ;;  %v2399_v5 = vrot.slane %v6314_v41, 7  ;;  %v2400_v3 = vrot.slane %v6316_v19, 7  ;;  %4892 = vrcp.f32 %v2379_v30 }
 0x4eb   :  { %v2433_v34 = vshrl.u32 %v2423_v8, 16  ;;  %v2436_v9 = vshll.u32 %v2423_v8, 16  ;;  %v3830_v36 = vrot.slane %v3816_v15, %v6010_v10  ;;  %v3955_v27 = vrot.slane %v3823_v63, %v5824_v20 }
 0x4ed   :  { %v2435_v38 = vrot.slane %v2433_v34, 1  ;;  %v2438_v31 = vrot.slane %v2436_v9, 2  ;;  %v3959_v35 = vrot.slane %v3830_v36, %v5824_v20  ;;  %v6481_v26 = vsel %vm4015_vm5, %v6307_v22, %v3955_v27 }
 0x4ee   :  { %v2382_v22 = vadd.f32 1.0, %v4879_v40 }
 0x4ef   :  { %v2439_v43 = vor.u32 %v2438_v31, %v2435_v38  ;;  %v6484_v12 = vsel %vm4015_vm5, %v6310_v28, %v3959_v35 }
 0x4f0   :  { %4894 = vrcp.f32 %v2382_v22 }
 0x4f1   :  { %2474 = vmatprep.mubr.bf16.mxu0 %v2439_v43  ;;  %2515 = vmatprep.mubr.bf16.mxu1 %v2439_v43 }
 0x4f2   :  { %v4885_v18 = vpop.eup %4884 }
 0x4f3   :  { %v4887_v24 = vpop.eup %4886  ;;  %v2405_v63 = vmul.f32 %v4885_v18, %v4881_v32 }
 0x4f4   :  { %v2406_v34 = vmul.f32 %v4887_v24, %v4883_v42 }
 0x4f5   :  { %v4889_v57 = vpop.eup %4888 }
 0x4f6   :  { %v4891_v8 = vpop.eup %4890  ;;  %v2403_v15 = vmul.f32 %v4889_v57, %v2399_v5 }
 0x4f7   :  { %v2404_v28 = vmul.f32 %v4891_v8, %v2400_v3  ;;  %v4893_v41 = vpop.eup %4892 }
 0x4f8   :  { %v6488_v9 = vadd.f32 %v2405_v63, %v2403_v15 }
 0x4f9   :  { %v6490_v36 = vadd.f32 %v2406_v34, %v2404_v28  ;;  %v7920_v28 = vld [vmem:[#allocation54_spill] sm:$0xff]  ;;  %v7921_v34 = vld [vmem:[#allocation55_spill] sm:$0xff] }
 0x4fa   :  { %4896 = vtanh.f32 %v6488_v9 }
 0x4fb   :  { %4898 = vtanh.f32 %v6490_v36 }
 0x4fd   :  { %v4895_v27 = vpop.eup %4894 }
 0x507   :  { %v4897_v38 = vpop.eup %4896 }
 0x508   :  { %v4899_v19 = vpop.eup %4898  ;;  %v2411_v31 = vmul.f32 %v4897_v38, %v4893_v41  ;;  %v7922_v41 = vld [vmem:[#allocation56_spill] sm:$0xff]  ;;  %v7924_v38 = vld [vmem:[#allocation58_spill] sm:$0xff] }
 0x509   :  { %v2412_v35 = vmul.f32 %v4899_v19, %v4895_v27  ;;  %v7923_v27 = vld [vmem:[#allocation57_spill] sm:$0xff]  ;;  %v7925_v19 = vld [vmem:[#allocation59_spill] sm:$0xff] }
 0x50a   :  { %v2548_v43 = vpack.c.bf16 %v2411_v31, %v2411_v31 }
 0x50b   :  { %v2415_v13 = vrot.slane %v2412_v35, 7  ;;  %v2549_v40 = vpack.c.bf16 %v2412_v35, %v2412_v35  ;;  %v7927_v35 = vld [vmem:[#allocation61_spill] sm:$0xff] }
 0x50c   :  { %v2552_v32 = vunpack.c.l.b16 %v2548_v43  ;;  %v7928_v43 = vld [vmem:[#allocation62_spill] sm:$0xff] }
 0x50d   :  { %v2417_v42 = vsel %vm2416_vm6, %v2415_v13, %v2411_v31  ;;  %v2553_v18 = vunpack.c.l.b16 %v2549_v40  ;;  %v7926_v31 = vld [vmem:[#allocation60_spill] sm:$0xff]  ;;  %v7929_v13 = vld [vmem:[#allocation63_spill] sm:$0xff] }
 0x50e   :  { %v2422_v24 = vpack.c.bf16 %v2417_v42, %v2417_v42  ;;  %v2554_v5 = vrot.slane %v2552_v32, 3  ;;  %v7930_v40 = vld [vmem:[#allocation64_spill] sm:$0xff]  ;;  %v7931_v32 = vld [vmem:[#allocation65_spill] sm:$0xff]  ;;  %v7932_v42 = vld [vmem:[#allocation66_spill] sm:$0xff] }
 0x50f   :  { %v2555_v30 = vrot.slane %v2553_v18, 2  ;;  %v7933_v18 = vld [vmem:[#allocation67_spill] sm:$0xff] }
 0x510   :  { %v2425_v57 = vshrl.u32 %v2422_v24, 16  ;;  %v2428_v3 = vshll.u32 %v2422_v24, 16  ;;  %v7934_v24 = vld [vmem:[#allocation68_spill] sm:$0xff] }
 0x511   :  { %v2556_v22 = vsel %vm1207_vm1, %v2555_v30, %v2554_v5  ;;  %v7935_v5 = vld [vmem:[#allocation69_spill] sm:$0xff]  ;;  %v7936_v30 = vld [vmem:[#allocation70_spill] sm:$0xff] }
 0x512   :  { %v2427_v8 = vrot.slane %v2425_v57, 1  ;;  %v2430_v15 = vrot.slane %v2428_v3, 2  ;;  %v7937_v57 = vld [vmem:[#allocation71_spill] sm:$0xff]  ;;  %v7938_v3 = vld [vmem:[#allocation72_spill] sm:$0xff] }
 0x514   :  { %v2431_v63 = vor.u32 %v2430_v15, %v2427_v8  ;;  %v7940_v8 = vld [vmem:[#allocation74_spill] sm:$0xff]  ;;  %v7941_v15 = vld [vmem:[#allocation75_spill] sm:$0xff] }
 0x516   :  { %2475 = vmatmul.mubr.bf16.vlgmr.msra.gmra.mxu0 %v2431_v63  ;;  %2516 = vmatmul.mubr.bf16.vlgmr.msra.gmra.mxu1 %v2431_v63  ;;  %v7942_v63 = vld [vmem:[#allocation76_spill] sm:$0xff] }
 0x517   :  { %2560 = vmatpush1.bf16.msra.mxu0 %v6033_v6  ;;  %2601 = vmatpush1.bf16.msra.mxu1 %v6036_v7  ;;  %v7896_v6 = vld [vmem:[#allocation30_spill] sm:$0xff]  ;;  %v7897_v7 = vld [vmem:[#allocation31_spill] sm:$0xff] }
 0x518   :  { %2561 = vmatprep.subr.bf16.mxu0 %v6039_v46  ;;  %2602 = vmatprep.subr.bf16.mxu1 %v6042_v56  ;;  %v7898_v46 = vld [vmem:[#allocation32_spill] sm:$0xff]  ;;  %v7899_v56 = vld [vmem:[#allocation33_spill] sm:$0xff] }
 0x519   :  { %2591 = vmatprep.mubr.bf16.mxu0 %v7690_v59  ;;  %2632 = vmatprep.mubr.bf16.mxu1 %v7690_v59 }
 0x51b   :  { %2562 = vmatpush1.bf16.msra.mxu0 %v6047_v39  ;;  %2603 = vmatpush1.bf16.msra.mxu1 %v6050_v44  ;;  %v7900_v39 = vld [vmem:[#allocation34_spill] sm:$0xff]  ;;  %v2557_v44 = vpack.c.b16 %v2556_v22, %v2556_v22  ;;  %v7939_v22 = vld [vmem:[#allocation73_spill] sm:$0xff] }
 0x51c   :  { %2563 = vmatprep.subr.bf16.mxu0 %v6053_v45  ;;  %2604 = vmatprep.subr.bf16.mxu1 %v6056_v55  ;;  %v7901_v45 = vld [vmem:[#allocation35_spill] sm:$0xff]  ;;  %v7902_v55 = vld [vmem:[#allocation36_spill] sm:$0xff] }
 0x51f   :  { %2564 = vmatpush1.bf16.msra.mxu0 %v6059_v47  ;;  %2605 = vmatpush1.bf16.msra.mxu1 %v6062_v49  ;;  %v7903_v47 = vld [vmem:[#allocation37_spill] sm:$0xff]  ;;  %v7904_v49 = vld [vmem:[#allocation38_spill] sm:$0xff] }
 0x520   :  { %2565 = vmatprep.subr.bf16.mxu0 %v6065_v48  ;;  %2606 = vmatprep.subr.bf16.mxu1 %v6068_v50  ;;  %v7905_v48 = vld [vmem:[#allocation39_spill] sm:$0xff]  ;;  %v7906_v50 = vld [vmem:[#allocation40_spill] sm:$0xff] }
 0x523   :  { %2566 = vmatpush1.bf16.msra.mxu0 %v6071_v52  ;;  %2607 = vmatpush1.bf16.msra.mxu1 %v6074_v51  ;;  %v7907_v52 = vld [vmem:[#allocation41_spill] sm:$0xff]  ;;  %v7908_v51 = vld [vmem:[#allocation42_spill] sm:$0xff] }
 0x524   :  { %2567 = vmatprep.subr.bf16.mxu0 %v6077_v54  ;;  %2608 = vmatprep.subr.bf16.mxu1 %v6080_v4  ;;  %v7909_v54 = vld [vmem:[#allocation43_spill] sm:$0xff]  ;;  %v7910_v4 = vld [vmem:[#allocation44_spill] sm:$0xff] }
 0x527   :  { %2568 = vmatpush1.bf16.msra.mxu0 %v7821_v58  ;;  %2609 = vmatpush1.bf16.msra.mxu1 %v7822_v17  ;;  %v7911_v58 = vld [vmem:[#allocation45_spill] sm:$0xff]  ;;  %v7912_v17 = vld [vmem:[#allocation46_spill] sm:$0xff] }
 0x528   :  { %2569 = vmatprep.subr.bf16.mxu0 %v7823_v37  ;;  %2610 = vmatprep.subr.bf16.mxu1 %v7824_v23  ;;  %v7913_v37 = vld [vmem:[#allocation47_spill] sm:$0xff]  ;;  %v7914_v23 = vld [vmem:[#allocation48_spill] sm:$0xff] }
 0x52b   :  { %2570 = vmatpush1.bf16.msra.mxu0 %v7825_v33  ;;  %2611 = vmatpush1.bf16.msra.mxu1 %v7826_v1  ;;  %v7915_v33 = vld [vmem:[#allocation49_spill] sm:$0xff]  ;;  %v7916_v1 = vld [vmem:[#allocation50_spill] sm:$0xff] }
 0x52c   :  { %2571 = vmatprep.subr.bf16.mxu0 %v7827_v16  ;;  %2612 = vmatprep.subr.bf16.mxu1 %v7828_v21  ;;  %v7917_v16 = vld [vmem:[#allocation51_spill] sm:$0xff]  ;;  %v7918_v21 = vld [vmem:[#allocation52_spill] sm:$0xff] }
 0x52f   :  { %2572 = vmatpush1.bf16.msra.mxu0 %v7829_v25  ;;  %2613 = vmatpush1.bf16.msra.mxu1 %v7896_v6  ;;  %v7919_v25 = vld [vmem:[#allocation53_spill] sm:$0xff]  ;;  %v7943_v6 = vld [vmem:[#allocation16_spill] sm:$0xff] }
 0x530   :  { %2573 = vmatprep.subr.bf16.mxu0 %v7897_v7  ;;  %2614 = vmatprep.subr.bf16.mxu1 %v7898_v46  ;;  %v7944_v7 = vld [vmem:[#allocation78_spill] sm:$0xff]  ;;  %v7945_v46 = vld [vmem:[#allocation21_spill] sm:$0xff] }
 0x533   :  { %2574 = vmatpush1.bf16.msra.mxu0 %v7899_v56  ;;  %2615 = vmatpush1.bf16.msra.mxu1 %v7900_v39  ;;  %v7946_v56 = vld [vmem:[#allocation22_spill] sm:$0xff]  ;;  %v7947_v39 = vld [vmem:[#allocation23_spill] sm:$0xff] }
 0x534   :  { %2740 = vmatprep.subr.bf16.mxu0 %v7901_v45  ;;  %2781 = vmatprep.subr.bf16.mxu1 %v7902_v55  ;;  %v7949_v45 = vld [vmem:[#allocation25_spill] sm:$0xff]  ;;  %v7950_v55 = vld [vmem:[#allocation26_spill] sm:$0xff] }
 0x536   :  { %2592 = vmatmul.mubr.bf16.vlgmr.msra.gmra.mxu0 %v2557_v44  ;;  %2633 = vmatmul.mubr.bf16.vlgmr.msra.gmra.mxu1 %v2557_v44  ;;  %v7948_v44 = vld [vmem:[#allocation24_spill] sm:$0xff] }
 0x537   :  { %2741 = vmatpush1.bf16.msra.mxu0 %v7903_v47  ;;  %2782 = vmatpush1.bf16.msra.mxu1 %v7904_v49  ;;  %v7951_v47 = vld [vmem:[#allocation27_spill] sm:$0xff]  ;;  %v7952_v49 = vld [vmem:[#allocation28_spill] sm:$0xff] }
 0x538   :  { %2742 = vmatprep.subr.bf16.mxu0 %v7905_v48  ;;  %2783 = vmatprep.subr.bf16.mxu1 %v7906_v50  ;;  %v7953_v48 = vld [vmem:[#allocation29_spill] sm:$0xff]  ;;  %v7954_v50 = vld [vmem:[#allocation79_spill] sm:$0xff] }
 0x53b   :  { %2743 = vmatpush1.bf16.msra.mxu0 %v7907_v52  ;;  %2784 = vmatpush1.bf16.msra.mxu1 %v7908_v51  ;;  %v7955_v52 = vld [vmem:[#allocation80_spill] sm:$0xff]  ;;  %v7956_v51 = vld [vmem:[#allocation81_spill] sm:$0xff] }
 0x53c   :  { %2744 = vmatprep.subr.bf16.mxu0 %v7909_v54  ;;  %2785 = vmatprep.subr.bf16.mxu1 %v7910_v4  ;;  %v7957_v54 = vld [vmem:[#allocation82_spill] sm:$0xff]  ;;  %v7958_v4 = vld [vmem:[#allocation83_spill] sm:$0xff] }
 0x53f   :  { %2745 = vmatpush1.bf16.msra.mxu0 %v7911_v58  ;;  %2786 = vmatpush1.bf16.msra.mxu1 %v7912_v17  ;;  %v7959_v58 = vld [vmem:[#allocation84_spill] sm:$0xff]  ;;  %v7960_v17 = vld [vmem:[#allocation85_spill] sm:$0xff] }
 0x540   :  { %2746 = vmatprep.subr.bf16.mxu0 %v7913_v37  ;;  %2787 = vmatprep.subr.bf16.mxu1 %v7914_v23  ;;  %v7961_v37 = vld [vmem:[#allocation86_spill] sm:$0xff]  ;;  %v7962_v23 = vld [vmem:[#allocation87_spill] sm:$0xff] }
 0x543   :  { %2747 = vmatpush1.bf16.msra.mxu0 %v7915_v33  ;;  %2788 = vmatpush1.bf16.msra.mxu1 %v7916_v1  ;;  %v7963_v33 = vld [vmem:[#allocation88_spill] sm:$0xff]  ;;  %v7964_v1 = vld [vmem:[#allocation89_spill] sm:$0xff] }
 0x544   :  { %2748 = vmatprep.subr.bf16.mxu0 %v7917_v16  ;;  %2789 = vmatprep.subr.bf16.mxu1 %v7918_v21  ;;  %v6591_v16 = vld [vmem:[#allocation7 + $0xe4] ss:$16 sps:$4 sm:$0xff]   ;;  %v7965_v21 = vld [vmem:[#allocation77_spill] sm:$0xff] }
 0x547   :  { %2749 = vmatpush1.bf16.msra.mxu0 %v7919_v25  ;;  %2790 = vmatpush1.bf16.msra.mxu1 %v7920_v28 }
 0x548   :  { %2750 = vmatprep.subr.bf16.mxu0 %v7921_v34  ;;  %2791 = vmatprep.subr.bf16.mxu1 %v7922_v41  ;;  %v7966_v34 = vld [vmem:[#allocation17_spill] sm:$0xff] }
 0x54b   :  { %2751 = vmatpush1.bf16.msra.mxu0 %v7923_v27  ;;  %2792 = vmatpush1.bf16.msra.mxu1 %v7924_v38 }
 0x54c   :  { %2752 = vmatprep.subr.bf16.mxu0 %v7925_v19  ;;  %2793 = vmatprep.subr.bf16.mxu1 %v7926_v31  ;;  %v7967_v31 = vld [vmem:[#allocation18_spill] sm:$0xff] }
 0x54f   :  { %2753 = vmatpush1.bf16.msra.mxu0 %v7927_v35  ;;  %2794 = vmatpush1.bf16.msra.mxu1 %v7928_v43 }
 0x550   :  { %2754 = vmatprep.subr.bf16.mxu0 %v7929_v13  ;;  %2795 = vmatprep.subr.bf16.mxu1 %v7930_v40 }
 0x553   :  { %2755 = vmatpush1.bf16.msra.mxu0 %v7931_v32  ;;  %2796 = vmatpush1.bf16.msra.mxu1 %v7932_v42 }
 0x554   :  { %2756 = vmatprep.subr.bf16.mxu0 %v7933_v18  ;;  %2797 = vmatprep.subr.bf16.mxu1 %v7934_v24  ;;  %v7968_v18 = vld [vmem:[#allocation19_spill] sm:$0xff] }
 0x557   :  { %2757 = vmatpush2.bf16.msra.mxu0 %v7935_v5  ;;  %2798 = vmatpush2.bf16.msra.mxu1 %v7936_v30 }
 0x558   :  { %2758 = vmatprep.subr.bf16.mxu0 %v7937_v57  ;;  %2799 = vmatprep.subr.bf16.mxu1 %v7938_v3  ;;  %v7969_v57 = vld [vmem:[#allocation20_spill] sm:$0xff] }
 0x55b   :  { %2759 = vmatpush2.bf16.msra.mxu0 %v7939_v22  ;;  %2800 = vmatpush2.bf16.msra.mxu1 %v7940_v8 }
 0x55c   :  { %2760 = vmatprep.subr.bf16.mxu0 %v7941_v15  ;;  %2801 = vmatprep.subr.bf16.mxu1 %v7942_v63 }
 0x55f   :  { %2761 = vmatpush2.bf16.msra.mxu0 %v7943_v6  ;;  %2802 = vmatpush2.bf16.msra.mxu1 %v7944_v7 }
 0x560   :  { %2762 = vmatprep.subr.bf16.mxu0 %v7945_v46  ;;  %2803 = vmatprep.subr.bf16.mxu1 %v7946_v56 }
 0x563   :  { %2763 = vmatpush2.bf16.msra.mxu0 %v7947_v39  ;;  %2804 = vmatpush2.bf16.msra.mxu1 %v7948_v44 }
 0x564   :  { %2764 = vmatprep.subr.bf16.mxu0 %v7949_v45  ;;  %2805 = vmatprep.subr.bf16.mxu1 %v7950_v55 }
 0x567   :  { %2765 = vmatpush2.bf16.msra.mxu0 %v7951_v47  ;;  %2806 = vmatpush2.bf16.msra.mxu1 %v7952_v49 }
 0x568   :  { %2766 = vmatprep.subr.bf16.mxu0 %v7953_v48  ;;  %2807 = vmatprep.subr.bf16.mxu1 %v7954_v50 }
 0x56b   :  { %2767 = vmatpush2.bf16.msra.mxu0 %v7955_v52  ;;  %2808 = vmatpush2.bf16.msra.mxu1 %v7956_v51 }
 0x56c   :  { %2768 = vmatprep.subr.bf16.mxu0 %v7957_v54  ;;  %2809 = vmatprep.subr.bf16.mxu1 %v7958_v4 }
 0x56f   :  { %2769 = vmatpush2.bf16.msra.mxu0 %v7959_v58  ;;  %2810 = vmatpush2.bf16.msra.mxu1 %v7960_v17 }
 0x570   :  { %2770 = vmatprep.subr.bf16.mxu0 %v7961_v37  ;;  %2811 = vmatprep.subr.bf16.mxu1 %v7962_v23 }
 0x573   :  { %2771 = vmatpush2.bf16.msra.mxu0 %v7963_v33  ;;  %2812 = vmatpush2.bf16.msra.mxu1 %v7964_v1 }
 0x574   :  { %2857 = vmatprep.subr.bf16.mxu0 %v6591_v16  ;;  %2898 = vmatprep.subr.bf16.mxu1 %v7965_v21 }
 0x5d6   :  { %v2476_v25 = vpop.f32.mrf.mxu0  ;;  %v2517_v28 = vpop.f32.mrf.mxu1 }
 0x5d7   :  { %v2477_v41 = vadd.f32 %v2476_v25, %v7966_v34  ;;  %v2518_v24 = vadd.f32 %v2517_v28, %v7968_v18 }
 0x5d8   :  { %v2478_v27 = vpop.f32.mrf.mxu0  ;;  %v2519_v38 = vpop.f32.mrf.mxu1 }
 0x5d9   :  { %v4369_v19 = vmul.f32 -1.442695, %v2477_v41  ;;  %v2479_v35 = vadd.f32 %v2478_v27, %v7967_v31  ;;  %v4371_v5 = vmul.f32 -1.442695, %v2518_v24  ;;  %v2520_v3 = vadd.f32 %v2519_v38, %v7969_v57 }
 0x5da   :  { %v2480_v43 = vpop.f32.mrf.mxu0  ;;  %v2521_v13 = vpop.f32.mrf.mxu1 }
 0x5db   :  { %4900 = vpow2.f32 %v4369_v19  ;;  %v4370_v40 = vmul.f32 -1.442695, %v2479_v35 }
 0x5dc   :  { %v2481_v32 = vpop.f32.mrf.mxu0  ;;  %v2522_v42 = vpop.f32.mrf.mxu1 }
 0x5dd   :  { %4902 = vpow2.f32 %v4370_v40 }
 0x5de   :  { %4904 = vpow2.f32 %v4371_v5 }
 0x5e8   :  { %v4901_v30 = vpop.eup %4900 }
 0x5e9   :  { %v2533_v22 = vadd.f32 1.0, %v4901_v30 }
 0x5ea   :  { %v4903_v8 = vpop.eup %4902 }
 0x5eb   :  { %4906 = vrcp.f32 %v2533_v22  ;;  %v2534_v15 = vadd.f32 1.0, %v4903_v8  ;;  %v4905_v63 = vpop.eup %4904 }
 0x5ec   :  { %4908 = vtanh.f32 %v2520_v3  ;;  %v2535_v27 = vadd.f32 1.0, %v4905_v63 }
 0x5ed   :  { %4910 = vrcp.f32 %v2534_v15 }
 0x5ee   :  { %4912 = vrcp.f32 %v2535_v27 }
 0x5f6   :  { %v2593_v6 = vpop.f32.mrf.mxu0  ;;  %v2634_v7 = vpop.f32.mrf.mxu1 }
 0x5f7   :  { %v2645_v21 = vrot.slane %v2593_v6, 4  ;;  %v2649_v25 = vrot.slane %v2593_v6, 5 }
 0x5f8   :  { %v4907_v41 = vpop.eup %4906  ;;  %v2595_v19 = vpop.f32.mrf.mxu0 }
 0x5f9   :  { %v2636_v28 = vpop.f32.mrf.mxu1  ;;  %v4909_v35 = vpop.eup %4908  ;;  %v2661_v43 = vadd.f32 %v2645_v21, %v5832_v60  ;;  %v2665_v38 = vadd.f32 %v2649_v25, %v5837_v11  ;;  %v2646_v40 = vrot.slane %v2595_v19, 4  ;;  %v2650_v32 = vrot.slane %v2595_v19, 5 }
 0x5fa   :  { %v4911_v13 = vpop.eup %4910  ;;  %v2597_v42 = vpop.f32.mrf.mxu0  ;;  %v2544_v30 = vmul.f32 %v4909_v35, %v4907_v41  ;;  %v2648_v35 = vrot.slane %v2636_v28, 4 }
 0x5fb   :  { %v2638_v24 = vpop.f32.mrf.mxu1  ;;  %v2543_v5 = vmul.f32 %v4911_v13, %v6468_v61  ;;  %v4372_v3 = vmul.f32 -1.442695, %v2661_v43  ;;  %v4375_v22 = vmul.f32 -1.442695, %v2665_v38  ;;  %v2662_v8 = vadd.f32 %v2646_v40, %v7760_v14  ;;  %v4913_v13 = vpop.eup %4912 }
 0x5fc   :  { %v2666_v15 = vadd.f32 %v2650_v32, %v7759_v53  ;;  %v2598_v63 = vpop.f32.mrf.mxu0  ;;  %v2647_v42 = vrot.slane %v2634_v7, 4  ;;  %v2651_v61 = vrot.slane %v2634_v7, 5  ;;  %v2652_v43 = vrot.slane %v2636_v28, 5 }
 0x5fd   :  { %v2639_v6 = vpop.f32.mrf.mxu1  ;;  %v6604_v21 = vadd.f32 %v2544_v30, %v2543_v5  ;;  %4914 = vpow2.f32 %v4372_v3  ;;  %v4373_v25 = vmul.f32 -1.442695, %v2662_v8  ;;  %v2664_v24 = vadd.f32 %v2648_v35, %v5858_v0 }
 0x5fe   :  { %4916 = vpow2.f32 %v4375_v22  ;;  %v4376_v19 = vmul.f32 -1.442695, %v2666_v15  ;;  %v2663_v41 = vadd.f32 %v2647_v42, %v5852_v2  ;;  %v2667_v27 = vadd.f32 %v2651_v61, %v5854_v62 }
 0x5ff   :  { %4918 = vtanh.f32 %v6604_v21  ;;  %v2668_v30 = vadd.f32 %v2652_v43, %v5860_v29 }
 0x600   :  { %4920 = vpow2.f32 %v4373_v25  ;;  %v4374_v38 = vmul.f32 -1.442695, %v2663_v41  ;;  %v4377_v40 = vmul.f32 -1.442695, %v2667_v27 }
 0x601   :  { %4922 = vpow2.f32 %v4376_v19 }
 0x602   :  { %4924 = vpow2.f32 %v4374_v38 }
 0x603   :  { %4926 = vpow2.f32 %v4377_v40 }
 0x604   :  { %4928 = vtanh.f32 %v2664_v24 }
 0x605   :  { %4930 = vtanh.f32 %v2668_v30 }
 0x60a   :  { %v4915_v32 = vpop.eup %4914 }
 0x60b   :  { %v4917_v5 = vpop.eup %4916  ;;  %v2687_v22 = vadd.f32 1.0, %v4915_v32 }
 0x60c   :  { %v4919_v3 = vpop.eup %4918  ;;  %v2690_v7 = vadd.f32 1.0, %v4917_v5 }
 0x60d   :  { %v2547_v8 = vmul.f32 %v4919_v3, %v4913_v13  ;;  %v4921_v15 = vpop.eup %4920  ;;  %4932 = vrcp.f32 %v2687_v22 }
 0x60e   :  { %v4923_v6 = vpop.eup %4922  ;;  %v2688_v25 = vadd.f32 1.0, %v4921_v15  ;;  %4934 = vrcp.f32 %v2690_v7  ;;  %v2709_v7 = vrot.slane %v6488_v9, 7 }
 0x60f   :  { %v2730_v63 = vrot.slane %v2547_v8, 4  ;;  %v3837_v28 = vrot.slane %v2547_v8, %v6010_v10  ;;  %v2691_v19 = vadd.f32 1.0, %v4923_v6  ;;  %v4925_v32 = vpop.eup %4924 }
 0x610   :  { %4936 = vrcp.f32 %v2688_v25  ;;  %v4927_v24 = vpop.eup %4926  ;;  %v2689_v8 = vadd.f32 1.0, %v4925_v32 }
 0x611   :  { %v2733_v42 = vpack.c.bf16 %v2730_v63, %v2730_v63  ;;  %v3838_v61 = vcombine.high %v3837_v28, %v3837_v28  ;;  %v3845_v41 = vrot.slane %v3837_v28, %v6010_v10  ;;  %4938 = vrcp.f32 %v2691_v19  ;;  %v4929_v5 = vpop.eup %4928 }
 0x612   :  { %v4931_v30 = vpop.eup %4930  ;;  %v2710_v63 = vrot.slane %v6490_v36, 7  ;;  %v2692_v28 = vadd.f32 1.0, %v4927_v24  ;;  %4940 = vrcp.f32 %v2689_v8 }
 0x613   :  { %v2737_v27 = vrot.slane %v2733_v42, 2  ;;  %v3852_v35 = vrot.slane %v3838_v61, %v6010_v10  ;;  %v3965_v43 = vrot.slane %v3845_v41, %v5824_v20 }
 0x614   :  { %4942 = vrcp.f32 %v2692_v28  ;;  %v6633_v28 = vld [vmem:[#allocation7 + $0xe0] ss:$16 sps:$4 sm:$0xff]  }
 0x615   :  { %2772 = vmatprep.mubr.bf16.mxu0 %v2737_v27  ;;  %v3969_v38 = vrot.slane %v3852_v35, %v5824_v20  ;;  %2813 = vmatprep.mubr.bf16.mxu1 %v2737_v27  ;;  %v6617_v13 = vsel %vm4018_vm7, %v6481_v26, %v3965_v43 }
 0x617   :  { %v6620_v40 = vsel %vm4018_vm7, %v6484_v12, %v3969_v38 }
 0x61a   :  { %v4933_v3 = vpop.eup %4932 }
 0x61b   :  { %v4935_v22 = vpop.eup %4934  ;;  %v2715_v26 = vmul.f32 %v4933_v3, %v4929_v5 }
 0x61c   :  { %v2716_v42 = vmul.f32 %v4935_v22, %v4931_v30 }
 0x61d   :  { %v4937_v15 = vpop.eup %4936 }
 0x61e   :  { %v4939_v6 = vpop.eup %4938  ;;  %v2713_v25 = vmul.f32 %v4937_v15, %v2709_v7 }
 0x61f   :  { %v2714_v19 = vmul.f32 %v4939_v6, %v2710_v63  ;;  %v4941_v9 = vpop.eup %4940  ;;  %v6636_v6 = vld [vmem:[#allocation7 + $0xe8] ss:$16 sps:$4 sm:$0xff]  }
 0x620   :  { %v6624_v12 = vadd.f32 %v2715_v26, %v2713_v25  ;;  %v6639_v25 = vld [vmem:[#allocation7 + $0xc4] ss:$16 sps:$4 sm:$0xff]   ;;  %v6642_v26 = vld [vmem:[#allocation7 + $0xcc] ss:$16 sps:$4 sm:$0xff]  }
 0x621   :  { %v6626_v61 = vadd.f32 %v2716_v42, %v2714_v19  ;;  %v4943_v41 = vpop.eup %4942  ;;  %v6647_v19 = vld [vmem:[#allocation7 + $0xc0] ss:$16 sps:$4 sm:$0xff]   ;;  %v6650_v42 = vld [vmem:[#allocation7 + $0xc8] ss:$16 sps:$4 sm:$0xff]  }
 0x622   :  { %4944 = vtanh.f32 %v6624_v12 }
 0x623   :  { %4946 = vtanh.f32 %v6626_v61 }
 0x62f   :  { %v4945_v27 = vpop.eup %4944 }
 0x630   :  { %v4947_v36 = vpop.eup %4946  ;;  %v2721_v35 = vmul.f32 %v4945_v27, %v4941_v9  ;;  %v6653_v9 = vld [vmem:[#allocation7 + $0xa4] ss:$16 sps:$4 sm:$0xff]   ;;  %v6659_v27 = vld [vmem:[#allocation7 + $0xa0] ss:$16 sps:$4 sm:$0xff]  }
 0x631   :  { %v2722_v43 = vmul.f32 %v4947_v36, %v4943_v41  ;;  %v6656_v41 = vld [vmem:[#allocation7 + $0xac] ss:$16 sps:$4 sm:$0xff]   ;;  %v6662_v36 = vld [vmem:[#allocation7 + $0xa8] ss:$16 sps:$4 sm:$0xff]  }
 0x632   :  { %v2846_v38 = vpack.c.bf16 %v2721_v35, %v2721_v35 }
 0x633   :  { %v2725_v32 = vrot.slane %v2722_v43, 7  ;;  %v2847_v24 = vpack.c.bf16 %v2722_v43, %v2722_v43  ;;  %v6668_v43 = vld [vmem:[#allocation7 + $0x8c] ss:$16 sps:$4 sm:$0xff]  }
 0x634   :  { %v2850_v5 = vunpack.c.l.b16 %v2846_v38  ;;  %v6671_v38 = vld [vmem:[#allocation7 + $0x80] ss:$16 sps:$4 sm:$0xff]  }
 0x635   :  { %v2727_v30 = vsel %vm2726_vm8, %v2725_v32, %v2721_v35  ;;  %v2851_v3 = vunpack.c.l.b16 %v2847_v24  ;;  %v6665_v35 = vld [vmem:[#allocation7 + $0x84] ss:$16 sps:$4 sm:$0xff]   ;;  %v6674_v32 = vld [vmem:[#allocation7 + $0x88] ss:$16 sps:$4 sm:$0xff]  }
 0x636   :  { %v2732_v22 = vpack.c.bf16 %v2727_v30, %v2727_v30  ;;  %v2852_v7 = vrot.slane %v2850_v5, 4  ;;  %v6677_v24 = vld [vmem:[#allocation7 + $0x64] ss:$16 sps:$4 sm:$0xff]   ;;  %v6680_v5 = vld [vmem:[#allocation7 + $0x6c] ss:$16 sps:$4 sm:$0xff]  }
 0x637   :  { %v2853_v8 = vrot.slane %v2851_v3, 3  ;;  %v6683_v30 = vld [vmem:[#allocation7 + $0x60] ss:$16 sps:$4 sm:$0xff]   ;;  %v6686_v3 = vld [vmem:[#allocation7 + $0x68] ss:$16 sps:$4 sm:$0xff]  }
 0x638   :  { %v2736_v15 = vrot.slane %v2732_v22, 2  ;;  %7970 = vst [vmem:[#allocation30_spill] sm:$0xff] %v6683_v30  ;;  %7971 = vst [vmem:[#allocation31_spill] sm:$0xff] %v6686_v3  ;;  %v6689_v22 = vld [vmem:[#allocation7 + $0x44] ss:$16 sps:$4 sm:$0xff]  }
 0x639   :  { %v6631_v63 = vsel %vm1207_vm1, %v2853_v8, %v2852_v7  ;;  %7972 = vst [vmem:[#allocation32_spill] sm:$0xff] %v6689_v22  ;;  %v6692_v7 = vld [vmem:[#allocation7 + $0x4c] ss:$16 sps:$4 sm:$0xff]   ;;  %v6695_v8 = vld [vmem:[#allocation7 + $0x40] ss:$16 sps:$4 sm:$0xff]  }
 0x63a   :  { %2773 = vmatmul.mubr.bf16.vlgmr.msra.gmra.mxu0 %v2736_v15  ;;  %2814 = vmatmul.mubr.bf16.vlgmr.msra.gmra.mxu1 %v2736_v15  ;;  %7973 = vst [vmem:[#allocation33_spill] sm:$0xff] %v6692_v7  ;;  %7974 = vst [vmem:[#allocation34_spill] sm:$0xff] %v6695_v8  ;;  %v6698_v15 = vld [vmem:[#allocation7 + $0x48] ss:$16 sps:$4 sm:$0xff]  }
 0x63b   :  { %2858 = vmatpush1.bf16.msra.mxu0 %v6633_v28  ;;  %2899 = vmatpush1.bf16.msra.mxu1 %v6636_v6  ;;  %7975 = vst [vmem:[#allocation35_spill] sm:$0xff] %v6698_v15 }
 0x63c   :  { %2859 = vmatprep.subr.bf16.mxu0 %v6639_v25  ;;  %2900 = vmatprep.subr.bf16.mxu1 %v6642_v26 }
 0x63d   :  { %2889 = vmatprep.mubr.bf16.mxu0 %v7690_v59  ;;  %2930 = vmatprep.mubr.bf16.mxu1 %v7690_v59 }
 0x63f   :  { %2860 = vmatpush1.bf16.msra.mxu0 %v6647_v19  ;;  %2901 = vmatpush1.bf16.msra.mxu1 %v6650_v42 }
 0x640   :  { %2861 = vmatprep.subr.bf16.mxu0 %v6653_v9  ;;  %2902 = vmatprep.subr.bf16.mxu1 %v6656_v41 }
 0x643   :  { %2862 = vmatpush1.bf16.msra.mxu0 %v6659_v27  ;;  %2903 = vmatpush1.bf16.msra.mxu1 %v6662_v36 }
 0x644   :  { %2863 = vmatprep.subr.bf16.mxu0 %v6665_v35  ;;  %2904 = vmatprep.subr.bf16.mxu1 %v6668_v43 }
 0x647   :  { %2864 = vmatpush1.bf16.msra.mxu0 %v6671_v38  ;;  %2905 = vmatpush1.bf16.msra.mxu1 %v6674_v32 }
 0x648   :  { %2865 = vmatprep.subr.bf16.mxu0 %v6677_v24  ;;  %2906 = vmatprep.subr.bf16.mxu1 %v6680_v5 }
 0x64b   :  { %2866 = vmatpush1.bf16.msra.mxu0 %v6683_v30  ;;  %2907 = vmatpush1.bf16.msra.mxu1 %v6686_v3  ;;  %v6701_v30 = vld [vmem:[#allocation7 + $0x24] ss:$16 sps:$4 sm:$0xff]   ;;  %v6704_v3 = vld [vmem:[#allocation7 + $0x2c] ss:$16 sps:$4 sm:$0xff]  }
 0x64c   :  { %2867 = vmatprep.subr.bf16.mxu0 %v6689_v22  ;;  %2908 = vmatprep.subr.bf16.mxu1 %v6692_v7  ;;  %7976 = vst [vmem:[#allocation36_spill] sm:$0xff] %v6701_v30  ;;  %7977 = vst [vmem:[#allocation37_spill] sm:$0xff] %v6704_v3  ;;  %v6707_v22 = vld [vmem:[#allocation7 + $0x20] ss:$16 sps:$4 sm:$0xff]   ;;  %v6710_v7 = vld [vmem:[#allocation7 + $0x28] ss:$16 sps:$4 sm:$0xff]  }
 0x64d   :  { %7978 = vst [vmem:[#allocation38_spill] sm:$0xff] %v6707_v22  ;;  %7979 = vst [vmem:[#allocation39_spill] sm:$0xff] %v6710_v7 }
 0x64f   :  { %2868 = vmatpush1.bf16.msra.mxu0 %v6695_v8  ;;  %2909 = vmatpush1.bf16.msra.mxu1 %v6698_v15  ;;  %v6713_v8 = vld [vmem:[#allocation7 + $0x4] ss:$16 sps:$4 sm:$0xff]   ;;  %v6716_v15 = vld [vmem:[#allocation7 + $0xc] ss:$16 sps:$4 sm:$0xff]  }
 0x650   :  { %2869 = vmatprep.subr.bf16.mxu0 %v6701_v30  ;;  %2910 = vmatprep.subr.bf16.mxu1 %v6704_v3  ;;  %7980 = vst [vmem:[#allocation40_spill] sm:$0xff] %v6713_v8  ;;  %7981 = vst [vmem:[#allocation41_spill] sm:$0xff] %v6716_v15  ;;  %v6719_v30 = vld [vmem:[#allocation7] ss:$16 sps:$4 sm:$0xff]   ;;  %v6722_v3 = vld [vmem:[#allocation7 + $0x8] ss:$16 sps:$4 sm:$0xff]  }
 0x651   :  { %7982 = vst [vmem:[#allocation42_spill] sm:$0xff] %v6719_v30  ;;  %7983 = vst [vmem:[#allocation43_spill] sm:$0xff] %v6722_v3 }
 0x653   :  { %2870 = vmatpush1.bf16.msra.mxu0 %v6707_v22  ;;  %2911 = vmatpush1.bf16.msra.mxu1 %v6710_v7  ;;  %v2855_v22 = vpack.c.b16 %v6631_v63, %v6631_v63  ;;  %v6727_v7 = vld [vmem:[#allocation8 + $0xe4] ss:$16 sps:$4 sm:$0xff]   ;;  %v6742_v63 = vld [vmem:[#allocation8 + $0xcc] ss:$16 sps:$4 sm:$0xff]  }
 0x654   :  { %2871 = vmatprep.subr.bf16.mxu0 %v6713_v8  ;;  %2912 = vmatprep.subr.bf16.mxu1 %v6716_v15  ;;  %7984 = vst [vmem:[#allocation44_spill] sm:$0xff] %v6727_v7  ;;  %v6730_v8 = vld [vmem:[#allocation8 + $0xec] ss:$16 sps:$4 sm:$0xff]   ;;  %v6733_v15 = vld [vmem:[#allocation8 + $0xe0] ss:$16 sps:$4 sm:$0xff]   ;;  %7989 = vst [vmem:[#allocation49_spill] sm:$0xff] %v6742_v63 }
 0x655   :  { %7985 = vst [vmem:[#allocation45_spill] sm:$0xff] %v6730_v8  ;;  %7986 = vst [vmem:[#allocation46_spill] sm:$0xff] %v6733_v15 }
 0x657   :  { %2872 = vmatpush1.bf16.msra.mxu0 %v6719_v30  ;;  %2913 = vmatpush1.bf16.msra.mxu1 %v6722_v3  ;;  %v6736_v30 = vld [vmem:[#allocation8 + $0xe8] ss:$16 sps:$4 sm:$0xff]   ;;  %v6739_v3 = vld [vmem:[#allocation8 + $0xc4] ss:$16 sps:$4 sm:$0xff]  }
 0x658   :  { %3050 = vmatprep.subr.bf16.mxu0 %v6727_v7  ;;  %3091 = vmatprep.subr.bf16.mxu1 %v6730_v8  ;;  %7987 = vst [vmem:[#allocation47_spill] sm:$0xff] %v6736_v30  ;;  %7988 = vst [vmem:[#allocation48_spill] sm:$0xff] %v6739_v3  ;;  %v6745_v7 = vld [vmem:[#allocation8 + $0xc0] ss:$16 sps:$4 sm:$0xff]  }
 0x659   :  { %7990 = vst [vmem:[#allocation50_spill] sm:$0xff] %v6745_v7 }
 0x65a   :  { %2890 = vmatmul.mubr.bf16.vlgmr.msra.gmra.mxu0 %v2855_v22  ;;  %2931 = vmatmul.mubr.bf16.vlgmr.msra.gmra.mxu1 %v2855_v22  ;;  %v6748_v22 = vld [vmem:[#allocation8 + $0xc8] ss:$16 sps:$4 sm:$0xff]  }
 0x65b   :  { %3051 = vmatpush1.bf16.msra.mxu0 %v6733_v15  ;;  %3092 = vmatpush1.bf16.msra.mxu1 %v6736_v30  ;;  %7991 = vst [vmem:[#allocation51_spill] sm:$0xff] %v6748_v22  ;;  %v6751_v15 = vld [vmem:[#allocation8 + $0xa4] ss:$16 sps:$4 sm:$0xff]   ;;  %v6754_v30 = vld [vmem:[#allocation8 + $0xac] ss:$16 sps:$4 sm:$0xff]  }
 0x65c   :  { %3052 = vmatprep.subr.bf16.mxu0 %v6739_v3  ;;  %3093 = vmatprep.subr.bf16.mxu1 %v6742_v63  ;;  %7992 = vst [vmem:[#allocation52_spill] sm:$0xff] %v6751_v15  ;;  %7993 = vst [vmem:[#allocation53_spill] sm:$0xff] %v6754_v30  ;;  %v6757_v3 = vld [vmem:[#allocation8 + $0xa0] ss:$16 sps:$4 sm:$0xff]   ;;  %v6760_v63 = vld [vmem:[#allocation8 + $0xa8] ss:$16 sps:$4 sm:$0xff]  }
 0x65d   :  { %7994 = vst [vmem:[#allocation54_spill] sm:$0xff] %v6757_v3  ;;  %7995 = vst [vmem:[#allocation55_spill] sm:$0xff] %v6760_v63 }
 0x65f   :  { %3053 = vmatpush1.bf16.msra.mxu0 %v6745_v7  ;;  %3094 = vmatpush1.bf16.msra.mxu1 %v6748_v22  ;;  %v6763_v7 = vld [vmem:[#allocation8 + $0x84] ss:$16 sps:$4 sm:$0xff]   ;;  %v6766_v22 = vld [vmem:[#allocation8 + $0x8c] ss:$16 sps:$4 sm:$0xff]  }
 0x660   :  { %3054 = vmatprep.subr.bf16.mxu0 %v6751_v15  ;;  %3095 = vmatprep.subr.bf16.mxu1 %v6754_v30  ;;  %7996 = vst [vmem:[#allocation56_spill] sm:$0xff] %v6763_v7  ;;  %7997 = vst [vmem:[#allocation57_spill] sm:$0xff] %v6766_v22  ;;  %v6769_v15 = vld [vmem:[#allocation8 + $0x80] ss:$16 sps:$4 sm:$0xff]   ;;  %v6772_v30 = vld [vmem:[#allocation8 + $0x88] ss:$16 sps:$4 sm:$0xff]  }
 0x661   :  { %7998 = vst [vmem:[#allocation58_spill] sm:$0xff] %v6769_v15  ;;  %7999 = vst [vmem:[#allocation59_spill] sm:$0xff] %v6772_v30 }
 0x663   :  { %3055 = vmatpush1.bf16.msra.mxu0 %v6757_v3  ;;  %3096 = vmatpush1.bf16.msra.mxu1 %v6760_v63  ;;  %v6775_v3 = vld [vmem:[#allocation8 + $0x64] ss:$16 sps:$4 sm:$0xff]   ;;  %v6778_v63 = vld [vmem:[#allocation8 + $0x6c] ss:$16 sps:$4 sm:$0xff]  }
 0x664   :  { %3056 = vmatprep.subr.bf16.mxu0 %v6763_v7  ;;  %3097 = vmatprep.subr.bf16.mxu1 %v6766_v22  ;;  %8000 = vst [vmem:[#allocation60_spill] sm:$0xff] %v6775_v3  ;;  %8001 = vst [vmem:[#allocation61_spill] sm:$0xff] %v6778_v63  ;;  %v6781_v7 = vld [vmem:[#allocation8 + $0x60] ss:$16 sps:$4 sm:$0xff]   ;;  %v6784_v22 = vld [vmem:[#allocation8 + $0x68] ss:$16 sps:$4 sm:$0xff]  }
 0x665   :  { %8002 = vst [vmem:[#allocation62_spill] sm:$0xff] %v6781_v7  ;;  %8003 = vst [vmem:[#allocation63_spill] sm:$0xff] %v6784_v22 }
 0x667   :  { %3057 = vmatpush1.bf16.msra.mxu0 %v6769_v15  ;;  %3098 = vmatpush1.bf16.msra.mxu1 %v6772_v30  ;;  %v6787_v15 = vld [vmem:[#allocation8 + $0x44] ss:$16 sps:$4 sm:$0xff]   ;;  %v6790_v30 = vld [vmem:[#allocation8 + $0x4c] ss:$16 sps:$4 sm:$0xff]  }
 0x668   :  { %3058 = vmatprep.subr.bf16.mxu0 %v6775_v3  ;;  %3099 = vmatprep.subr.bf16.mxu1 %v6778_v63  ;;  %8004 = vst [vmem:[#allocation64_spill] sm:$0xff] %v6787_v15  ;;  %8005 = vst [vmem:[#allocation65_spill] sm:$0xff] %v6790_v30  ;;  %v6793_v3 = vld [vmem:[#allocation8 + $0x40] ss:$16 sps:$4 sm:$0xff]   ;;  %v6796_v63 = vld [vmem:[#allocation8 + $0x48] ss:$16 sps:$4 sm:$0xff]  }
 0x669   :  { %8006 = vst [vmem:[#allocation66_spill] sm:$0xff] %v6793_v3  ;;  %8007 = vst [vmem:[#allocation67_spill] sm:$0xff] %v6796_v63 }
 0x66b   :  { %3059 = vmatpush1.bf16.msra.mxu0 %v6781_v7  ;;  %3100 = vmatpush1.bf16.msra.mxu1 %v6784_v22  ;;  %v6799_v7 = vld [vmem:[#allocation8 + $0x24] ss:$16 sps:$4 sm:$0xff]   ;;  %v6802_v22 = vld [vmem:[#allocation8 + $0x2c] ss:$16 sps:$4 sm:$0xff]  }
 0x66c   :  { %3060 = vmatprep.subr.bf16.mxu0 %v6787_v15  ;;  %3101 = vmatprep.subr.bf16.mxu1 %v6790_v30  ;;  %8008 = vst [vmem:[#allocation68_spill] sm:$0xff] %v6799_v7  ;;  %8009 = vst [vmem:[#allocation69_spill] sm:$0xff] %v6802_v22  ;;  %v6805_v15 = vld [vmem:[#allocation8 + $0x20] ss:$16 sps:$4 sm:$0xff]   ;;  %v6808_v30 = vld [vmem:[#allocation8 + $0x28] ss:$16 sps:$4 sm:$0xff]  }
 0x66d   :  { %8010 = vst [vmem:[#allocation70_spill] sm:$0xff] %v6805_v15  ;;  %8011 = vst [vmem:[#allocation71_spill] sm:$0xff] %v6808_v30 }
 0x66f   :  { %3061 = vmatpush1.bf16.msra.mxu0 %v6793_v3  ;;  %3102 = vmatpush1.bf16.msra.mxu1 %v6796_v63  ;;  %v6811_v3 = vld [vmem:[#allocation8 + $0x4] ss:$16 sps:$4 sm:$0xff]   ;;  %v6814_v63 = vld [vmem:[#allocation8 + $0xc] ss:$16 sps:$4 sm:$0xff]  }
 0x670   :  { %3062 = vmatprep.subr.bf16.mxu0 %v6799_v7  ;;  %3103 = vmatprep.subr.bf16.mxu1 %v6802_v22  ;;  %8012 = vst [vmem:[#allocation72_spill] sm:$0xff] %v6811_v3  ;;  %8013 = vst [vmem:[#allocation73_spill] sm:$0xff] %v6814_v63  ;;  %v6817_v7 = vld [vmem:[#allocation8] ss:$16 sps:$4 sm:$0xff]   ;;  %v6820_v22 = vld [vmem:[#allocation8 + $0x8] ss:$16 sps:$4 sm:$0xff]  }
 0x671   :  { %8014 = vst [vmem:[#allocation74_spill] sm:$0xff] %v6817_v7  ;;  %8015 = vst [vmem:[#allocation75_spill] sm:$0xff] %v6820_v22 }
 0x673   :  { %3063 = vmatpush1.bf16.msra.mxu0 %v6805_v15  ;;  %3104 = vmatpush1.bf16.msra.mxu1 %v6808_v30  ;;  %v6823_v15 = vld [vmem:[#allocation8 + $0x1e4] ss:$16 sps:$4 sm:$0xff]   ;;  %v6826_v30 = vld [vmem:[#allocation8 + $0x1ec] ss:$16 sps:$4 sm:$0xff]  }
 0x674   :  { %3064 = vmatprep.subr.bf16.mxu0 %v6811_v3  ;;  %3105 = vmatprep.subr.bf16.mxu1 %v6814_v63  ;;  %8016 = vst [vmem:[#allocation76_spill] sm:$0xff] %v6823_v15  ;;  %8017 = vst [vmem:[#allocation16_spill] sm:$0xff] %v6826_v30  ;;  %v6829_v3 = vld [vmem:[#allocation8 + $0x1e0] ss:$16 sps:$4 sm:$0xff]   ;;  %v6832_v63 = vld [vmem:[#allocation8 + $0x1e8] ss:$16 sps:$4 sm:$0xff]  }
 0x675   :  { %8018 = vst [vmem:[#allocation78_spill] sm:$0xff] %v6829_v3  ;;  %8019 = vst [vmem:[#allocation21_spill] sm:$0xff] %v6832_v63 }
 0x677   :  { %3065 = vmatpush1.bf16.msra.mxu0 %v6817_v7  ;;  %3106 = vmatpush1.bf16.msra.mxu1 %v6820_v22  ;;  %v6835_v7 = vld [vmem:[#allocation8 + $0x1c4] ss:$16 sps:$4 sm:$0xff]   ;;  %v6838_v22 = vld [vmem:[#allocation8 + $0x1cc] ss:$16 sps:$4 sm:$0xff]  }
 0x678   :  { %3066 = vmatprep.subr.bf16.mxu0 %v6823_v15  ;;  %3107 = vmatprep.subr.bf16.mxu1 %v6826_v30  ;;  %8020 = vst [vmem:[#allocation22_spill] sm:$0xff] %v6835_v7  ;;  %8021 = vst [vmem:[#allocation23_spill] sm:$0xff] %v6838_v22  ;;  %v6841_v15 = vld [vmem:[#allocation8 + $0x1c0] ss:$16 sps:$4 sm:$0xff]   ;;  %v6844_v30 = vld [vmem:[#allocation8 + $0x1c8] ss:$16 sps:$4 sm:$0xff]  }
 0x679   :  { %8022 = vst [vmem:[#allocation24_spill] sm:$0xff] %v6841_v15  ;;  %8023 = vst [vmem:[#allocation25_spill] sm:$0xff] %v6844_v30 }
 0x67b   :  { %3067 = vmatpush2.bf16.msra.mxu0 %v6829_v3  ;;  %3108 = vmatpush2.bf16.msra.mxu1 %v6832_v63  ;;  %v6847_v3 = vld [vmem:[#allocation8 + $0x1a4] ss:$16 sps:$4 sm:$0xff]   ;;  %v6850_v63 = vld [vmem:[#allocation8 + $0x1ac] ss:$16 sps:$4 sm:$0xff]  }
 0x67c   :  { %3068 = vmatprep.subr.bf16.mxu0 %v6835_v7  ;;  %3109 = vmatprep.subr.bf16.mxu1 %v6838_v22  ;;  %8024 = vst [vmem:[#allocation26_spill] sm:$0xff] %v6847_v3  ;;  %8025 = vst [vmem:[#allocation27_spill] sm:$0xff] %v6850_v63  ;;  %v6853_v7 = vld [vmem:[#allocation8 + $0x1a0] ss:$16 sps:$4 sm:$0xff]   ;;  %v6856_v22 = vld [vmem:[#allocation8 + $0x1a8] ss:$16 sps:$4 sm:$0xff]  }
 0x67d   :  { %8026 = vst [vmem:[#allocation28_spill] sm:$0xff] %v6853_v7  ;;  %8027 = vst [vmem:[#allocation29_spill] sm:$0xff] %v6856_v22 }
 0x67f   :  { %3069 = vmatpush2.bf16.msra.mxu0 %v6841_v15  ;;  %3110 = vmatpush2.bf16.msra.mxu1 %v6844_v30 }
 0x680   :  { %3070 = vmatprep.subr.bf16.mxu0 %v6847_v3  ;;  %3111 = vmatprep.subr.bf16.mxu1 %v6850_v63 }
 0x683   :  { %3071 = vmatpush2.bf16.msra.mxu0 %v6853_v7  ;;  %3112 = vmatpush2.bf16.msra.mxu1 %v6856_v22 }
 0x684   :  { %3072 = vmatprep.subr.bf16.mxu0 %v7945_v46  ;;  %3113 = vmatprep.subr.bf16.mxu1 %v7946_v56  ;;  %v6880_v46 = vld [vmem:[#allocation7 + $0xec] ss:$16 sps:$4 sm:$0xff]  }
 0x687   :  { %3073 = vmatpush2.bf16.msra.mxu0 %v7947_v39  ;;  %3114 = vmatpush2.bf16.msra.mxu1 %v7948_v44 }
 0x688   :  { %3074 = vmatprep.subr.bf16.mxu0 %v7949_v45  ;;  %3115 = vmatprep.subr.bf16.mxu1 %v7950_v55 }
 0x68b   :  { %3075 = vmatpush2.bf16.msra.mxu0 %v7951_v47  ;;  %3116 = vmatpush2.bf16.msra.mxu1 %v7952_v49 }
 0x68c   :  { %3076 = vmatprep.subr.bf16.mxu0 %v7953_v48  ;;  %3117 = vmatprep.subr.bf16.mxu1 %v7954_v50 }
 0x68f   :  { %3077 = vmatpush2.bf16.msra.mxu0 %v7955_v52  ;;  %3118 = vmatpush2.bf16.msra.mxu1 %v7956_v51 }
 0x690   :  { %3078 = vmatprep.subr.bf16.mxu0 %v7957_v54  ;;  %3119 = vmatprep.subr.bf16.mxu1 %v7958_v4 }
 0x693   :  { %3079 = vmatpush2.bf16.msra.mxu0 %v7959_v58  ;;  %3120 = vmatpush2.bf16.msra.mxu1 %v7960_v17 }
 0x694   :  { %3080 = vmatprep.subr.bf16.mxu0 %v7961_v37  ;;  %3121 = vmatprep.subr.bf16.mxu1 %v7962_v23 }
 0x697   :  { %3081 = vmatpush2.bf16.msra.mxu0 %v7963_v33  ;;  %3122 = vmatpush2.bf16.msra.mxu1 %v7964_v1 }
 0x698   :  { %3167 = vmatprep.subr.bf16.mxu0 %v6591_v16  ;;  %3208 = vmatprep.subr.bf16.mxu1 %v6880_v46 }
 0x6fa   :  { %v2774_v56 = vpop.f32.mrf.mxu0  ;;  %v2815_v39 = vpop.f32.mrf.mxu1 }
 0x6fb   :  { %v2775_v44 = vadd.f32 %v2774_v56, %v7966_v34  ;;  %v2816_v4 = vadd.f32 %v2815_v39, %v7968_v18 }
 0x6fc   :  { %v2776_v45 = vpop.f32.mrf.mxu0  ;;  %v2817_v55 = vpop.f32.mrf.mxu1 }
 0x6fd   :  { %v4378_v47 = vmul.f32 -1.442695, %v2775_v44  ;;  %v2777_v49 = vadd.f32 %v2776_v45, %v7967_v31  ;;  %v4380_v58 = vmul.f32 -1.442695, %v2816_v4  ;;  %v2818_v37 = vadd.f32 %v2817_v55, %v7969_v57 }
 0x6fe   :  { %v2778_v48 = vpop.f32.mrf.mxu0  ;;  %v2819_v50 = vpop.f32.mrf.mxu1 }
 0x6ff   :  { %4948 = vpow2.f32 %v4378_v47  ;;  %v4379_v52 = vmul.f32 -1.442695, %v2777_v49 }
 0x700   :  { %v2779_v51 = vpop.f32.mrf.mxu0  ;;  %v2820_v54 = vpop.f32.mrf.mxu1 }
 0x701   :  { %4950 = vpow2.f32 %v4379_v52 }
 0x702   :  { %4952 = vpow2.f32 %v4380_v58 }
 0x70c   :  { %v4949_v17 = vpop.eup %4948 }
 0x70d   :  { %v2831_v23 = vadd.f32 1.0, %v4949_v17 }
 0x70e   :  { %v4951_v33 = vpop.eup %4950 }
 0x70f   :  { %4954 = vrcp.f32 %v2831_v23  ;;  %v2832_v1 = vadd.f32 1.0, %v4951_v33  ;;  %v4953_v56 = vpop.eup %4952 }
 0x710   :  { %4956 = vtanh.f32 %v2818_v37  ;;  %v2833_v50 = vadd.f32 1.0, %v4953_v56 }
 0x711   :  { %4958 = vrcp.f32 %v2832_v1 }
 0x712   :  { %4960 = vrcp.f32 %v2833_v50 }
 0x71a   :  { %v2891_v44 = vpop.f32.mrf.mxu0  ;;  %v2932_v45 = vpop.f32.mrf.mxu1 }
 0x71b   :  { %v2943_v47 = vrot.slane %v2891_v44, 3  ;;  %v2947_v49 = vrot.slane %v2891_v44, 4 }
 0x71c   :  { %v4955_v48 = vpop.eup %4954  ;;  %v2893_v52 = vpop.f32.mrf.mxu0 }
 0x71d   :  { %v2934_v39 = vpop.f32.mrf.mxu1  ;;  %v4957_v51 = vpop.eup %4956  ;;  %v2959_v54 = vadd.f32 %v2943_v47, %v5832_v60  ;;  %v2963_v55 = vadd.f32 %v2947_v49, %v5837_v11  ;;  %v2944_v58 = vrot.slane %v2893_v52, 3  ;;  %v2948_v17 = vrot.slane %v2893_v52, 4 }
 0x71e   :  { %v4959_v4 = vpop.eup %4958  ;;  %v2895_v23 = vpop.f32.mrf.mxu0  ;;  %v2842_v1 = vmul.f32 %v4957_v51, %v4955_v48  ;;  %v2946_v51 = vrot.slane %v2934_v39, 3 }
 0x71f   :  { %v2936_v37 = vpop.f32.mrf.mxu1  ;;  %v2841_v33 = vmul.f32 %v4959_v4, %v6604_v21  ;;  %v4381_v57 = vmul.f32 -1.442695, %v2959_v54  ;;  %v4384_v18 = vmul.f32 -1.442695, %v2963_v55  ;;  %v2960_v56 = vadd.f32 %v2944_v58, %v7760_v14 }
 0x720   :  { %v2964_v44 = vadd.f32 %v2948_v17, %v7759_v53  ;;  %v2896_v31 = vpop.f32.mrf.mxu0  ;;  %v2945_v23 = vrot.slane %v2932_v45, 3  ;;  %v2949_v21 = vrot.slane %v2932_v45, 4  ;;  %v2950_v54 = vrot.slane %v2934_v39, 4 }
 0x721   :  { %v2937_v34 = vpop.f32.mrf.mxu1  ;;  %v6892_v47 = vadd.f32 %v2842_v1, %v2841_v33  ;;  %4962 = vpow2.f32 %v4381_v57  ;;  %v4382_v49 = vmul.f32 -1.442695, %v2960_v56 }
 0x722   :  { %4964 = vpow2.f32 %v4384_v18  ;;  %v4385_v52 = vmul.f32 -1.442695, %v2964_v44  ;;  %v2961_v48 = vadd.f32 %v2945_v23, %v5852_v2  ;;  %v2965_v50 = vadd.f32 %v2949_v21, %v5854_v62  ;;  %v4961_v34 = vpop.eup %4960 }
 0x723   :  { %4966 = vtanh.f32 %v6892_v47  ;;  %v2962_v18 = vadd.f32 %v2946_v51, %v5858_v0  ;;  %v2966_v58 = vadd.f32 %v2950_v54, %v5860_v29 }
 0x724   :  { %4968 = vpow2.f32 %v4382_v49  ;;  %v4383_v31 = vmul.f32 -1.442695, %v2961_v48  ;;  %v4386_v55 = vmul.f32 -1.442695, %v2965_v50 }
 0x725   :  { %4970 = vpow2.f32 %v4385_v52 }
 0x726   :  { %4972 = vpow2.f32 %v4383_v31 }
 0x727   :  { %4974 = vpow2.f32 %v4386_v55 }
 0x728   :  { %4976 = vtanh.f32 %v2962_v18 }
 0x729   :  { %4978 = vtanh.f32 %v2966_v58 }
 0x72e   :  { %v4963_v4 = vpop.eup %4962 }
 0x72f   :  { %v4965_v57 = vpop.eup %4964  ;;  %v2985_v37 = vadd.f32 1.0, %v4963_v4 }
 0x730   :  { %v4967_v17 = vpop.eup %4966  ;;  %v2988_v45 = vadd.f32 1.0, %v4965_v57 }
 0x731   :  { %v2845_v33 = vmul.f32 %v4967_v17, %v4961_v34  ;;  %v4969_v1 = vpop.eup %4968  ;;  %4980 = vrcp.f32 %v2985_v37 }
 0x732   :  { %v4971_v44 = vpop.eup %4970  ;;  %v2986_v49 = vadd.f32 1.0, %v4969_v1  ;;  %4982 = vrcp.f32 %v2988_v45 }
 0x733   :  { %v3028_v56 = vrot.slane %v2845_v33, 3  ;;  %v3859_v39 = vrot.slane %v2845_v33, %v6010_v10  ;;  %v2989_v52 = vadd.f32 1.0, %v4971_v44  ;;  %v4973_v17 = vpop.eup %4972 }
 0x734   :  { %4984 = vrcp.f32 %v2986_v49  ;;  %v4975_v37 = vpop.eup %4974  ;;  %v2987_v44 = vadd.f32 1.0, %v4973_v17 }
 0x735   :  { %v3031_v23 = vpack.c.bf16 %v3028_v56, %v3028_v56  ;;  %v3860_v21 = vcombine.high %v3859_v39, %v3859_v39  ;;  %v3867_v48 = vrot.slane %v3859_v39, %v6010_v10  ;;  %4986 = vrcp.f32 %v2989_v52  ;;  %v4977_v45 = vpop.eup %4976 }
 0x736   :  { %v4979_v33 = vpop.eup %4978  ;;  %v3007_v39 = vrot.slane %v6624_v12, 7  ;;  %v3008_v52 = vrot.slane %v6626_v61, 7  ;;  %4988 = vrcp.f32 %v2987_v44 }
 0x737   :  { %v3041_v50 = vshrl.u32 %v3031_v23, 16  ;;  %v3044_v51 = vshll.u32 %v3031_v23, 16  ;;  %v3874_v54 = vrot.slane %v3860_v21, %v6010_v10  ;;  %v3975_v31 = vrot.slane %v3867_v48, %v5824_v20 }
 0x739   :  { %v3043_v34 = vrot.slane %v3041_v50, 2  ;;  %v3046_v55 = vrot.slane %v3044_v51, 3  ;;  %v3979_v4 = vrot.slane %v3874_v54, %v5824_v20  ;;  %v6905_v18 = vsel %vm4021_vm9, %v6617_v13, %v3975_v31 }
 0x73a   :  { %v2990_v13 = vadd.f32 1.0, %v4975_v37 }
 0x73b   :  { %v3047_v57 = vor.u32 %v3046_v55, %v3043_v34  ;;  %v6908_v58 = vsel %vm4021_vm9, %v6620_v40, %v3979_v4 }
 0x73c   :  { %4990 = vrcp.f32 %v2990_v13 }
 0x73d   :  { %3082 = vmatprep.mubr.bf16.mxu0 %v3047_v57  ;;  %3123 = vmatprep.mubr.bf16.mxu1 %v3047_v57 }
 0x73e   :  { %v4981_v1 = vpop.eup %4980 }
 0x73f   :  { %v4983_v56 = vpop.eup %4982  ;;  %v3013_v48 = vmul.f32 %v4981_v1, %v4977_v45 }
 0x740   :  { %v3014_v50 = vmul.f32 %v4983_v56, %v4979_v33 }
 0x741   :  { %v4985_v49 = vpop.eup %4984 }
 0x742   :  { %v4987_v23 = vpop.eup %4986  ;;  %v3011_v21 = vmul.f32 %v4985_v49, %v3007_v39 }
 0x743   :  { %v3012_v40 = vmul.f32 %v4987_v23, %v3008_v52  ;;  %v4989_v12 = vpop.eup %4988 }
 0x744   :  { %v6912_v51 = vadd.f32 %v3013_v48, %v3011_v21 }
 0x745   :  { %v6914_v54 = vadd.f32 %v3014_v50, %v3012_v40  ;;  %v8028_v40 = vld [vmem:[#allocation30_spill] sm:$0xff]  ;;  %v8029_v50 = vld [vmem:[#allocation31_spill] sm:$0xff] }
 0x746   :  { %4992 = vtanh.f32 %v6912_v51 }
 0x747   :  { %4994 = vtanh.f32 %v6914_v54 }
 0x749   :  { %v4991_v31 = vpop.eup %4990 }
 0x753   :  { %v4993_v34 = vpop.eup %4992 }
 0x754   :  { %v4995_v61 = vpop.eup %4994  ;;  %v3019_v55 = vmul.f32 %v4993_v34, %v4989_v12  ;;  %v8030_v12 = vld [vmem:[#allocation32_spill] sm:$0xff]  ;;  %v8032_v34 = vld [vmem:[#allocation34_spill] sm:$0xff] }
 0x755   :  { %v3020_v4 = vmul.f32 %v4995_v61, %v4991_v31  ;;  %v8031_v31 = vld [vmem:[#allocation33_spill] sm:$0xff]  ;;  %v8033_v61 = vld [vmem:[#allocation35_spill] sm:$0xff] }
 0x756   :  { %v3156_v57 = vpack.c.bf16 %v3019_v55, %v3019_v55 }
 0x757   :  { %v3023_v17 = vrot.slane %v3020_v4, 7  ;;  %v3157_v37 = vpack.c.bf16 %v3020_v4, %v3020_v4  ;;  %v8035_v4 = vld [vmem:[#allocation37_spill] sm:$0xff] }
 0x758   :  { %v3160_v45 = vunpack.c.l.b16 %v3156_v57  ;;  %v8036_v57 = vld [vmem:[#allocation38_spill] sm:$0xff] }
 0x759   :  { %v3025_v33 = vsel %vm3024_vm10, %v3023_v17, %v3019_v55  ;;  %v3161_v1 = vunpack.c.l.b16 %v3157_v37  ;;  %v8034_v55 = vld [vmem:[#allocation36_spill] sm:$0xff]  ;;  %v8037_v17 = vld [vmem:[#allocation39_spill] sm:$0xff] }
 0x75a   :  { %v3030_v56 = vpack.c.bf16 %v3025_v33, %v3025_v33  ;;  %v3162_v39 = vrot.slane %v3160_v45, 5  ;;  %v8038_v37 = vld [vmem:[#allocation40_spill] sm:$0xff]  ;;  %v8039_v45 = vld [vmem:[#allocation41_spill] sm:$0xff]  ;;  %v8040_v33 = vld [vmem:[#allocation42_spill] sm:$0xff] }
 0x75b   :  { %v3163_v44 = vrot.slane %v3161_v1, 4  ;;  %v8041_v1 = vld [vmem:[#allocation43_spill] sm:$0xff] }
 0x75c   :  { %v3033_v49 = vshrl.u32 %v3030_v56, 16  ;;  %v3036_v52 = vshll.u32 %v3030_v56, 16 }
 0x75d   :  { %v3164_v13 = vsel %vm1207_vm1, %v3163_v44, %v3162_v39  ;;  %v8042_v39 = vld [vmem:[#allocation44_spill] sm:$0xff]  ;;  %v8043_v44 = vld [vmem:[#allocation46_spill] sm:$0xff] }
 0x75e   :  { %v3035_v23 = vrot.slane %v3033_v49, 2  ;;  %v3038_v21 = vrot.slane %v3036_v52, 3  ;;  %v3165_v56 = vpack.c.b16 %v3164_v13, %v3164_v13  ;;  %v8044_v49 = vld [vmem:[#allocation47_spill] sm:$0xff]  ;;  %v8045_v52 = vld [vmem:[#allocation48_spill] sm:$0xff]  ;;  %v8050_v13 = vld [vmem:[#allocation53_spill] sm:$0xff] }
 0x760   :  { %v3039_v48 = vor.u32 %v3038_v21, %v3035_v23  ;;  %v8046_v23 = vld [vmem:[#allocation49_spill] sm:$0xff]  ;;  %v8047_v21 = vld [vmem:[#allocation50_spill] sm:$0xff] }
 0x762   :  { %3083 = vmatmul.mubr.bf16.vlgmr.msra.gmra.mxu0 %v3039_v48  ;;  %3124 = vmatmul.mubr.bf16.vlgmr.msra.gmra.mxu1 %v3039_v48  ;;  %v8048_v48 = vld [vmem:[#allocation51_spill] sm:$0xff] }
 0x763   :  { %3168 = vmatpush1.bf16.msra.mxu0 %v6633_v28  ;;  %3209 = vmatpush1.bf16.msra.mxu1 %v6636_v6 }
 0x764   :  { %3169 = vmatprep.subr.bf16.mxu0 %v6639_v25  ;;  %3210 = vmatprep.subr.bf16.mxu1 %v6642_v26 }
 0x765   :  { %3199 = vmatprep.mubr.bf16.mxu0 %v7690_v59  ;;  %3240 = vmatprep.mubr.bf16.mxu1 %v7690_v59 }
 0x767   :  { %3170 = vmatpush1.bf16.msra.mxu0 %v6647_v19  ;;  %3211 = vmatpush1.bf16.msra.mxu1 %v6650_v42 }
 0x768   :  { %3171 = vmatprep.subr.bf16.mxu0 %v6653_v9  ;;  %3212 = vmatprep.subr.bf16.mxu1 %v6656_v41 }
 0x76b   :  { %3172 = vmatpush1.bf16.msra.mxu0 %v6659_v27  ;;  %3213 = vmatpush1.bf16.msra.mxu1 %v6662_v36 }
 0x76c   :  { %3173 = vmatprep.subr.bf16.mxu0 %v6665_v35  ;;  %3214 = vmatprep.subr.bf16.mxu1 %v6668_v43 }
 0x76f   :  { %3174 = vmatpush1.bf16.msra.mxu0 %v6671_v38  ;;  %3215 = vmatpush1.bf16.msra.mxu1 %v6674_v32 }
 0x770   :  { %3175 = vmatprep.subr.bf16.mxu0 %v6677_v24  ;;  %3216 = vmatprep.subr.bf16.mxu1 %v6680_v5 }
 0x773   :  { %3176 = vmatpush1.bf16.msra.mxu0 %v8028_v40  ;;  %3217 = vmatpush1.bf16.msra.mxu1 %v8029_v50 }
 0x774   :  { %3177 = vmatprep.subr.bf16.mxu0 %v8030_v12  ;;  %3218 = vmatprep.subr.bf16.mxu1 %v8031_v31 }
 0x777   :  { %3178 = vmatpush1.bf16.msra.mxu0 %v8032_v34  ;;  %3219 = vmatpush1.bf16.msra.mxu1 %v8033_v61 }
 0x778   :  { %3179 = vmatprep.subr.bf16.mxu0 %v8034_v55  ;;  %3220 = vmatprep.subr.bf16.mxu1 %v8035_v4 }
 0x77b   :  { %3180 = vmatpush1.bf16.msra.mxu0 %v8036_v57  ;;  %3221 = vmatpush1.bf16.msra.mxu1 %v8037_v17 }
 0x77c   :  { %3181 = vmatprep.subr.bf16.mxu0 %v8038_v37  ;;  %3222 = vmatprep.subr.bf16.mxu1 %v8039_v45 }
 0x77f   :  { %3182 = vmatpush1.bf16.msra.mxu0 %v8040_v33  ;;  %3223 = vmatpush1.bf16.msra.mxu1 %v8041_v1  ;;  %v8049_v1 = vld [vmem:[#allocation52_spill] sm:$0xff] }
 0x780   :  { %3348 = vmatprep.subr.bf16.mxu0 %v8042_v39  ;;  %3389 = vmatprep.subr.bf16.mxu1 %v6730_v8  ;;  %v8051_v39 = vld [vmem:[#allocation54_spill] sm:$0xff]  ;;  %v8052_v8 = vld [vmem:[#allocation55_spill] sm:$0xff] }
 0x782   :  { %3200 = vmatmul.mubr.bf16.vlgmr.msra.gmra.mxu0 %v3165_v56  ;;  %3241 = vmatmul.mubr.bf16.vlgmr.msra.gmra.mxu1 %v3165_v56  ;;  %v8053_v56 = vld [vmem:[#allocation56_spill] sm:$0xff] }
 0x783   :  { %3349 = vmatpush1.bf16.msra.mxu0 %v8043_v44  ;;  %3390 = vmatpush1.bf16.msra.mxu1 %v8044_v49  ;;  %v8054_v44 = vld [vmem:[#allocation57_spill] sm:$0xff]  ;;  %v8055_v49 = vld [vmem:[#allocation58_spill] sm:$0xff] }
 0x784   :  { %3350 = vmatprep.subr.bf16.mxu0 %v8045_v52  ;;  %3391 = vmatprep.subr.bf16.mxu1 %v8046_v23  ;;  %v8056_v52 = vld [vmem:[#allocation59_spill] sm:$0xff]  ;;  %v8057_v23 = vld [vmem:[#allocation60_spill] sm:$0xff] }
 0x787   :  { %3351 = vmatpush1.bf16.msra.mxu0 %v8047_v21  ;;  %3392 = vmatpush1.bf16.msra.mxu1 %v8048_v48  ;;  %v8058_v21 = vld [vmem:[#allocation61_spill] sm:$0xff]  ;;  %v8059_v48 = vld [vmem:[#allocation62_spill] sm:$0xff] }
 0x788   :  { %3352 = vmatprep.subr.bf16.mxu0 %v8049_v1  ;;  %3393 = vmatprep.subr.bf16.mxu1 %v8050_v13  ;;  %v8060_v1 = vld [vmem:[#allocation63_spill] sm:$0xff]  ;;  %v8061_v13 = vld [vmem:[#allocation64_spill] sm:$0xff] }
 0x78b   :  { %3353 = vmatpush1.bf16.msra.mxu0 %v8051_v39  ;;  %3394 = vmatpush1.bf16.msra.mxu1 %v8052_v8  ;;  %v8062_v39 = vld [vmem:[#allocation65_spill] sm:$0xff]  ;;  %v8063_v8 = vld [vmem:[#allocation66_spill] sm:$0xff] }
 0x78c   :  { %3354 = vmatprep.subr.bf16.mxu0 %v8053_v56  ;;  %3395 = vmatprep.subr.bf16.mxu1 %v8054_v44  ;;  %v8064_v56 = vld [vmem:[#allocation67_spill] sm:$0xff]  ;;  %v8065_v44 = vld [vmem:[#allocation68_spill] sm:$0xff] }
 0x78f   :  { %3355 = vmatpush1.bf16.msra.mxu0 %v8055_v49  ;;  %3396 = vmatpush1.bf16.msra.mxu1 %v8056_v52  ;;  %v8066_v49 = vld [vmem:[#allocation69_spill] sm:$0xff]  ;;  %v8067_v52 = vld [vmem:[#allocation70_spill] sm:$0xff] }
 0x790   :  { %3356 = vmatprep.subr.bf16.mxu0 %v8057_v23  ;;  %3397 = vmatprep.subr.bf16.mxu1 %v8058_v21  ;;  %v8068_v23 = vld [vmem:[#allocation71_spill] sm:$0xff]  ;;  %v8069_v21 = vld [vmem:[#allocation72_spill] sm:$0xff] }
 0x793   :  { %3357 = vmatpush1.bf16.msra.mxu0 %v8059_v48  ;;  %3398 = vmatpush1.bf16.msra.mxu1 %v8060_v1  ;;  %v8070_v48 = vld [vmem:[#allocation73_spill] sm:$0xff]  ;;  %v8071_v1 = vld [vmem:[#allocation74_spill] sm:$0xff] }
 0x794   :  { %3358 = vmatprep.subr.bf16.mxu0 %v8061_v13  ;;  %3399 = vmatprep.subr.bf16.mxu1 %v8062_v39  ;;  %v8072_v13 = vld [vmem:[#allocation75_spill] sm:$0xff]  ;;  %v8073_v39 = vld [vmem:[#allocation76_spill] sm:$0xff] }
 0x797   :  { %3359 = vmatpush1.bf16.msra.mxu0 %v8063_v8  ;;  %3400 = vmatpush1.bf16.msra.mxu1 %v8064_v56  ;;  %v8074_v8 = vld [vmem:[#allocation16_spill] sm:$0xff]  ;;  %v8075_v56 = vld [vmem:[#allocation78_spill] sm:$0xff] }
 0x798   :  { %3360 = vmatprep.subr.bf16.mxu0 %v8065_v44  ;;  %3401 = vmatprep.subr.bf16.mxu1 %v8066_v49  ;;  %v8076_v44 = vld [vmem:[#allocation21_spill] sm:$0xff]  ;;  %v8077_v49 = vld [vmem:[#allocation22_spill] sm:$0xff] }
 0x79b   :  { %3361 = vmatpush1.bf16.msra.mxu0 %v8067_v52  ;;  %3402 = vmatpush1.bf16.msra.mxu1 %v8068_v23  ;;  %v8078_v52 = vld [vmem:[#allocation23_spill] sm:$0xff]  ;;  %v8102_v23 = vld [vmem:[#allocation20_spill] sm:$0xff] }
 0x79c   :  { %3362 = vmatprep.subr.bf16.mxu0 %v8069_v21  ;;  %3403 = vmatprep.subr.bf16.mxu1 %v8070_v48 }
 0x79f   :  { %3363 = vmatpush1.bf16.msra.mxu0 %v8071_v1  ;;  %3404 = vmatpush1.bf16.msra.mxu1 %v8072_v13 }
 0x7a0   :  { %3364 = vmatprep.subr.bf16.mxu0 %v8073_v39  ;;  %3405 = vmatprep.subr.bf16.mxu1 %v8074_v8  ;;  %v6995_v8 = vld [vmem:[#allocation8 + $0x184] ss:$16 sps:$4 sm:$0xff]  }
 0x7a1   :  { %8079 = vst [vmem:[#allocation79_spill] sm:$0xff] %v6995_v8 }
 0x7a3   :  { %3365 = vmatpush2.bf16.msra.mxu0 %v8075_v56  ;;  %3406 = vmatpush2.bf16.msra.mxu1 %v8076_v44  ;;  %v6998_v44 = vld [vmem:[#allocation8 + $0x18c] ss:$16 sps:$4 sm:$0xff]  }
 0x7a4   :  { %3366 = vmatprep.subr.bf16.mxu0 %v8077_v49  ;;  %3407 = vmatprep.subr.bf16.mxu1 %v8078_v52  ;;  %8080 = vst [vmem:[#allocation80_spill] sm:$0xff] %v6998_v44  ;;  %v7001_v52 = vld [vmem:[#allocation8 + $0x180] ss:$16 sps:$4 sm:$0xff]  }
 0x7a5   :  { %8081 = vst [vmem:[#allocation81_spill] sm:$0xff] %v7001_v52 }
 0x7a7   :  { %3367 = vmatpush2.bf16.msra.mxu0 %v6841_v15  ;;  %3408 = vmatpush2.bf16.msra.mxu1 %v6844_v30  ;;  %v7004_v30 = vld [vmem:[#allocation8 + $0x188] ss:$16 sps:$4 sm:$0xff]  }
 0x7a8   :  { %3368 = vmatprep.subr.bf16.mxu0 %v6847_v3  ;;  %3409 = vmatprep.subr.bf16.mxu1 %v6850_v63  ;;  %8082 = vst [vmem:[#allocation82_spill] sm:$0xff] %v7004_v30  ;;  %v7007_v63 = vld [vmem:[#allocation8 + $0x164] ss:$16 sps:$4 sm:$0xff]  }
 0x7a9   :  { %8083 = vst [vmem:[#allocation83_spill] sm:$0xff] %v7007_v63 }
 0x7ab   :  { %3369 = vmatpush2.bf16.msra.mxu0 %v6853_v7  ;;  %3410 = vmatpush2.bf16.msra.mxu1 %v6856_v22  ;;  %v7010_v22 = vld [vmem:[#allocation8 + $0x16c] ss:$16 sps:$4 sm:$0xff]  }
 0x7ac   :  { %3370 = vmatprep.subr.bf16.mxu0 %v6995_v8  ;;  %3411 = vmatprep.subr.bf16.mxu1 %v6998_v44  ;;  %8084 = vst [vmem:[#allocation84_spill] sm:$0xff] %v7010_v22  ;;  %v7013_v8 = vld [vmem:[#allocation8 + $0x160] ss:$16 sps:$4 sm:$0xff]   ;;  %v7016_v44 = vld [vmem:[#allocation8 + $0x168] ss:$16 sps:$4 sm:$0xff]  }
 0x7ad   :  { %8085 = vst [vmem:[#allocation85_spill] sm:$0xff] %v7013_v8  ;;  %8086 = vst [vmem:[#allocation86_spill] sm:$0xff] %v7016_v44  ;;  %v8099_v7 = vld [vmem:[#allocation17_spill] sm:$0xff] }
 0x7af   :  { %3371 = vmatpush2.bf16.msra.mxu0 %v7001_v52  ;;  %3412 = vmatpush2.bf16.msra.mxu1 %v7004_v30  ;;  %v7019_v52 = vld [vmem:[#allocation8 + $0x144] ss:$16 sps:$4 sm:$0xff]   ;;  %v7022_v30 = vld [vmem:[#allocation8 + $0x14c] ss:$16 sps:$4 sm:$0xff]  }
 0x7b0   :  { %3372 = vmatprep.subr.bf16.mxu0 %v7007_v63  ;;  %3413 = vmatprep.subr.bf16.mxu1 %v7010_v22  ;;  %8087 = vst [vmem:[#allocation87_spill] sm:$0xff] %v7019_v52  ;;  %8088 = vst [vmem:[#allocation88_spill] sm:$0xff] %v7022_v30  ;;  %v7025_v63 = vld [vmem:[#allocation8 + $0x140] ss:$16 sps:$4 sm:$0xff]   ;;  %v7028_v22 = vld [vmem:[#allocation8 + $0x148] ss:$16 sps:$4 sm:$0xff]  }
 0x7b1   :  { %8089 = vst [vmem:[#allocation89_spill] sm:$0xff] %v7025_v63  ;;  %8090 = vst [vmem:[#allocation77_spill] sm:$0xff] %v7028_v22 }
 0x7b3   :  { %3373 = vmatpush2.bf16.msra.mxu0 %v7013_v8  ;;  %3414 = vmatpush2.bf16.msra.mxu1 %v7016_v44  ;;  %v7031_v8 = vld [vmem:[#allocation8 + $0x124] ss:$16 sps:$4 sm:$0xff]   ;;  %v7034_v44 = vld [vmem:[#allocation8 + $0x12c] ss:$16 sps:$4 sm:$0xff]  }
 0x7b4   :  { %3374 = vmatprep.subr.bf16.mxu0 %v7019_v52  ;;  %3415 = vmatprep.subr.bf16.mxu1 %v7022_v30  ;;  %8091 = vst [vmem:[#allocation30_spill] sm:$0xff] %v7031_v8  ;;  %8092 = vst [vmem:[#allocation31_spill] sm:$0xff] %v7034_v44  ;;  %v7037_v52 = vld [vmem:[#allocation8 + $0x120] ss:$16 sps:$4 sm:$0xff]   ;;  %v7040_v30 = vld [vmem:[#allocation8 + $0x128] ss:$16 sps:$4 sm:$0xff]  }
 0x7b5   :  { %8093 = vst [vmem:[#allocation32_spill] sm:$0xff] %v7037_v52  ;;  %8094 = vst [vmem:[#allocation33_spill] sm:$0xff] %v7040_v30 }
 0x7b7   :  { %3375 = vmatpush2.bf16.msra.mxu0 %v7025_v63  ;;  %3416 = vmatpush2.bf16.msra.mxu1 %v7028_v22  ;;  %v7043_v63 = vld [vmem:[#allocation8 + $0x104] ss:$16 sps:$4 sm:$0xff]   ;;  %v7046_v22 = vld [vmem:[#allocation8 + $0x10c] ss:$16 sps:$4 sm:$0xff]  }
 0x7b8   :  { %3376 = vmatprep.subr.bf16.mxu0 %v7031_v8  ;;  %3417 = vmatprep.subr.bf16.mxu1 %v7034_v44  ;;  %8095 = vst [vmem:[#allocation34_spill] sm:$0xff] %v7043_v63  ;;  %8096 = vst [vmem:[#allocation35_spill] sm:$0xff] %v7046_v22  ;;  %v7049_v8 = vld [vmem:[#allocation8 + $0x100] ss:$16 sps:$4 sm:$0xff]   ;;  %v7052_v44 = vld [vmem:[#allocation8 + $0x108] ss:$16 sps:$4 sm:$0xff]  }
 0x7b9   :  { %8097 = vst [vmem:[#allocation36_spill] sm:$0xff] %v7049_v8  ;;  %8098 = vst [vmem:[#allocation37_spill] sm:$0xff] %v7052_v44 }
 0x7bb   :  { %3377 = vmatpush2.bf16.msra.mxu0 %v7037_v52  ;;  %3418 = vmatpush2.bf16.msra.mxu1 %v7040_v30 }
 0x7bc   :  { %3378 = vmatprep.subr.bf16.mxu0 %v7043_v63  ;;  %3419 = vmatprep.subr.bf16.mxu1 %v7046_v22  ;;  %v8100_v22 = vld [vmem:[#allocation18_spill] sm:$0xff] }
 0x7bf   :  { %3379 = vmatpush2.bf16.msra.mxu0 %v7049_v8  ;;  %3420 = vmatpush2.bf16.msra.mxu1 %v7052_v44  ;;  %v8101_v44 = vld [vmem:[#allocation19_spill] sm:$0xff] }
 0x7c0   :  { %3465 = vmatprep.subr.bf16.mxu0 %v6591_v16  ;;  %3506 = vmatprep.subr.bf16.mxu1 %v6880_v46 }
 0x822   :  { %v3084_v30 = vpop.f32.mrf.mxu0  ;;  %v3125_v52 = vpop.f32.mrf.mxu1 }
 0x823   :  { %v3085_v63 = vadd.f32 %v3084_v30, %v8099_v7  ;;  %v3126_v16 = vadd.f32 %v3125_v52, %v8101_v44 }
 0x824   :  { %v3086_v3 = vpop.f32.mrf.mxu0  ;;  %v3127_v15 = vpop.f32.mrf.mxu1 }
 0x825   :  { %v4387_v49 = vmul.f32 -1.442695, %v3085_v63  ;;  %v3087_v56 = vadd.f32 %v3086_v3, %v8100_v22  ;;  %v4389_v21 = vmul.f32 -1.442695, %v3126_v16  ;;  %v3128_v33 = vadd.f32 %v3127_v15, %v8102_v23 }
 0x826   :  { %v3088_v39 = vpop.f32.mrf.mxu0  ;;  %v3129_v13 = vpop.f32.mrf.mxu1 }
 0x827   :  { %4996 = vpow2.f32 %v4387_v49  ;;  %v4388_v8 = vmul.f32 -1.442695, %v3087_v56 }
 0x828   :  { %v3089_v1 = vpop.f32.mrf.mxu0  ;;  %v3130_v48 = vpop.f32.mrf.mxu1 }
 0x829   :  { %4998 = vpow2.f32 %v4388_v8 }
 0x82a   :  { %5000 = vpow2.f32 %v4389_v21 }
 0x834   :  { %v4997_v46 = vpop.eup %4996 }
 0x835   :  { %v3141_v30 = vadd.f32 1.0, %v4997_v46 }
 0x836   :  { %v4999_v7 = vpop.eup %4998 }
 0x837   :  { %5002 = vrcp.f32 %v3141_v30  ;;  %v3142_v63 = vadd.f32 1.0, %v4999_v7  ;;  %v5001_v3 = vpop.eup %5000 }
 0x838   :  { %5004 = vtanh.f32 %v3128_v33  ;;  %v3143_v8 = vadd.f32 1.0, %v5001_v3 }
 0x839   :  { %5006 = vrcp.f32 %v3142_v63 }
 0x83a   :  { %5008 = vrcp.f32 %v3143_v8 }
 0x842   :  { %v3201_v39 = vpop.f32.mrf.mxu0  ;;  %v3242_v49 = vpop.f32.mrf.mxu1 }
 0x843   :  { %v3253_v13 = vrot.slane %v3201_v39, 2  ;;  %v3257_v1 = vrot.slane %v3201_v39, 3 }
 0x844   :  { %v5003_v48 = vpop.eup %5002  ;;  %v3203_v56 = vpop.f32.mrf.mxu0 }
 0x845   :  { %v3244_v52 = vpop.f32.mrf.mxu1  ;;  %v5005_v16 = vpop.eup %5004  ;;  %v3269_v21 = vadd.f32 %v3253_v13, %v5832_v60  ;;  %v3273_v15 = vadd.f32 %v3257_v1, %v5837_v11  ;;  %v3254_v23 = vrot.slane %v3203_v56, 2  ;;  %v3258_v30 = vrot.slane %v3203_v56, 3 }
 0x846   :  { %v5007_v46 = vpop.eup %5006  ;;  %v3205_v7 = vpop.f32.mrf.mxu0  ;;  %v3152_v44 = vmul.f32 %v5005_v16, %v5003_v48  ;;  %v3256_v8 = vrot.slane %v3244_v52, 2  ;;  %v3260_v16 = vrot.slane %v3244_v52, 3 }
 0x847   :  { %v3246_v33 = vpop.f32.mrf.mxu1  ;;  %v3151_v63 = vmul.f32 %v5007_v46, %v6892_v47  ;;  %v4390_v22 = vmul.f32 -1.442695, %v3269_v21  ;;  %v4393_v45 = vmul.f32 -1.442695, %v3273_v15  ;;  %v3270_v3 = vadd.f32 %v3254_v23, %v7760_v14 }
 0x848   :  { %v3274_v39 = vadd.f32 %v3258_v30, %v7759_v53  ;;  %v3206_v37 = vpop.f32.mrf.mxu0  ;;  %v3255_v7 = vrot.slane %v3242_v49, 2  ;;  %v3259_v47 = vrot.slane %v3242_v49, 3  ;;  %v3276_v15 = vadd.f32 %v3260_v16, %v5860_v29 }
 0x849   :  { %v3247_v17 = vpop.f32.mrf.mxu1  ;;  %v7066_v13 = vadd.f32 %v3152_v44, %v3151_v63  ;;  %5010 = vpow2.f32 %v4390_v22  ;;  %v4391_v1 = vmul.f32 -1.442695, %v3270_v3  ;;  %v3272_v22 = vadd.f32 %v3256_v8, %v5858_v0 }
 0x84a   :  { %5012 = vpow2.f32 %v4393_v45  ;;  %v4394_v56 = vmul.f32 -1.442695, %v3274_v39  ;;  %v3271_v48 = vadd.f32 %v3255_v7, %v5852_v2  ;;  %v3275_v23 = vadd.f32 %v3259_v47, %v5854_v62  ;;  %v5009_v17 = vpop.eup %5008 }
 0x84b   :  { %5014 = vtanh.f32 %v7066_v13 }
 0x84c   :  { %5016 = vpow2.f32 %v4391_v1  ;;  %v4392_v37 = vmul.f32 -1.442695, %v3271_v48  ;;  %v4395_v44 = vmul.f32 -1.442695, %v3275_v23 }
 0x84d   :  { %5018 = vpow2.f32 %v4394_v56 }
 0x84e   :  { %5020 = vpow2.f32 %v4392_v37 }
 0x84f   :  { %5022 = vpow2.f32 %v4395_v44 }
 0x850   :  { %5024 = vtanh.f32 %v3272_v22 }
 0x851   :  { %5026 = vtanh.f32 %v3276_v15 }
 0x856   :  { %v5011_v21 = vpop.eup %5010 }
 0x857   :  { %v5013_v45 = vpop.eup %5012  ;;  %v3295_v30 = vadd.f32 1.0, %v5011_v21 }
 0x858   :  { %v5015_v46 = vpop.eup %5014  ;;  %v3298_v49 = vadd.f32 1.0, %v5013_v45 }
 0x859   :  { %v3155_v33 = vmul.f32 %v5015_v46, %v5009_v17  ;;  %v5017_v63 = vpop.eup %5016  ;;  %5028 = vrcp.f32 %v3295_v30 }
 0x85a   :  { %v5019_v39 = vpop.eup %5018  ;;  %v3296_v1 = vadd.f32 1.0, %v5017_v63  ;;  %5030 = vrcp.f32 %v3298_v49  ;;  %v3317_v49 = vrot.slane %v6912_v51, 7 }
 0x85b   :  { %v3338_v3 = vrot.slane %v3155_v33, 2  ;;  %v3881_v52 = vrot.slane %v3155_v33, %v6010_v10  ;;  %v3299_v56 = vadd.f32 1.0, %v5019_v39  ;;  %v5021_v21 = vpop.eup %5020 }
 0x85c   :  { %5032 = vrcp.f32 %v3296_v1  ;;  %v5023_v22 = vpop.eup %5022  ;;  %v3297_v33 = vadd.f32 1.0, %v5021_v21 }
 0x85d   :  { %v3341_v7 = vpack.c.bf16 %v3338_v3, %v3338_v3  ;;  %v3882_v47 = vcombine.high %v3881_v52, %v3881_v52  ;;  %v3889_v48 = vrot.slane %v3881_v52, %v6010_v10  ;;  %5034 = vrcp.f32 %v3299_v56  ;;  %v5025_v45 = vpop.eup %5024 }
 0x85e   :  { %v5027_v15 = vpop.eup %5026  ;;  %v3318_v3 = vrot.slane %v6914_v54, 7  ;;  %v3300_v52 = vadd.f32 1.0, %v5023_v22  ;;  %5036 = vrcp.f32 %v3297_v33 }
 0x85f   :  { %v3345_v23 = vrot.slane %v3341_v7, 3  ;;  %v3896_v8 = vrot.slane %v3882_v47, %v6010_v10  ;;  %v3985_v16 = vrot.slane %v3889_v48, %v5824_v20 }
 0x860   :  { %5038 = vrcp.f32 %v3300_v52  ;;  %v8128_v52 = vld [vmem:[#allocation64_spill] sm:$0xff] }
 0x861   :  { %3380 = vmatprep.mubr.bf16.mxu0 %v3345_v23  ;;  %v3989_v37 = vrot.slane %v3896_v8, %v5824_v20  ;;  %3421 = vmatprep.mubr.bf16.mxu1 %v3345_v23  ;;  %v7079_v17 = vsel %vm4024_vm11, %v6905_v18, %v3985_v16 }
 0x863   :  { %v7082_v44 = vsel %vm4024_vm11, %v6908_v58, %v3989_v37 }
 0x866   :  { %v5029_v46 = vpop.eup %5028 }
 0x867   :  { %v5031_v30 = vpop.eup %5030  ;;  %v3323_v18 = vmul.f32 %v5029_v46, %v5025_v45 }
 0x868   :  { %v3324_v7 = vmul.f32 %v5031_v30, %v5027_v15 }
 0x869   :  { %v5033_v63 = vpop.eup %5032 }
 0x86a   :  { %v5035_v39 = vpop.eup %5034  ;;  %v3321_v1 = vmul.f32 %v5033_v63, %v3317_v49 }
 0x86b   :  { %v3322_v56 = vmul.f32 %v5035_v39, %v3318_v3  ;;  %v5037_v51 = vpop.eup %5036  ;;  %v8129_v39 = vld [vmem:[#allocation65_spill] sm:$0xff] }
 0x86c   :  { %v7086_v58 = vadd.f32 %v3323_v18, %v3321_v1  ;;  %v8130_v1 = vld [vmem:[#allocation66_spill] sm:$0xff]  ;;  %v8131_v18 = vld [vmem:[#allocation67_spill] sm:$0xff] }
 0x86d   :  { %v7088_v47 = vadd.f32 %v3324_v7, %v3322_v56  ;;  %v5039_v48 = vpop.eup %5038  ;;  %v8132_v56 = vld [vmem:[#allocation68_spill] sm:$0xff]  ;;  %v8133_v7 = vld [vmem:[#allocation69_spill] sm:$0xff] }
 0x86e   :  { %5040 = vtanh.f32 %v7086_v58 }
 0x86f   :  { %5042 = vtanh.f32 %v7088_v47 }
 0x87b   :  { %v5041_v23 = vpop.eup %5040 }
 0x87c   :  { %v5043_v54 = vpop.eup %5042  ;;  %v3329_v8 = vmul.f32 %v5041_v23, %v5037_v51  ;;  %v8134_v51 = vld [vmem:[#allocation70_spill] sm:$0xff]  ;;  %v8136_v23 = vld [vmem:[#allocation72_spill] sm:$0xff] }
 0x87d   :  { %v3330_v16 = vmul.f32 %v5043_v54, %v5039_v48  ;;  %v8135_v48 = vld [vmem:[#allocation71_spill] sm:$0xff]  ;;  %v8137_v54 = vld [vmem:[#allocation73_spill] sm:$0xff] }
 0x87e   :  { %v3454_v37 = vpack.c.bf16 %v3329_v8, %v3329_v8 }
 0x87f   :  { %v3333_v21 = vrot.slane %v3330_v16, 7  ;;  %v3455_v22 = vpack.c.bf16 %v3330_v16, %v3330_v16  ;;  %v8139_v16 = vld [vmem:[#allocation75_spill] sm:$0xff] }
 0x880   :  { %v3458_v45 = vunpack.c.l.b16 %v3454_v37  ;;  %v8140_v37 = vld [vmem:[#allocation76_spill] sm:$0xff] }
 0x881   :  { %v3335_v15 = vsel %vm3334_vm12, %v3333_v21, %v3329_v8  ;;  %v3459_v46 = vunpack.c.l.b16 %v3455_v22  ;;  %v8138_v8 = vld [vmem:[#allocation74_spill] sm:$0xff]  ;;  %v8141_v21 = vld [vmem:[#allocation16_spill] sm:$0xff] }
 0x882   :  { %v3340_v30 = vpack.c.bf16 %v3335_v15, %v3335_v15  ;;  %v3460_v49 = vrot.slane %v3458_v45, 6  ;;  %v8142_v22 = vld [vmem:[#allocation78_spill] sm:$0xff]  ;;  %v8143_v45 = vld [vmem:[#allocation21_spill] sm:$0xff] }
 0x883   :  { %v3461_v33 = vrot.slane %v3459_v46, 5  ;;  %v8144_v15 = vld [vmem:[#allocation22_spill] sm:$0xff]  ;;  %v8145_v46 = vld [vmem:[#allocation23_spill] sm:$0xff] }
 0x884   :  { %v3344_v63 = vrot.slane %v3340_v30, 3  ;;  %v8146_v30 = vld [vmem:[#allocation24_spill] sm:$0xff] }
 0x885   :  { %v3462_v3 = vsel %vm1207_vm1, %v3461_v33, %v3460_v49  ;;  %v8147_v49 = vld [vmem:[#allocation25_spill] sm:$0xff]  ;;  %v8148_v33 = vld [vmem:[#allocation26_spill] sm:$0xff] }
 0x886   :  { %3381 = vmatmul.mubr.bf16.vlgmr.msra.gmra.mxu0 %v3344_v63  ;;  %3422 = vmatmul.mubr.bf16.vlgmr.msra.gmra.mxu1 %v3344_v63  ;;  %v8149_v63 = vld [vmem:[#allocation27_spill] sm:$0xff] }
 0x887   :  { %3466 = vmatpush1.bf16.msra.mxu0 %v6633_v28  ;;  %3507 = vmatpush1.bf16.msra.mxu1 %v6636_v6  ;;  %v8104_v28 = vld [vmem:[#allocation40_spill] sm:$0xff]  ;;  %v8105_v6 = vld [vmem:[#allocation41_spill] sm:$0xff] }
 0x888   :  { %3467 = vmatprep.subr.bf16.mxu0 %v6639_v25  ;;  %3508 = vmatprep.subr.bf16.mxu1 %v6642_v26  ;;  %v8106_v25 = vld [vmem:[#allocation42_spill] sm:$0xff]  ;;  %v8107_v26 = vld [vmem:[#allocation43_spill] sm:$0xff] }
 0x889   :  { %3497 = vmatprep.mubr.bf16.mxu0 %v7690_v59  ;;  %3538 = vmatprep.mubr.bf16.mxu1 %v7690_v59  ;;  %v8103_v59 = vld [vmem:[#allocation39_spill] sm:$0xff] }
 0x88b   :  { %3468 = vmatpush1.bf16.msra.mxu0 %v6647_v19  ;;  %3509 = vmatpush1.bf16.msra.mxu1 %v6650_v42  ;;  %v3463_v19 = vpack.c.b16 %v3462_v3, %v3462_v3  ;;  %v8108_v42 = vld [vmem:[#allocation44_spill] sm:$0xff] }
 0x88c   :  { %3469 = vmatprep.subr.bf16.mxu0 %v6653_v9  ;;  %3510 = vmatprep.subr.bf16.mxu1 %v6656_v41  ;;  %v8109_v9 = vld [vmem:[#allocation45_spill] sm:$0xff]  ;;  %v8110_v41 = vld [vmem:[#allocation46_spill] sm:$0xff]  ;;  %v8150_v3 = vld [vmem:[#allocation28_spill] sm:$0xff] }
 0x88f   :  { %3470 = vmatpush1.bf16.msra.mxu0 %v6659_v27  ;;  %3511 = vmatpush1.bf16.msra.mxu1 %v6662_v36  ;;  %v8111_v27 = vld [vmem:[#allocation47_spill] sm:$0xff]  ;;  %v8112_v36 = vld [vmem:[#allocation48_spill] sm:$0xff] }
 0x890   :  { %3471 = vmatprep.subr.bf16.mxu0 %v6665_v35  ;;  %3512 = vmatprep.subr.bf16.mxu1 %v6668_v43  ;;  %v8113_v35 = vld [vmem:[#allocation49_spill] sm:$0xff]  ;;  %v8114_v43 = vld [vmem:[#allocation50_spill] sm:$0xff] }
 0x893   :  { %3472 = vmatpush1.bf16.msra.mxu0 %v6671_v38  ;;  %3513 = vmatpush1.bf16.msra.mxu1 %v6674_v32  ;;  %v8115_v38 = vld [vmem:[#allocation51_spill] sm:$0xff]  ;;  %v8116_v32 = vld [vmem:[#allocation52_spill] sm:$0xff] }
 0x894   :  { %3473 = vmatprep.subr.bf16.mxu0 %v6677_v24  ;;  %3514 = vmatprep.subr.bf16.mxu1 %v6680_v5  ;;  %v8117_v24 = vld [vmem:[#allocation53_spill] sm:$0xff]  ;;  %v8118_v5 = vld [vmem:[#allocation54_spill] sm:$0xff] }
 0x897   :  { %3474 = vmatpush1.bf16.msra.mxu0 %v8028_v40  ;;  %3515 = vmatpush1.bf16.msra.mxu1 %v8029_v50  ;;  %v8119_v40 = vld [vmem:[#allocation55_spill] sm:$0xff]  ;;  %v8120_v50 = vld [vmem:[#allocation56_spill] sm:$0xff] }
 0x898   :  { %3475 = vmatprep.subr.bf16.mxu0 %v8030_v12  ;;  %3516 = vmatprep.subr.bf16.mxu1 %v8031_v31  ;;  %v8121_v12 = vld [vmem:[#allocation57_spill] sm:$0xff]  ;;  %v8122_v31 = vld [vmem:[#allocation58_spill] sm:$0xff] }
 0x89b   :  { %3476 = vmatpush1.bf16.msra.mxu0 %v8032_v34  ;;  %3517 = vmatpush1.bf16.msra.mxu1 %v8033_v61  ;;  %v8123_v34 = vld [vmem:[#allocation59_spill] sm:$0xff]  ;;  %v8124_v61 = vld [vmem:[#allocation60_spill] sm:$0xff] }
 0x89c   :  { %3477 = vmatprep.subr.bf16.mxu0 %v8034_v55  ;;  %3518 = vmatprep.subr.bf16.mxu1 %v8035_v4  ;;  %v8125_v55 = vld [vmem:[#allocation61_spill] sm:$0xff]  ;;  %v8126_v4 = vld [vmem:[#allocation62_spill] sm:$0xff] }
 0x89f   :  { %3478 = vmatpush1.bf16.msra.mxu0 %v8036_v57  ;;  %3519 = vmatpush1.bf16.msra.mxu1 %v8103_v59  ;;  %v8127_v57 = vld [vmem:[#allocation63_spill] sm:$0xff]  ;;  %v8151_v59 = vld [vmem:[#allocation29_spill] sm:$0xff] }
 0x8a0   :  { %3479 = vmatprep.subr.bf16.mxu0 %v8104_v28  ;;  %3520 = vmatprep.subr.bf16.mxu1 %v8105_v6  ;;  %v8152_v28 = vld [vmem:[#allocation79_spill] sm:$0xff]  ;;  %v8153_v6 = vld [vmem:[#allocation80_spill] sm:$0xff] }
 0x8a3   :  { %3480 = vmatpush1.bf16.msra.mxu0 %v8106_v25  ;;  %3521 = vmatpush1.bf16.msra.mxu1 %v8107_v26  ;;  %v8154_v25 = vld [vmem:[#allocation81_spill] sm:$0xff]  ;;  %v8155_v26 = vld [vmem:[#allocation82_spill] sm:$0xff] }
 0x8a4   :  { %3657 = vmatprep.subr.bf16.mxu0 %v8108_v42  ;;  %3698 = vmatprep.subr.bf16.mxu1 %v8109_v9  ;;  %v8157_v42 = vld [vmem:[#allocation84_spill] sm:$0xff]  ;;  %v8158_v9 = vld [vmem:[#allocation85_spill] sm:$0xff] }
 0x8a6   :  { %3498 = vmatmul.mubr.bf16.vlgmr.msra.gmra.mxu0 %v3463_v19  ;;  %3539 = vmatmul.mubr.bf16.vlgmr.msra.gmra.mxu1 %v3463_v19  ;;  %v8156_v19 = vld [vmem:[#allocation83_spill] sm:$0xff] }
 0x8a7   :  { %3658 = vmatpush1.bf16.msra.mxu0 %v8110_v41  ;;  %3699 = vmatpush1.bf16.msra.mxu1 %v8111_v27  ;;  %v8159_v41 = vld [vmem:[#allocation86_spill] sm:$0xff]  ;;  %v8160_v27 = vld [vmem:[#allocation87_spill] sm:$0xff] }
 0x8a8   :  { %3659 = vmatprep.subr.bf16.mxu0 %v8112_v36  ;;  %3700 = vmatprep.subr.bf16.mxu1 %v8113_v35  ;;  %v8161_v36 = vld [vmem:[#allocation88_spill] sm:$0xff]  ;;  %v8162_v35 = vld [vmem:[#allocation89_spill] sm:$0xff] }
 0x8ab   :  { %3660 = vmatpush1.bf16.msra.mxu0 %v8114_v43  ;;  %3701 = vmatpush1.bf16.msra.mxu1 %v8115_v38  ;;  %v8163_v43 = vld [vmem:[#allocation77_spill] sm:$0xff]  ;;  %v8164_v38 = vld [vmem:[#allocation30_spill] sm:$0xff] }
 0x8ac   :  { %3661 = vmatprep.subr.bf16.mxu0 %v8116_v32  ;;  %3702 = vmatprep.subr.bf16.mxu1 %v8117_v24  ;;  %v8165_v32 = vld [vmem:[#allocation31_spill] sm:$0xff]  ;;  %v8166_v24 = vld [vmem:[#allocation32_spill] sm:$0xff] }
 0x8af   :  { %3662 = vmatpush1.bf16.msra.mxu0 %v8118_v5  ;;  %3703 = vmatpush1.bf16.msra.mxu1 %v8119_v40  ;;  %v8167_v5 = vld [vmem:[#allocation33_spill] sm:$0xff]  ;;  %v8168_v40 = vld [vmem:[#allocation34_spill] sm:$0xff] }
 0x8b0   :  { %3663 = vmatprep.subr.bf16.mxu0 %v8120_v50  ;;  %3704 = vmatprep.subr.bf16.mxu1 %v8121_v12  ;;  %v8169_v50 = vld [vmem:[#allocation35_spill] sm:$0xff]  ;;  %v8170_v12 = vld [vmem:[#allocation36_spill] sm:$0xff] }
 0x8b3   :  { %3664 = vmatpush1.bf16.msra.mxu0 %v8122_v31  ;;  %3705 = vmatpush1.bf16.msra.mxu1 %v8123_v34  ;;  %v8171_v31 = vld [vmem:[#allocation37_spill] sm:$0xff] }
 0x8b4   :  { %3665 = vmatprep.subr.bf16.mxu0 %v8124_v61  ;;  %3706 = vmatprep.subr.bf16.mxu1 %v8125_v55  ;;  %v8172_v55 = vld [vmem:[#allocation17_spill] sm:$0xff] }
 0x8b7   :  { %3666 = vmatpush1.bf16.msra.mxu0 %v8126_v4  ;;  %3707 = vmatpush1.bf16.msra.mxu1 %v8127_v57 }
 0x8b8   :  { %3667 = vmatprep.subr.bf16.mxu0 %v8128_v52  ;;  %3708 = vmatprep.subr.bf16.mxu1 %v8129_v39 }
 0x8bb   :  { %3668 = vmatpush1.bf16.msra.mxu0 %v8130_v1  ;;  %3709 = vmatpush1.bf16.msra.mxu1 %v8131_v18  ;;  %v8173_v1 = vld [vmem:[#allocation18_spill] sm:$0xff] }
 0x8bc   :  { %3669 = vmatprep.subr.bf16.mxu0 %v8132_v56  ;;  %3710 = vmatprep.subr.bf16.mxu1 %v8133_v7 }
 0x8bf   :  { %3670 = vmatpush1.bf16.msra.mxu0 %v8134_v51  ;;  %3711 = vmatpush1.bf16.msra.mxu1 %v8135_v48 }
 0x8c0   :  { %3671 = vmatprep.subr.bf16.mxu0 %v8136_v23  ;;  %3712 = vmatprep.subr.bf16.mxu1 %v8137_v54  ;;  %v8174_v54 = vld [vmem:[#allocation19_spill] sm:$0xff] }
 0x8c3   :  { %3672 = vmatpush1.bf16.msra.mxu0 %v8138_v8  ;;  %3713 = vmatpush1.bf16.msra.mxu1 %v8139_v16 }
 0x8c4   :  { %3673 = vmatprep.subr.bf16.mxu0 %v8140_v37  ;;  %3714 = vmatprep.subr.bf16.mxu1 %v8141_v21  ;;  %v8175_v21 = vld [vmem:[#allocation20_spill] sm:$0xff] }
 0x8c7   :  { %3674 = vmatpush2.bf16.msra.mxu0 %v8142_v22  ;;  %3715 = vmatpush2.bf16.msra.mxu1 %v8143_v45 }
 0x8c8   :  { %3675 = vmatprep.subr.bf16.mxu0 %v8144_v15  ;;  %3716 = vmatprep.subr.bf16.mxu1 %v8145_v46 }
 0x8cb   :  { %3676 = vmatpush2.bf16.msra.mxu0 %v8146_v30  ;;  %3717 = vmatpush2.bf16.msra.mxu1 %v8147_v49 }
 0x8cc   :  { %3677 = vmatprep.subr.bf16.mxu0 %v8148_v33  ;;  %3718 = vmatprep.subr.bf16.mxu1 %v8149_v63 }
 0x8cf   :  { %3678 = vmatpush2.bf16.msra.mxu0 %v8150_v3  ;;  %3719 = vmatpush2.bf16.msra.mxu1 %v8151_v59 }
 0x8d0   :  { %3679 = vmatprep.subr.bf16.mxu0 %v8152_v28  ;;  %3720 = vmatprep.subr.bf16.mxu1 %v8153_v6 }
 0x8d3   :  { %3680 = vmatpush2.bf16.msra.mxu0 %v8154_v25  ;;  %3721 = vmatpush2.bf16.msra.mxu1 %v8155_v26 }
 0x8d4   :  { %3681 = vmatprep.subr.bf16.mxu0 %v8156_v19  ;;  %3722 = vmatprep.subr.bf16.mxu1 %v8157_v42 }
 0x8d7   :  { %3682 = vmatpush2.bf16.msra.mxu0 %v8158_v9  ;;  %3723 = vmatpush2.bf16.msra.mxu1 %v8159_v41 }
 0x8d8   :  { %3683 = vmatprep.subr.bf16.mxu0 %v8160_v27  ;;  %3724 = vmatprep.subr.bf16.mxu1 %v8161_v36 }
 0x8db   :  { %3684 = vmatpush2.bf16.msra.mxu0 %v8162_v35  ;;  %3725 = vmatpush2.bf16.msra.mxu1 %v8163_v43 }
 0x8dc   :  { %3685 = vmatprep.subr.bf16.mxu0 %v8164_v38  ;;  %3726 = vmatprep.subr.bf16.mxu1 %v8165_v32 }
 0x8df   :  { %3686 = vmatpush2.bf16.msra.mxu0 %v8166_v24  ;;  %3727 = vmatpush2.bf16.msra.mxu1 %v8167_v5 }
 0x8e0   :  { %3687 = vmatprep.subr.bf16.mxu0 %v8168_v40  ;;  %3728 = vmatprep.subr.bf16.mxu1 %v8169_v50 }
 0x8e3   :  { %3688 = vmatpush2.bf16.msra.mxu0 %v8170_v12  ;;  %3729 = vmatpush2.bf16.msra.mxu1 %v8171_v31 }
 0x946   :  { %v3382_v34 = vpop.f32.mrf.mxu0  ;;  %v3423_v61 = vpop.f32.mrf.mxu1 }
 0x947   :  { %v3383_v4 = vadd.f32 %v3382_v34, %v8172_v55  ;;  %v3424_v8 = vadd.f32 %v3423_v61, %v8174_v54 }
 0x948   :  { %v3384_v57 = vpop.f32.mrf.mxu0  ;;  %v3425_v52 = vpop.f32.mrf.mxu1 }
 0x949   :  { %v4396_v39 = vmul.f32 -1.442695, %v3383_v4  ;;  %v3385_v18 = vadd.f32 %v3384_v57, %v8173_v1  ;;  %v4398_v16 = vmul.f32 -1.442695, %v3424_v8  ;;  %v3426_v22 = vadd.f32 %v3425_v52, %v8175_v21 }
 0x94a   :  { %v3386_v56 = vpop.f32.mrf.mxu0  ;;  %v3427_v7 = vpop.f32.mrf.mxu1 }
 0x94b   :  { %5044 = vpow2.f32 %v4396_v39  ;;  %v4397_v51 = vmul.f32 -1.442695, %v3385_v18 }
 0x94c   :  { %v3387_v48 = vpop.f32.mrf.mxu0  ;;  %v3428_v23 = vpop.f32.mrf.mxu1 }
 0x94d   :  { %5046 = vpow2.f32 %v4397_v51 }
 0x94e   :  { %5048 = vpow2.f32 %v4398_v16 }
 0x958   :  { %v5045_v37 = vpop.eup %5044 }
 0x959   :  { %v3439_v45 = vadd.f32 1.0, %v5045_v37 }
 0x95a   :  { %v5047_v15 = vpop.eup %5046 }
 0x95b   :  { %5050 = vrcp.f32 %v3439_v45  ;;  %v3440_v46 = vadd.f32 1.0, %v5047_v15  ;;  %v5049_v30 = vpop.eup %5048 }
 0x95c   :  { %5052 = vtanh.f32 %v3426_v22  ;;  %v3441_v28 = vadd.f32 1.0, %v5049_v30 }
 0x95d   :  { %5054 = vrcp.f32 %v3440_v46 }
 0x95e   :  { %5056 = vrcp.f32 %v3441_v28 }
 0x966   :  { %v3499_v49 = vpop.f32.mrf.mxu0  ;;  %v3540_v33 = vpop.f32.mrf.mxu1 }
 0x967   :  { %v3551_v63 = vrot.slane %v3499_v49, 1  ;;  %v3555_v3 = vrot.slane %v3499_v49, 2  ;;  %v3553_v34 = vrot.slane %v3540_v33, 1 }
 0x968   :  { %v5051_v59 = vpop.eup %5050  ;;  %v3501_v6 = vpop.f32.mrf.mxu0 }
 0x969   :  { %v3542_v25 = vpop.f32.mrf.mxu1  ;;  %v5053_v26 = vpop.eup %5052  ;;  %v3567_v19 = vadd.f32 %v3551_v63, %v5832_v60  ;;  %v3571_v42 = vadd.f32 %v3555_v3, %v5837_v11  ;;  %v3552_v41 = vrot.slane %v3501_v6, 1  ;;  %v3556_v27 = vrot.slane %v3501_v6, 2 }
 0x96a   :  { %v5055_v9 = vpop.eup %5054  ;;  %v3503_v36 = vpop.f32.mrf.mxu0  ;;  %v3450_v38 = vmul.f32 %v5053_v26, %v5051_v59  ;;  %v3569_v61 = vadd.f32 %v3553_v34, %v5852_v2  ;;  %v3554_v4 = vrot.slane %v3542_v25, 1 }
 0x96b   :  { %v3544_v35 = vpop.f32.mrf.mxu1  ;;  %v3449_v43 = vmul.f32 %v5055_v9, %v7066_v13  ;;  %v4399_v32 = vmul.f32 -1.442695, %v3567_v19  ;;  %v4402_v24 = vmul.f32 -1.442695, %v3571_v42  ;;  %v3568_v5 = vadd.f32 %v3552_v41, %v7760_v14  ;;  %v5057_v52 = vpop.eup %5056 }
 0x96c   :  { %v3572_v40 = vadd.f32 %v3556_v27, %v7759_v53  ;;  %v3504_v50 = vpop.f32.mrf.mxu0  ;;  %v3557_v13 = vrot.slane %v3540_v33, 2  ;;  %v3558_v53 = vrot.slane %v3542_v25, 2  ;;  %v4401_v57 = vmul.f32 -1.442695, %v3569_v61 }
 0x96d   :  { %v3545_v12 = vpop.f32.mrf.mxu1  ;;  %v7198_v60 = vadd.f32 %v3450_v38, %v3449_v43  ;;  %5058 = vpow2.f32 %v4399_v32  ;;  %v4400_v11 = vmul.f32 -1.442695, %v3568_v5  ;;  %v3570_v56 = vadd.f32 %v3554_v4, %v5858_v0 }
 0x96e   :  { %5060 = vpow2.f32 %v4402_v24  ;;  %v4403_v31 = vmul.f32 -1.442695, %v3572_v40  ;;  %v3573_v14 = vadd.f32 %v3557_v13, %v5854_v62  ;;  %v3574_v51 = vadd.f32 %v3558_v53, %v5860_v29 }
 0x96f   :  { %5062 = vtanh.f32 %v7198_v60  ;;  %v3615_v35 = vrot.slane %v7086_v58, 7  ;;  %v3616_v38 = vrot.slane %v7088_v47, 7 }
 0x970   :  { %5064 = vpow2.f32 %v4400_v11  ;;  %v4404_v39 = vmul.f32 -1.442695, %v3573_v14 }
 0x971   :  { %5066 = vpow2.f32 %v4403_v31 }
 0x972   :  { %5068 = vpow2.f32 %v4401_v57 }
 0x973   :  { %5070 = vpow2.f32 %v4404_v39 }
 0x974   :  { %5072 = vtanh.f32 %v3570_v56  ;;  %v4716_v56 = vld [vmem:[#allocation10 + $0x38] sm:$0xff]  }
 0x975   :  { %5074 = vtanh.f32 %v3574_v51  ;;  %v4717_v51 = vld [vmem:[#allocation10 + $0x30] sm:$0xff]  }
 0x97a   :  { %v5059_v18 = vpop.eup %5058 }
 0x97b   :  { %v5061_v7 = vpop.eup %5060  ;;  %v3593_v23 = vadd.f32 1.0, %v5059_v18 }
 0x97c   :  { %v5063_v48 = vpop.eup %5062  ;;  %v3596_v8 = vadd.f32 1.0, %v5061_v7  ;;  %v5442_v7 = vmov 0.0  }
 0x97d   :  { %v3453_v16 = vmul.f32 %v5063_v48, %v5057_v52  ;;  %v5065_v2 = vpop.eup %5064  ;;  %5076 = vrcp.f32 %v3593_v23  ;;  %4425 = vmatprep.subr.bf16.mxu0 %v5442_v7  ;;  %v4718_v48 = vld [vmem:[#allocation10 + $0x28] sm:$0xff]   ;;  %v4719_v23 = vld [vmem:[#allocation10 + $0x20] sm:$0xff]  }
 0x97e   :  { %v5067_v22 = vpop.eup %5066  ;;  %v3594_v45 = vadd.f32 1.0, %v5065_v2  ;;  %5078 = vrcp.f32 %v3596_v8  ;;  %v4720_v8 = vld [vmem:[#allocation10 + $0x18] sm:$0xff]   ;;  %v4722_v2 = vld [vmem:[#allocation10 + $0x8] sm:$0xff]  }
 0x97f   :  { %v3635_v62 = vrot.slane %v3453_v16, 1  ;;  %v3903_v37 = vrot.slane %v3453_v16, %v6010_v10  ;;  %v3597_v0 = vadd.f32 1.0, %v5067_v22  ;;  %v5069_v19 = vpop.eup %5068  ;;  %v4721_v16 = vld [vmem:[#allocation10 + $0x10] sm:$0xff]  }
 0x980   :  { %5080 = vrcp.f32 %v3594_v45  ;;  %v5071_v42 = vpop.eup %5070  ;;  %v3595_v12 = vadd.f32 1.0, %v5069_v19 }
 0x981   :  { %v3638_v15 = vpack.c.bf16 %v3635_v62, %v3635_v62  ;;  %v3904_v46 = vcombine.high %v3903_v37, %v3903_v37  ;;  %v3911_v29 = vrot.slane %v3903_v37, %v6010_v10  ;;  %5082 = vrcp.f32 %v3597_v0  ;;  %v5073_v9 = vpop.eup %5072  ;;  %v4723_v62 = vld [vmem:[#allocation10] sm:$0xff]  }
 0x982   :  { %v5075_v41 = vpop.eup %5074  ;;  %v3598_v32 = vadd.f32 1.0, %v5071_v42 }
 0x983   :  { %v3648_v30 = vshrl.u32 %v3638_v15, 16  ;;  %v3651_v49 = vshll.u32 %v3638_v15, 16  ;;  %v3918_v33 = vrot.slane %v3904_v46, %v6010_v10  ;;  %v3995_v63 = vrot.slane %v3911_v29, %v5824_v20 }
 0x984   :  { %5084 = vrcp.f32 %v3598_v32 }
 0x985   :  { %v3650_v3 = vrot.slane %v3648_v30, 3  ;;  %v3653_v59 = vrot.slane %v3651_v49, 4  ;;  %v3999_v28 = vrot.slane %v3918_v33, %v5824_v20  ;;  %v7211_v6 = vsel %vm4027_vm13, %v7079_v17, %v3995_v63 }
 0x987   :  { %v3654_v25 = vor.u32 %v3653_v59, %v3650_v3  ;;  %v7214_v26 = vsel %vm4027_vm13, %v7082_v44, %v3999_v28 }
 0x989   :  { %3689 = vmatprep.mubr.bf16.mxu0 %v3654_v25  ;;  %3730 = vmatprep.mubr.bf16.mxu1 %v3654_v25 }
 0x98a   :  { %v5077_v27 = vpop.eup %5076 }
 0x98b   :  { %v5079_v36 = vpop.eup %5078  ;;  %v3621_v5 = vmul.f32 %v5077_v27, %v5073_v9 }
 0x98c   :  { %v3622_v44 = vmul.f32 %v5079_v36, %v5075_v41 }
 0x98d   :  { %v5081_v43 = vpop.eup %5080 }
 0x98e   :  { %v5083_v17 = vpop.eup %5082  ;;  %v3619_v24 = vmul.f32 %v5081_v43, %v3615_v35 }
 0x98f   :  { %v3620_v40 = vmul.f32 %v5083_v17, %v3616_v38 }
 0x990   :  { %v3623_v50 = vadd.f32 %v3621_v5, %v3619_v24 }
 0x991   :  { %v3624_v11 = vadd.f32 %v3622_v44, %v3620_v40  ;;  %v5085_v31 = vpop.eup %5084 }
 0x992   :  { %5086 = vtanh.f32 %v3623_v50 }
 0x993   :  { %5088 = vtanh.f32 %v3624_v11 }
 0x994   :  { %5090 = vrcp.f32 %v3595_v12 }
 0x99f   :  { %v5087_v34 = vpop.eup %5086 }
 0x9a0   :  { %v5089_v13 = vpop.eup %5088 }
 0x9a1   :  { %v3628_v58 = vmul.f32 %v5089_v13, %v5085_v31  ;;  %v5091_v61 = vpop.eup %5090 }
 0x9a2   :  { %v3627_v14 = vmul.f32 %v5091_v61, %v5087_v34  ;;  %v4050_v34 = vld [vmem:[%s7244_s7] sm:$0x1] }
 0x9a3   :  { %v3631_v47 = vrot.slane %v3628_v58, 7  ;;  %v4051_v13 = vunpack.c.l.bf16 %v4050_v34 }
 0x9a5   :  { %v3637_v4 = vpack.c.bf16 %v3631_v47, %v3627_v14  ;;  %v4055_v58 = vrot.slane %v4051_v13, %v5824_v20 }
 0x9a7   :  { %v3640_v53 = vshrl.u32 %v3637_v4, 16  ;;  %v3643_v57 = vshll.u32 %v3637_v4, 16 }
 0x9a9   :  { %v3642_v52 = vrot.slane %v3640_v53, 3  ;;  %v3645_v39 = vrot.slane %v3643_v57, 4 }
 0x9ab   :  { %v3646_v18 = vor.u32 %v3645_v39, %v3642_v52 }
 0x9ad   :  { %3690 = vmatmul.mubr.bf16.vlgmr.msra.gmra.mxu0 %v3646_v18  ;;  %3731 = vmatmul.mubr.bf16.vlgmr.msra.gmra.mxu1 %v3646_v18 }
 0x9ae   :  { %4426 = vmatpush3.bf16.msra.mxu0 %v4716_v56  ;;  %4441 = vmatprep.mubr.msk.bf16.mxu0 %vm5443_vm14, %v5442_v7 }
 0x9af   :  { %4427 = vmatprep.subr.bf16.mxu0 %v5442_v7 }
 0x9b2   :  { %4428 = vmatpush3.bf16.msra.mxu0 %v4717_v51 }
 0x9b3   :  { %4429 = vmatprep.subr.bf16.mxu0 %v5442_v7 }
 0x9b6   :  { %4430 = vmatpush3.bf16.msra.mxu0 %v4718_v48 }
 0x9b7   :  { %4431 = vmatprep.subr.bf16.mxu0 %v5442_v7 }
 0x9ba   :  { %4432 = vmatpush3.bf16.msra.mxu0 %v4719_v23 }
 0x9bb   :  { %4433 = vmatprep.subr.bf16.mxu0 %v5442_v7 }
 0x9be   :  { %4434 = vmatpush3.bf16.msra.mxu0 %v4720_v8 }
 0x9bf   :  { %4435 = vmatprep.subr.bf16.mxu0 %v5442_v7 }
 0x9c2   :  { %4436 = vmatpush3.bf16.msra.mxu0 %v4721_v16 }
 0x9c3   :  { %4437 = vmatprep.subr.bf16.mxu0 %v5442_v7 }
 0x9c6   :  { %4438 = vmatpush3.bf16.msra.mxu0 %v4722_v2 }
 0x9c7   :  { %4439 = vmatprep.subr.bf16.mxu0 %v5442_v7 }
 0x9ca   :  { %4440 = vmatpush3.bf16.msra.mxu0 %v4723_v62 }
 0xa6d   :  { %v3691_v37 = vpop.f32.mrf.mxu0  ;;  %v3732_v22 = vpop.f32.mrf.mxu1 }
 0xa6e   :  { %v3692_v45 = vadd.f32 %v3691_v37, %v8172_v55  ;;  %v3733_v59 = vadd.f32 %v3732_v22, %v8174_v54 }
 0xa6f   :  { %v3693_v0 = vpop.f32.mrf.mxu0  ;;  %v3734_v15 = vpop.f32.mrf.mxu1 }
 0xa70   :  { %v4405_v46 = vmul.f32 -1.442695, %v3692_v45  ;;  %v3694_v29 = vadd.f32 %v3693_v0, %v8173_v1  ;;  %v4407_v28 = vmul.f32 -1.442695, %v3733_v59  ;;  %v3735_v19 = vadd.f32 %v3734_v15, %v8175_v21 }
 0xa71   :  { %v3695_v30 = vpop.f32.mrf.mxu0  ;;  %v3736_v49 = vpop.f32.mrf.mxu1 }
 0xa72   :  { %5092 = vpow2.f32 %v4405_v46  ;;  %v4406_v33 = vmul.f32 -1.442695, %v3694_v29 }
 0xa73   :  { %v3696_v63 = vpop.f32.mrf.mxu0  ;;  %v3737_v3 = vpop.f32.mrf.mxu1 }
 0xa74   :  { %5094 = vpow2.f32 %v4406_v33 }
 0xa75   :  { %5096 = vpow2.f32 %v4407_v28 }
 0xa7f   :  { %v5093_v25 = vpop.eup %5092 }
 0xa80   :  { %v3748_v42 = vadd.f32 1.0, %v5093_v25 }
 0xa81   :  { %v5095_v55 = vpop.eup %5094 }
 0xa82   :  { %5098 = vrcp.f32 %v3748_v42  ;;  %v3749_v9 = vadd.f32 1.0, %v5095_v55  ;;  %v5097_v1 = vpop.eup %5096 }
 0xa83   :  { %5100 = vtanh.f32 %v3735_v19  ;;  %v3750_v35 = vadd.f32 1.0, %v5097_v1 }
 0xa84   :  { %5102 = vrcp.f32 %v3749_v9 }
 0xa85   :  { %5104 = vrcp.f32 %v3750_v35 }
 0xa8f   :  { %v5099_v41 = vpop.eup %5098 }
 0xa90   :  { %v5101_v27 = vpop.eup %5100 }
 0xa91   :  { %v5103_v36 = vpop.eup %5102  ;;  %v3759_v38 = vmul.f32 %v5101_v27, %v5099_v41 }
 0xa92   :  { %v3758_v43 = vmul.f32 %v5103_v36, %v7198_v60  ;;  %v5105_v32 = vpop.eup %5104 }
 0xa94   :  { %v3760_v54 = vadd.f32 %v3759_v38, %v3758_v43 }
 0xa96   :  { %5106 = vtanh.f32 %v3760_v54 }
 0xaa3   :  { %v5107_v21 = vpop.eup %5106 }
 0xaa4   :  { %v3762_v17 = vmul.f32 %v5107_v21, %v5105_v32 }
 0xaa6   :  { %v3926_v24 = vrot.slane %v3762_v17, %v6010_v10 }
 0xaa8   :  { %v3927_v5 = vcombine.high %v3926_v24, %v3926_v24  ;;  %v3934_v40 = vrot.slane %v3926_v24, %v6010_v10 }
 0xaaa   :  { %v3941_v44 = vrot.slane %v3927_v5, %v6010_v10  ;;  %v4005_v50 = vrot.slane %v3934_v40, %v5824_v20 }
 0xaac   :  { %v4009_v12 = vrot.slane %v3941_v44, %v5824_v20  ;;  %v4031_v60 = vsel %vm4030_vm15, %v7211_v6, %v4005_v50 }
 0xaae   :  { %v4032_v11 = vsel %vm4030_vm15, %v7214_v26, %v4009_v12 }
 0xaaf   :  { %v4033_v31 = vpack.c.bf16 %v4032_v11, %v4031_v60 }
 0xab1   :  { %4442 = vmatmul.mubr.bf16.vlgmr.msra.gmra.mxu0 %v4033_v31 }
 0xb71   :  { %v4138_v61 = vpop.f32.mrf.mxu0 }
 0xb72   :  { %v4139_v14 = vadd.f32 %v4138_v61, %v4055_v58 }
 0xb73   :  { %v4443_v10 = vpop.f32.mrf.mxu0 }
 0xb74   :  { %4145 = vst [vmem:[#allocation11] sm:$0xff] %v4139_v14 }
 0xb75   :  { %v4141_v47 = vpop.f32.mrf.mxu0 }
 0xb76   :  { %v4142_v4 = vadd.f32 %v4141_v47, %v4055_v58 }
 0xb77   :  { %v4444_v6 = vpop.f32.mrf.mxu0 }
 0xb78   :  { %4146 = vst [vmem:[#allocation11 + $0x8] sm:$0xff] %v4142_v4 }
 0xb79   :  { %5411 = shalt.err (!%p5408_p1)
}
 0xb7a   :  { %s5445_s7 = smov 128   ;;  %s5446_s16 = smov 8  }
 0xb7b   :  { %4158 = dma.vmem_to_hbm [thread:$0]  %s4153_s14, 256, %s7245_s8, [#allocation4], %s5445_s7, %s5445_s7, %s5446_s16  }
 0xb7c   :  { %5426 = dma.done.wait [#allocation4], 256  }
 0xb7d   :  { %5427 = vsyncadd [#allocation4], 4294967040 }
 0xb7e   :  { %4162 = vsyncpa [#allocation3], 1 }
 0xb7f   :  { %4163 = vsyncpa [#allocation6], 1 }
 0xb80   :  { %4164 = vsyncpa [#allocation9], 1 }
 0xb81   :  { %4165 = vsyncpa [#allocation4], 1 }

</bundles_post_ra>
